<compile_context>
chip_gen: v7x
topology: tpu7x:2x2x1
jax: 0.10.0
libtpu: 0.0.40
codegen_flags: <defaults>
</compile_context>

<pallas_src>
import math
import numpy as np
import jax
import jax.numpy as jnp
from jax import lax
from jax.experimental import pallas as pl
from jax.experimental.pallas import tpu as pltpu


VMEM_LIMIT = 48 * 1024 * 1024        # above the 16/32 MiB scoped defaults, < v7x 64 MiB


def _round_up(x, m):
    return (x + m - 1) // m * m


def _cparams():
    return pltpu.CompilerParams(dimension_semantics=("parallel",),
                                vmem_limit_bytes=VMEM_LIMIT)


# ----------------------- fused conv + folded BN + ReLU -----------------------

def _make_conv_kernel(offsets, M):
    """One conv = one kernel: per-tap static row-offset slices of the flattened
    activation, bf16 MXU feeds, f32 accumulation, folded-BN + ReLU epilogue,
    bf16 store.  No K grid -> no scratch accumulator and no pl.when."""
    T = len(offsets)

    def kernel(x_ref, w_ref, s_ref, c_ref, o_ref):
        acc = jnp.dot(x_ref[0, pl.ds(offsets[0], M), :], w_ref[0],
                      preferred_element_type=jnp.float32)
        for t in range(1, T):
            acc = acc + jnp.dot(x_ref[0, pl.ds(offsets[t], M), :], w_ref[t],
                                preferred_element_type=jnp.float32)
        y = acc * s_ref[...] + c_ref[...]                 # folded BatchNorm (eval), f32
        o_ref[0] = jnp.maximum(y, 0.0).astype(o_ref.dtype)  # ReLU, bf16 writeback

    return kernel


def conv_bn_relu(x, w, scale, bias, *, stride=1, padding=0, dilation=1):
    """x: (N, H, W, Cin) NHWC bf16; w: (Cout, Cin, kh, kw) torch layout (f32).
    Fused conv + folded eval-mode BN + ReLU as a single batch-parallel pallas_call."""
    N, H, W, Cin = x.shape
    Cout, _, kh, kw = w.shape
    Ho = (H + 2 * padding - dilation * (kh - 1) - 1) // stride + 1
    Wo = (W + 2 * padding - dilation * (kw - 1) - 1) // stride + 1

    if stride == 1:
        # Stream the padded activation itself: tap (dy,dx) = one static
        # row-offset slice of the row-flattened tensor (no im2col in HBM).
        # Output rows use the padded width Wp; columns >= Wo are wrap-around
        # garbage and are stripped (and re-padded for the next conv) by XLA.
        Hp, Wp = H + 2 * padding, W + 2 * padding
        extra = -(-((kw - 1) * dilation) // Wp) if kw > 1 else 0
        xp = jnp.pad(x, ((0, 0), (padding, padding + extra),
                         (padding, padding), (0, 0)))
        L = (Hp + extra) * Wp
        x_flat = xp.reshape(N, L, Cin).astype(jnp.bfloat16)
        Cin_eff = Cin
        T = kh * kw
        M = Ho * Wp
        W_row = Wp
        offsets = [(dy * dilation) * Wp + dx * dilation
                   for dy in range(kh) for dx in range(kw)]
    else:
        # TODO(synk): stride>1 convs (layer0/layer2 only, a few KiB) still
        # extract their taps with XLA strided slices and run as a single-tap
        # matmul; stride-1 convs stream the activation with in-kernel offsets.
        xp = jnp.pad(x, ((0, 0), (padding, padding), (padding, padding), (0, 0)))
        cols = []
        for dy in range(kh):
            for dx in range(kw):
                sl = xp[:, dy * dilation: dy * dilation + (Ho - 1) * stride + 1: stride,
                           dx * dilation: dx * dilation + (Wo - 1) * stride + 1: stride, :]
                cols.append(sl)
        x_flat = jnp.concatenate(cols, axis=-1).reshape(
            N, Ho * Wo, kh * kw * Cin).astype(jnp.bfloat16)
        Cin_eff = kh * kw * Cin
        T = 1
        L = M = Ho * Wo
        W_row = Wo
        offsets = [0]

    wk = jnp.transpose(w, (2, 3, 1, 0)).reshape(T, Cin_eff, Cout).astype(jnp.bfloat16)
    s = scale.reshape(1, Cout).astype(jnp.float32)
    c = bias.reshape(1, Cout).astype(jnp.float32)

    out = pl.pallas_call(
        _make_conv_kernel(offsets, M),
        out_shape=jax.ShapeDtypeStruct((N, M, Cout), jnp.bfloat16),
        grid=(N,),
        in_specs=[pl.BlockSpec((1, L, Cin_eff), lambda n: (n, 0, 0)),
                  pl.BlockSpec((T, Cin_eff, Cout), lambda n: (0, 0, 0)),
                  pl.BlockSpec((1, Cout), lambda n: (0, 0)),
                  pl.BlockSpec((1, Cout), lambda n: (0, 0))],
        out_specs=pl.BlockSpec((1, M, Cout), lambda n: (n, 0, 0)),
        compiler_params=_cparams(),
    )(x_flat, wk, s, c)

    out = out.reshape(N, Ho, W_row, Cout)
    if W_row != Wo:
        out = out[:, :, :Wo, :]          # drop wrap-around garbage columns
    return out


# ------------------------------- fused PPM -----------------------------------

def _make_ppm_kernel(nbins):
    def kernel(x_ref, kp_ref, ku_ref, w_ref, s_ref, c_ref, o_ref):
        x = x_ref[0]                                               # (hw, Cin) bf16
        parts = [x]                                                # passthrough branch
        for b in range(nbins):
            pooled = jnp.dot(kp_ref[b], x,
                             preferred_element_type=jnp.float32)   # adaptive avg-pool
            r = jnp.dot(pooled.astype(jnp.bfloat16), w_ref[b],
                        preferred_element_type=jnp.float32)        # 1x1 conv
            r = jnp.maximum(r * s_ref[b] + c_ref[b], 0.0)          # BN + ReLU (f32)
            up = jnp.dot(ku_ref[b], r.astype(jnp.bfloat16),
                         preferred_element_type=jnp.float32)       # bilinear upsample
            parts.append(up.astype(jnp.bfloat16))
        o_ref[0] = jnp.concatenate(parts, axis=-1)                 # channel concat
    return kernel


def ppm_fused(x_flat, kpools, kups, w1s, scales, biases):
    """Whole PPM head (all bins + passthrough + concat) in ONE pallas_call."""
    N, hw, Cin = x_flat.shape
    nbins, bbp, _ = kpools.shape
    red = w1s.shape[-1]
    Ctot = Cin + nbins * red
    return pl.pallas_call(
        _make_ppm_kernel(nbins),
        out_shape=jax.ShapeDtypeStruct((N, hw, Ctot), jnp.bfloat16),
        grid=(N,),
        in_specs=[pl.BlockSpec((1, hw, Cin), lambda n: (n, 0, 0)),
                  pl.BlockSpec((nbins, bbp, hw), lambda n: (0, 0, 0)),
                  pl.BlockSpec((nbins, hw, bbp), lambda n: (0, 0, 0)),
                  pl.BlockSpec((nbins, Cin, red), lambda n: (0, 0, 0)),
                  pl.BlockSpec((nbins, 1, red), lambda n: (0, 0, 0)),
                  pl.BlockSpec((nbins, 1, red), lambda n: (0, 0, 0))],
        out_specs=pl.BlockSpec((1, hw, Ctot), lambda n: (n, 0, 0)),
        compiler_params=_cparams(),
    )(x_flat, kpools, kups, w1s, scales, biases)


# ------------------------- fused classifier + zoom ---------------------------

def _classify_zoom_kernel(xT_ref, w_ref, kzT_ref, o_ref):
    t = jnp.dot(w_ref[...], xT_ref[0], preferred_element_type=jnp.float32)
    o_ref[0] = jnp.dot(t.astype(jnp.bfloat16), kzT_ref[...],
                       preferred_element_type=jnp.float32)


def classify_zoom(btT, wcls_p, kzT):
    """1x1 classifier conv + bilinear (align_corners=True) zoom, lane-dense
    padded H*W output axis, emits NCHW directly."""
    N, C, hw = btT.shape
    ncls_p = wcls_p.shape[0]
    HWp = kzT.shape[1]
    return pl.pallas_call(
        _classify_zoom_kernel,
        out_shape=jax.ShapeDtypeStruct((N, ncls_p, HWp), jnp.float32),
        grid=(N,),
        in_specs=[pl.BlockSpec((1, C, hw), lambda n: (n, 0, 0)),
                  pl.BlockSpec((ncls_p, C), lambda n: (0, 0)),
                  pl.BlockSpec((hw, HWp), lambda n: (0, 0))],
        out_specs=pl.BlockSpec((1, ncls_p, HWp), lambda n: (n, 0, 0)),
        compiler_params=_cparams(),
    )(btT, wcls_p, kzT)


# ------------------------------ resize matrices ------------------------------

def adaptive_pool_matrix(out_size, in_size):
    """torch.nn.AdaptiveAvgPool2d index arithmetic (per axis)."""
    M = np.zeros((out_size, in_size), np.float32)
    for i in range(out_size):
        s = (i * in_size) // out_size
        e = int(math.ceil((i + 1) * in_size / out_size))
        M[i, s:e] = 1.0 / (e - s)
    return M


def bilinear_matrix(out_size, in_size):
    """F.interpolate(mode='bilinear', align_corners=True), per axis."""
    M = np.zeros((out_size, in_size), np.float32)
    if out_size == 1:
        M[0, 0] = 1.0
        return M
    scale = (in_size - 1) / (out_size - 1)
    for i in range(out_size):
        src = i * scale
        i0 = int(math.floor(src))
        if i0 >= in_size - 1:
            M[i, in_size - 1] = 1.0
        else:
            frac = src - i0
            M[i, i0] += 1.0 - frac
            M[i, i0 + 1] += frac
    return M


def fold_bn(gamma, beta, mean, var, eps=1e-5):
    scale = gamma / jnp.sqrt(var + eps)
    return scale, beta - mean * scale


# ------------------------------ configuration -------------------------------

IN_CH = 3
C0, C1, C2 = 8, 8, 16
FEA_DIM = 16                      # layer4 output channels
BINS = (1, 2)
RED = FEA_DIM // len(BINS)        # PPM reduction dim = 8
BOTTLENECK_DIM = 16
NUM_CLASSES = 3
ZOOM_FACTOR = 8


def init_params(key):
    keys = iter(jax.random.split(key, 64))

    def conv_w(cout, cin, kh, kw):
        fan_in = cin * kh * kw
        return jax.random.normal(next(keys), (cout, cin, kh, kw),
                                 jnp.float32) / math.sqrt(fan_in)

    def bn(c):
        gamma = 1.0 + 0.1 * jax.random.normal(next(keys), (c,), jnp.float32)
        beta = 0.1 * jax.random.normal(next(keys), (c,), jnp.float32)
        mean = 0.1 * jax.random.normal(next(keys), (c,), jnp.float32)
        var = 1.0 + 0.1 * jax.random.uniform(next(keys), (c,), jnp.float32)
        return fold_bn(gamma, beta, mean, var)

    p = {
        # backbone (simplified resnet-style stem + stages, stride-8, dilated)
        'w0': conv_w(C0, IN_CH, 3, 3), 'bn0': bn(C0),
        'w1': conv_w(C1, C0, 3, 3),    'bn1': bn(C1),
        'w2': conv_w(C2, C1, 3, 3),    'bn2': bn(C2),
        'w3': conv_w(FEA_DIM, C2, 3, 3), 'bn3': bn(FEA_DIM),
        'w4': conv_w(FEA_DIM, FEA_DIM, 3, 3), 'bn4': bn(FEA_DIM),
        # PPM: per bin, 1x1 conv (no bias) + BN + ReLU
        'ppm_w': [conv_w(RED, FEA_DIM, 1, 1) for _ in BINS],
        'ppm_bn': [bn(RED) for _ in BINS],
        # bottleneck: 3x3 conv (no bias) + BN + ReLU (+ Dropout2d identity in eval)
        'bw': conv_w(BOTTLENECK_DIM, FEA_DIM * 2, 3, 3), 'bbn': bn(BOTTLENECK_DIM),
        # classifier (dist='dot'): 1x1 conv, no bias
        'cls_w': conv_w(NUM_CLASSES, BOTTLENECK_DIM, 1, 1),
        # gamma = nn.Parameter(0.2) exists in the module but is unused in forward()
        'gamma': jnp.float32(0.2),
    }
    return p


# ------------------------------ PSPNet forward -------------------------------

def pspnet_forward(p, x, zoom_factor=ZOOM_FACTOR):
    N, _, H0, W0 = x.shape
    assert (H0 - 1) % 8 == 0 and (W0 - 1) % 8 == 0
    H = (H0 - 1) // 8 * zoom_factor + 1
    W = (W0 - 1) // 8 * zoom_factor + 1

    xh = jnp.transpose(x, (0, 2, 3, 1)).astype(jnp.bfloat16)   # single NCHW->NHWC

    # --- extract_features: simplified backbone (NHWC, bf16) ---
    f = conv_bn_relu(xh, p['w0'], *p['bn0'], stride=2, padding=1)            # layer0 conv
    # TODO(synk): 3x3 max-pool stays on the XLA reduce_window path (no Pallas kernel).
    f = lax.reduce_window(f, jnp.array(-jnp.inf, dtype=f.dtype), lax.max,
                          window_dimensions=(1, 3, 3, 1),
                          window_strides=(1, 2, 2, 1),
                          padding=((0, 0), (1, 1), (1, 1), (0, 0)))          # layer0 maxpool
    f = conv_bn_relu(f, p['w1'], *p['bn1'], stride=1, padding=1)             # layer1
    f = conv_bn_relu(f, p['w2'], *p['bn2'], stride=2, padding=1)             # layer2
    f = conv_bn_relu(f, p['w3'], *p['bn3'], stride=1, padding=2, dilation=2)  # layer3 (dil=2)
    x4 = conv_bn_relu(f, p['w4'], *p['bn4'], stride=1, padding=4, dilation=4)  # layer4 (dil=4)

    # --- PPM: ONE fused kernel for both bins + passthrough + concat ---
    _, hf, wf, _ = x4.shape
    hw = hf * wf
    nb = len(BINS)
    bbp = _round_up(max(b * b for b in BINS), 8)       # pad bins to a full sublane
    kpools = np.zeros((nb, bbp, hw), np.float32)
    kups = np.zeros((nb, hw, bbp), np.float32)
    for bi, b in enumerate(BINS):
        kpools[bi, :b * b] = np.kron(adaptive_pool_matrix(b, hf),
                                     adaptive_pool_matrix(b, wf))
        kups[bi, :, :b * b] = np.kron(bilinear_matrix(hf, b), bilinear_matrix(wf, b))
    w1s = jnp.stack([p['ppm_w'][i].reshape(RED, FEA_DIM).T for i in range(nb)]
                    ).astype(jnp.bfloat16)
    ppm_s = jnp.stack([p['ppm_bn'][i][0].reshape(1, RED) for i in range(nb)]
                      ).astype(jnp.float32)
    ppm_c = jnp.stack([p['ppm_bn'][i][1].reshape(1, RED) for i in range(nb)]
                      ).astype(jnp.float32)
    cat = ppm_fused(x4.reshape(N, hw, FEA_DIM),
                    jnp.asarray(kpools, jnp.bfloat16),
                    jnp.asarray(kups, jnp.bfloat16),
                    w1s, ppm_s, ppm_c)                  # (N, hw, FEA_DIM + nb*RED) bf16
    cat = cat.reshape(N, hf, wf, FEA_DIM + nb * RED)

    # --- bottleneck (Dropout2d is identity in eval) ---
    bt = conv_bn_relu(cat, p['bw'], *p['bbn'], stride=1, padding=1)   # (N, hf, wf, BOT)

    # --- classify + zoom: ONE fused kernel, lane-dense padded H*W, NCHW out ---
    ncls_p = _round_up(NUM_CLASSES, 8)
    wcls = p['cls_w'].reshape(NUM_CLASSES, BOTTLENECK_DIM)
    wcls_p = jnp.pad(wcls, ((0, ncls_p - NUM_CLASSES), (0, 0))).astype(jnp.bfloat16)
    if zoom_factor != 1:
        kz = np.kron(bilinear_matrix(H, hf), bilinear_matrix(W, wf))    # (H*W, hf*wf)
    else:
        kz = np.eye(hw, dtype=np.float32)
    # TODO(synk): at full 473x473 resolution this kron matrix would be replaced
    # by a separable two-stage resize tiled over the output grid.
    HWt = H * W
    HWp = _round_up(HWt, 128)              # 289 -> 384: all output stores unmasked
    kzT = np.zeros((hw, HWp), np.float32)
    kzT[:, :HWt] = kz.T
    btT = jnp.transpose(bt.reshape(N, hw, BOTTLENECK_DIM), (0, 2, 1))
    logits = classify_zoom(btT, wcls_p, jnp.asarray(kzT, jnp.bfloat16))  # (N, ncls_p, HWp)
    return logits[:, :NUM_CLASSES, :HWt].reshape(N, NUM_CLASSES, H, W)


# ----------------------------------- main ------------------------------------

if __name__ == "__main__":
    key = jax.random.PRNGKey(0)
    pkey, xkey = jax.random.split(key)
    params = init_params(pkey)

    # input: (H-1) % 8 == 0 and (W-1) % 8 == 0
    x = jax.random.normal(xkey, (2, IN_CH, 17, 17), jnp.float32)

    fwd = jax.jit(pspnet_forward)
    out = jax.block_until_ready(fwd(params, x))

    expected = (2, NUM_CLASSES,
                (17 - 1) // 8 * ZOOM_FACTOR + 1,
                (17 - 1) // 8 * ZOOM_FACTOR + 1)
    assert out.shape == expected, (out.shape, expected)
    assert bool(jnp.all(jnp.isfinite(out)))
    print("KERNEL_OK")
</pallas_src>

<mosaic_0001>
module attributes {stable_mosaic.version = 11 : i64} {
  func.func @kernel(%arg0: i32, %arg1: memref<1x81x27xbf16, #tpu.memory_space<vmem>>, %arg2: memref<1x27x8xbf16, #tpu.memory_space<vmem>>, %arg3: memref<1x8xf32, #tpu.memory_space<vmem>>, %arg4: memref<1x8xf32, #tpu.memory_space<vmem>>, %arg5: memref<1x81x8xbf16, #tpu.memory_space<vmem>>) attributes {dimension_semantics = [#tpu.dimension_semantics<parallel>], iteration_bounds = array<i64: 2>, scalar_prefetch = 0 : i64, scratch_operands = 0 : i64, tpu.core_type = #tpu.core_type<tc>, window_params = [{transform_indices = @transform_0, window_bounds = array<i64: 1, 81, 27>}, {pipeline_mode = #tpu.pipeline_mode<synchronous>, transform_indices = @transform_1, window_bounds = array<i64: 1, 27, 8>}, {pipeline_mode = #tpu.pipeline_mode<synchronous>, transform_indices = @transform_2, window_bounds = array<i64: 1, 8>}, {pipeline_mode = #tpu.pipeline_mode<synchronous>, transform_indices = @transform_3, window_bounds = array<i64: 1, 8>}, {transform_indices = @transform_4, window_bounds = array<i64: 1, 81, 8>}]} {
    %c0 = arith.constant 0 : index
    %c0_0 = arith.constant 0 : index
    %c0_1 = arith.constant 0 : index
    %0 = vector.load %arg1[%c0, %c0_0, %c0_1] : memref<1x81x27xbf16, #tpu.memory_space<vmem>>, vector<1x81x27xbf16>
    %1 = vector.shape_cast %0 : vector<1x81x27xbf16> to vector<81x27xbf16>
    %c0_2 = arith.constant 0 : index
    %c0_3 = arith.constant 0 : index
    %c0_4 = arith.constant 0 : index
    %2 = vector.load %arg2[%c0_2, %c0_3, %c0_4] : memref<1x27x8xbf16, #tpu.memory_space<vmem>>, vector<1x27x8xbf16>
    %3 = vector.shape_cast %2 : vector<1x27x8xbf16> to vector<27x8xbf16>
    %cst = arith.constant dense<0.000000e+00> : vector<81x8xf32>
    %4 = tpu.matmul %1, %3, %cst {dimension_numbers = #tpu.dot_dimension_numbers<[1], [0], [0], [1], [0, 0, 1, 1], [], []>} : vector<81x27xbf16>, vector<27x8xbf16>, vector<81x8xf32> -> vector<81x8xf32>
    %c0_5 = arith.constant 0 : index
    %c0_6 = arith.constant 0 : index
    %5 = vector.load %arg3[%c0_5, %c0_6] : memref<1x8xf32, #tpu.memory_space<vmem>>, vector<1x8xf32>
    %6 = vector.broadcast %5 : vector<1x8xf32> to vector<81x8xf32>
    %7 = arith.mulf %4, %6 : vector<81x8xf32>
    %c0_7 = arith.constant 0 : index
    %c0_8 = arith.constant 0 : index
    %8 = vector.load %arg4[%c0_7, %c0_8] : memref<1x8xf32, #tpu.memory_space<vmem>>, vector<1x8xf32>
    %9 = vector.broadcast %8 : vector<1x8xf32> to vector<81x8xf32>
    %10 = arith.addf %7, %9 : vector<81x8xf32>
    %cst_9 = arith.constant 0.000000e+00 : f32
    %11 = vector.broadcast %cst_9 : f32 to vector<81x8xf32>
    %12 = arith.maximumf %10, %11 : vector<81x8xf32>
    %13 = arith.truncf %12 : vector<81x8xf32> to vector<81x8xbf16>
    %c0_10 = arith.constant 0 : index
    %c0_11 = arith.constant 0 : index
    %c0_12 = arith.constant 0 : index
    %14 = vector.load %arg5[%c0_10, %c0_11, %c0_12] : memref<1x81x8xbf16, #tpu.memory_space<vmem>>, vector<1x81x8xbf16>
    %15 = vector.shape_cast %14 : vector<1x81x8xbf16> to vector<81x8xbf16>
    %16 = vector.shape_cast %13 : vector<81x8xbf16> to vector<1x81x8xbf16>
    tpu.vector_store %arg5[%c0_10, %c0_11, %c0_12], %16 {strides = array<i32>} : memref<1x81x8xbf16, #tpu.memory_space<vmem>>, vector<1x81x8xbf16>,
    return
  }
  func.func @transform_0(%arg0: i32) -> (i32, i32, i32) {
    %c0_i32 = arith.constant 0 : i32
    %c0_i32_0 = arith.constant 0 : i32
    %c0_i32_1 = arith.constant 0 : i32
    return %arg0, %c0_i32, %c0_i32_0 : i32, i32, i32
  }
  func.func @transform_1(%arg0: i32) -> (i32, i32, i32) {
    %c0_i32 = arith.constant 0 : i32
    %c0_i32_0 = arith.constant 0 : i32
    %c0_i32_1 = arith.constant 0 : i32
    %c0_i32_2 = arith.constant 0 : i32
    return %c0_i32, %c0_i32_0, %c0_i32_1 : i32, i32, i32
  }
  func.func @transform_2(%arg0: i32) -> (i32, i32) {
    %c0_i32 = arith.constant 0 : i32
    %c0_i32_0 = arith.constant 0 : i32
    %c0_i32_1 = arith.constant 0 : i32
    return %c0_i32, %c0_i32_0 : i32, i32
  }
  func.func @transform_3(%arg0: i32) -> (i32, i32) {
    %c0_i32 = arith.constant 0 : i32
    %c0_i32_0 = arith.constant 0 : i32
    %c0_i32_1 = arith.constant 0 : i32
    return %c0_i32, %c0_i32_0 : i32, i32
  }
  func.func @transform_4(%arg0: i32) -> (i32, i32, i32) {
    %c0_i32 = arith.constant 0 : i32
    %c0_i32_0 = arith.constant 0 : i32
    %c0_i32_1 = arith.constant 0 : i32
    return %arg0, %c0_i32, %c0_i32_0 : i32, i32, i32
  }
}

module attributes {stable_mosaic.version = 11 : i64} {
  func.func @kernel(%arg0: i32, %arg1: memref<1x56x8xbf16, #tpu.memory_space<vmem>>, %arg2: memref<9x8x8xbf16, #tpu.memory_space<vmem>>, %arg3: memref<1x8xf32, #tpu.memory_space<vmem>>, %arg4: memref<1x8xf32, #tpu.memory_space<vmem>>, %arg5: memref<1x35x8xbf16, #tpu.memory_space<vmem>>) attributes {dimension_semantics = [#tpu.dimension_semantics<parallel>], iteration_bounds = array<i64: 2>, scalar_prefetch = 0 : i64, scratch_operands = 0 : i64, tpu.core_type = #tpu.core_type<tc>, window_params = [{transform_indices = @transform_0, window_bounds = array<i64: 1, 56, 8>}, {pipeline_mode = #tpu.pipeline_mode<synchronous>, transform_indices = @transform_1, window_bounds = array<i64: 9, 8, 8>}, {pipeline_mode = #tpu.pipeline_mode<synchronous>, transform_indices = @transform_2, window_bounds = array<i64: 1, 8>}, {pipeline_mode = #tpu.pipeline_mode<synchronous>, transform_indices = @transform_3, window_bounds = array<i64: 1, 8>}, {transform_indices = @transform_4, window_bounds = array<i64: 1, 35, 8>}]} {
    %c0 = arith.constant 0 : index
    %c0_0 = arith.constant 0 : index
    %c0_1 = arith.constant 0 : index
    %0 = vector.load %arg1[%c0, %c0_0, %c0_1] : memref<1x56x8xbf16, #tpu.memory_space<vmem>>, vector<1x35x8xbf16>
    %1 = vector.shape_cast %0 : vector<1x35x8xbf16> to vector<35x8xbf16>
    %c0_2 = arith.constant 0 : index
    %c0_3 = arith.constant 0 : index
    %c0_4 = arith.constant 0 : index
    %2 = vector.load %arg2[%c0_2, %c0_3, %c0_4] : memref<9x8x8xbf16, #tpu.memory_space<vmem>>, vector<1x8x8xbf16>
    %3 = vector.shape_cast %2 : vector<1x8x8xbf16> to vector<8x8xbf16>
    %cst = arith.constant dense<0.000000e+00> : vector<35x8xf32>
    %4 = tpu.matmul %1, %3, %cst {dimension_numbers = #tpu.dot_dimension_numbers<[1], [0], [0], [1], [0, 0, 1, 1], [], []>} : vector<35x8xbf16>, vector<8x8xbf16>, vector<35x8xf32> -> vector<35x8xf32>
    %c0_5 = arith.constant 0 : index
    %c1 = arith.constant 1 : index
    %c0_6 = arith.constant 0 : index
    %5 = vector.load %arg1[%c0_5, %c1, %c0_6] : memref<1x56x8xbf16, #tpu.memory_space<vmem>>, vector<1x35x8xbf16>
    %6 = vector.shape_cast %5 : vector<1x35x8xbf16> to vector<35x8xbf16>
    %c1_7 = arith.constant 1 : index
    %c0_8 = arith.constant 0 : index
    %c0_9 = arith.constant 0 : index
    %7 = vector.load %arg2[%c1_7, %c0_8, %c0_9] : memref<9x8x8xbf16, #tpu.memory_space<vmem>>, vector<1x8x8xbf16>
    %8 = vector.shape_cast %7 : vector<1x8x8xbf16> to vector<8x8xbf16>
    %cst_10 = arith.constant dense<0.000000e+00> : vector<35x8xf32>
    %9 = tpu.matmul %6, %8, %cst_10 {dimension_numbers = #tpu.dot_dimension_numbers<[1], [0], [0], [1], [0, 0, 1, 1], [], []>} : vector<35x8xbf16>, vector<8x8xbf16>, vector<35x8xf32> -> vector<35x8xf32>
    %10 = arith.addf %4, %9 : vector<35x8xf32>
    %c0_11 = arith.constant 0 : index
    %c2 = arith.constant 2 : index
    %c0_12 = arith.constant 0 : index
    %11 = vector.load %arg1[%c0_11, %c2, %c0_12] : memref<1x56x8xbf16, #tpu.memory_space<vmem>>, vector<1x35x8xbf16>
    %12 = vector.shape_cast %11 : vector<1x35x8xbf16> to vector<35x8xbf16>
    %c2_13 = arith.constant 2 : index
    %c0_14 = arith.constant 0 : index
    %c0_15 = arith.constant 0 : index
    %13 = vector.load %arg2[%c2_13, %c0_14, %c0_15] : memref<9x8x8xbf16, #tpu.memory_space<vmem>>, vector<1x8x8xbf16>
    %14 = vector.shape_cast %13 : vector<1x8x8xbf16> to vector<8x8xbf16>
    %cst_16 = arith.constant dense<0.000000e+00> : vector<35x8xf32>
    %15 = tpu.matmul %12, %14, %cst_16 {dimension_numbers = #tpu.dot_dimension_numbers<[1], [0], [0], [1], [0, 0, 1, 1], [], []>} : vector<35x8xbf16>, vector<8x8xbf16>, vector<35x8xf32> -> vector<35x8xf32>
    %16 = arith.addf %10, %15 : vector<35x8xf32>
    %c0_17 = arith.constant 0 : index
    %c7 = arith.constant 7 : index
    %c0_18 = arith.constant 0 : index
    %17 = vector.load %arg1[%c0_17, %c7, %c0_18] : memref<1x56x8xbf16, #tpu.memory_space<vmem>>, vector<1x35x8xbf16>
    %18 = vector.shape_cast %17 : vector<1x35x8xbf16> to vector<35x8xbf16>
    %c3 = arith.constant 3 : index
    %c0_19 = arith.constant 0 : index
    %c0_20 = arith.constant 0 : index
    %19 = vector.load %arg2[%c3, %c0_19, %c0_20] : memref<9x8x8xbf16, #tpu.memory_space<vmem>>, vector<1x8x8xbf16>
    %20 = vector.shape_cast %19 : vector<1x8x8xbf16> to vector<8x8xbf16>
    %cst_21 = arith.constant dense<0.000000e+00> : vector<35x8xf32>
    %21 = tpu.matmul %18, %20, %cst_21 {dimension_numbers = #tpu.dot_dimension_numbers<[1], [0], [0], [1], [0, 0, 1, 1], [], []>} : vector<35x8xbf16>, vector<8x8xbf16>, vector<35x8xf32> -> vector<35x8xf32>
    %22 = arith.addf %16, %21 : vector<35x8xf32>
    %c0_22 = arith.constant 0 : index
    %c8 = arith.constant 8 : index
    %c0_23 = arith.constant 0 : index
    %23 = vector.load %arg1[%c0_22, %c8, %c0_23] : memref<1x56x8xbf16, #tpu.memory_space<vmem>>, vector<1x35x8xbf16>
    %24 = vector.shape_cast %23 : vector<1x35x8xbf16> to vector<35x8xbf16>
    %c4 = arith.constant 4 : index
    %c0_24 = arith.constant 0 : index
    %c0_25 = arith.constant 0 : index
    %25 = vector.load %arg2[%c4, %c0_24, %c0_25] : memref<9x8x8xbf16, #tpu.memory_space<vmem>>, vector<1x8x8xbf16>
    %26 = vector.shape_cast %25 : vector<1x8x8xbf16> to vector<8x8xbf16>
    %cst_26 = arith.constant dense<0.000000e+00> : vector<35x8xf32>
    %27 = tpu.matmul %24, %26, %cst_26 {dimension_numbers = #tpu.dot_dimension_numbers<[1], [0], [0], [1], [0, 0, 1, 1], [], []>} : vector<35x8xbf16>, vector<8x8xbf16>, vector<35x8xf32> -> vector<35x8xf32>
    %28 = arith.addf %22, %27 : vector<35x8xf32>
    %c0_27 = arith.constant 0 : index
    %c9 = arith.constant 9 : index
    %c0_28 = arith.constant 0 : index
    %29 = vector.load %arg1[%c0_27, %c9, %c0_28] : memref<1x56x8xbf16, #tpu.memory_space<vmem>>, vector<1x35x8xbf16>
    %30 = vector.shape_cast %29 : vector<1x35x8xbf16> to vector<35x8xbf16>
    %c5 = arith.constant 5 : index
    %c0_29 = arith.constant 0 : index
    %c0_30 = arith.constant 0 : index
    %31 = vector.load %arg2[%c5, %c0_29, %c0_30] : memref<9x8x8xbf16, #tpu.memory_space<vmem>>, vector<1x8x8xbf16>
    %32 = vector.shape_cast %31 : vector<1x8x8xbf16> to vector<8x8xbf16>
    %cst_31 = arith.constant dense<0.000000e+00> : vector<35x8xf32>
    %33 = tpu.matmul %30, %32, %cst_31 {dimension_numbers = #tpu.dot_dimension_numbers<[1], [0], [0], [1], [0, 0, 1, 1], [], []>} : vector<35x8xbf16>, vector<8x8xbf16>, vector<35x8xf32> -> vector<35x8xf32>
    %34 = arith.addf %28, %33 : vector<35x8xf32>
    %c0_32 = arith.constant 0 : index
    %c14 = arith.constant 14 : index
    %c0_33 = arith.constant 0 : index
    %35 = vector.load %arg1[%c0_32, %c14, %c0_33] : memref<1x56x8xbf16, #tpu.memory_space<vmem>>, vector<1x35x8xbf16>
    %36 = vector.shape_cast %35 : vector<1x35x8xbf16> to vector<35x8xbf16>
    %c6 = arith.constant 6 : index
    %c0_34 = arith.constant 0 : index
    %c0_35 = arith.constant 0 : index
    %37 = vector.load %arg2[%c6, %c0_34, %c0_35] : memref<9x8x8xbf16, #tpu.memory_space<vmem>>, vector<1x8x8xbf16>
    %38 = vector.shape_cast %37 : vector<1x8x8xbf16> to vector<8x8xbf16>
    %cst_36 = arith.constant dense<0.000000e+00> : vector<35x8xf32>
    %39 = tpu.matmul %36, %38, %cst_36 {dimension_numbers = #tpu.dot_dimension_numbers<[1], [0], [0], [1], [0, 0, 1, 1], [], []>} : vector<35x8xbf16>, vector<8x8xbf16>, vector<35x8xf32> -> vector<35x8xf32>
    %40 = arith.addf %34, %39 : vector<35x8xf32>
    %c0_37 = arith.constant 0 : index
    %c15 = arith.constant 15 : index
    %c0_38 = arith.constant 0 : index
    %41 = vector.load %arg1[%c0_37, %c15, %c0_38] : memref<1x56x8xbf16, #tpu.memory_space<vmem>>, vector<1x35x8xbf16>
    %42 = vector.shape_cast %41 : vector<1x35x8xbf16> to vector<35x8xbf16>
    %c7_39 = arith.constant 7 : index
    %c0_40 = arith.constant 0 : index
    %c0_41 = arith.constant 0 : index
    %43 = vector.load %arg2[%c7_39, %c0_40, %c0_41] : memref<9x8x8xbf16, #tpu.memory_space<vmem>>, vector<1x8x8xbf16>
    %44 = vector.shape_cast %43 : vector<1x8x8xbf16> to vector<8x8xbf16>
    %cst_42 = arith.constant dense<0.000000e+00> : vector<35x8xf32>
    %45 = tpu.matmul %42, %44, %cst_42 {dimension_numbers = #tpu.dot_dimension_numbers<[1], [0], [0], [1], [0, 0, 1, 1], [], []>} : vector<35x8xbf16>, vector<8x8xbf16>, vector<35x8xf32> -> vector<35x8xf32>
    %46 = arith.addf %40, %45 : vector<35x8xf32>
    %c0_43 = arith.constant 0 : index
    %c16 = arith.constant 16 : index
    %c0_44 = arith.constant 0 : index
    %47 = vector.load %arg1[%c0_43, %c16, %c0_44] : memref<1x56x8xbf16, #tpu.memory_space<vmem>>, vector<1x35x8xbf16>
    %48 = vector.shape_cast %47 : vector<1x35x8xbf16> to vector<35x8xbf16>
    %c8_45 = arith.constant 8 : index
    %c0_46 = arith.constant 0 : index
    %c0_47 = arith.constant 0 : index
    %49 = vector.load %arg2[%c8_45, %c0_46, %c0_47] : memref<9x8x8xbf16, #tpu.memory_space<vmem>>, vector<1x8x8xbf16>
    %50 = vector.shape_cast %49 : vector<1x8x8xbf16> to vector<8x8xbf16>
    %cst_48 = arith.constant dense<0.000000e+00> : vector<35x8xf32>
    %51 = tpu.matmul %48, %50, %cst_48 {dimension_numbers = #tpu.dot_dimension_numbers<[1], [0], [0], [1], [0, 0, 1, 1], [], []>} : vector<35x8xbf16>, vector<8x8xbf16>, vector<35x8xf32> -> vector<35x8xf32>
    %52 = arith.addf %46, %51 : vector<35x8xf32>
    %c0_49 = arith.constant 0 : index
    %c0_50 = arith.constant 0 : index
    %53 = vector.load %arg3[%c0_49, %c0_50] : memref<1x8xf32, #tpu.memory_space<vmem>>, vector<1x8xf32>
    %54 = vector.broadcast %53 : vector<1x8xf32> to vector<35x8xf32>
    %55 = arith.mulf %52, %54 : vector<35x8xf32>
    %c0_51 = arith.constant 0 : index
    %c0_52 = arith.constant 0 : index
    %56 = vector.load %arg4[%c0_51, %c0_52] : memref<1x8xf32, #tpu.memory_space<vmem>>, vector<1x8xf32>
    %57 = vector.broadcast %56 : vector<1x8xf32> to vector<35x8xf32>
    %58 = arith.addf %55, %57 : vector<35x8xf32>
    %cst_53 = arith.constant 0.000000e+00 : f32
    %59 = vector.broadcast %cst_53 : f32 to vector<35x8xf32>
    %60 = arith.maximumf %58, %59 : vector<35x8xf32>
    %61 = arith.truncf %60 : vector<35x8xf32> to vector<35x8xbf16>
    %c0_54 = arith.constant 0 : index
    %c0_55 = arith.constant 0 : index
    %c0_56 = arith.constant 0 : index
    %62 = vector.load %arg5[%c0_54, %c0_55, %c0_56] : memref<1x35x8xbf16, #tpu.memory_space<vmem>>, vector<1x35x8xbf16>
    %63 = vector.shape_cast %62 : vector<1x35x8xbf16> to vector<35x8xbf16>
    %64 = vector.shape_cast %61 : vector<35x8xbf16> to vector<1x35x8xbf16>
    tpu.vector_store %arg5[%c0_54, %c0_55, %c0_56], %64 {strides = array<i32>} : memref<1x35x8xbf16, #tpu.memory_space<vmem>>, vector<1x35x8xbf16>,
    return
  }
  func.func @transform_0(%arg0: i32) -> (i32, i32, i32) {
    %c0_i32 = arith.constant 0 : i32
    %c0_i32_0 = arith.constant 0 : i32
    %c0_i32_1 = arith.constant 0 : i32
    return %arg0, %c0_i32, %c0_i32_0 : i32, i32, i32
  }
  func.func @transform_1(%arg0: i32) -> (i32, i32, i32) {
    %c0_i32 = arith.constant 0 : i32
    %c0_i32_0 = arith.constant 0 : i32
    %c0_i32_1 = arith.constant 0 : i32
    %c0_i32_2 = arith.constant 0 : i32
    return %c0_i32, %c0_i32_0, %c0_i32_1 : i32, i32, i32
  }
  func.func @transform_2(%arg0: i32) -> (i32, i32) {
    %c0_i32 = arith.constant 0 : i32
    %c0_i32_0 = arith.constant 0 : i32
    %c0_i32_1 = arith.constant 0 : i32
    return %c0_i32, %c0_i32_0 : i32, i32
  }
  func.func @transform_3(%arg0: i32) -> (i32, i32) {
    %c0_i32 = arith.constant 0 : i32
    %c0_i32_0 = arith.constant 0 : i32
    %c0_i32_1 = arith.constant 0 : i32
    return %c0_i32, %c0_i32_0 : i32, i32
  }
  func.func @transform_4(%arg0: i32) -> (i32, i32, i32) {
    %c0_i32 = arith.constant 0 : i32
    %c0_i32_0 = arith.constant 0 : i32
    %c0_i32_1 = arith.constant 0 : i32
    return %arg0, %c0_i32, %c0_i32_0 : i32, i32, i32
  }
}

module attributes {stable_mosaic.version = 11 : i64} {
  func.func @kernel(%arg0: i32, %arg1: memref<1x9x72xbf16, #tpu.memory_space<vmem>>, %arg2: memref<1x72x16xbf16, #tpu.memory_space<vmem>>, %arg3: memref<1x16xf32, #tpu.memory_space<vmem>>, %arg4: memref<1x16xf32, #tpu.memory_space<vmem>>, %arg5: memref<1x9x16xbf16, #tpu.memory_space<vmem>>) attributes {dimension_semantics = [#tpu.dimension_semantics<parallel>], iteration_bounds = array<i64: 2>, scalar_prefetch = 0 : i64, scratch_operands = 0 : i64, tpu.core_type = #tpu.core_type<tc>, window_params = [{transform_indices = @transform_0, window_bounds = array<i64: 1, 9, 72>}, {pipeline_mode = #tpu.pipeline_mode<synchronous>, transform_indices = @transform_1, window_bounds = array<i64: 1, 72, 16>}, {pipeline_mode = #tpu.pipeline_mode<synchronous>, transform_indices = @transform_2, window_bounds = array<i64: 1, 16>}, {pipeline_mode = #tpu.pipeline_mode<synchronous>, transform_indices = @transform_3, window_bounds = array<i64: 1, 16>}, {transform_indices = @transform_4, window_bounds = array<i64: 1, 9, 16>}]} {
    %c0 = arith.constant 0 : index
    %c0_0 = arith.constant 0 : index
    %c0_1 = arith.constant 0 : index
    %0 = vector.load %arg1[%c0, %c0_0, %c0_1] : memref<1x9x72xbf16, #tpu.memory_space<vmem>>, vector<1x9x72xbf16>
    %1 = vector.shape_cast %0 : vector<1x9x72xbf16> to vector<9x72xbf16>
    %c0_2 = arith.constant 0 : index
    %c0_3 = arith.constant 0 : index
    %c0_4 = arith.constant 0 : index
    %2 = vector.load %arg2[%c0_2, %c0_3, %c0_4] : memref<1x72x16xbf16, #tpu.memory_space<vmem>>, vector<1x72x16xbf16>
    %3 = vector.shape_cast %2 : vector<1x72x16xbf16> to vector<72x16xbf16>
    %cst = arith.constant dense<0.000000e+00> : vector<9x16xf32>
    %4 = tpu.matmul %1, %3, %cst {dimension_numbers = #tpu.dot_dimension_numbers<[1], [0], [0], [1], [0, 0, 1, 1], [], []>} : vector<9x72xbf16>, vector<72x16xbf16>, vector<9x16xf32> -> vector<9x16xf32>
    %c0_5 = arith.constant 0 : index
    %c0_6 = arith.constant 0 : index
    %5 = vector.load %arg3[%c0_5, %c0_6] : memref<1x16xf32, #tpu.memory_space<vmem>>, vector<1x16xf32>
    %6 = vector.broadcast %5 : vector<1x16xf32> to vector<9x16xf32>
    %7 = arith.mulf %4, %6 : vector<9x16xf32>
    %c0_7 = arith.constant 0 : index
    %c0_8 = arith.constant 0 : index
    %8 = vector.load %arg4[%c0_7, %c0_8] : memref<1x16xf32, #tpu.memory_space<vmem>>, vector<1x16xf32>
    %9 = vector.broadcast %8 : vector<1x16xf32> to vector<9x16xf32>
    %10 = arith.addf %7, %9 : vector<9x16xf32>
    %cst_9 = arith.constant 0.000000e+00 : f32
    %11 = vector.broadcast %cst_9 : f32 to vector<9x16xf32>
    %12 = arith.maximumf %10, %11 : vector<9x16xf32>
    %13 = arith.truncf %12 : vector<9x16xf32> to vector<9x16xbf16>
    %c0_10 = arith.constant 0 : index
    %c0_11 = arith.constant 0 : index
    %c0_12 = arith.constant 0 : index
    %14 = vector.load %arg5[%c0_10, %c0_11, %c0_12] : memref<1x9x16xbf16, #tpu.memory_space<vmem>>, vector<1x9x16xbf16>
    %15 = vector.shape_cast %14 : vector<1x9x16xbf16> to vector<9x16xbf16>
    %16 = vector.shape_cast %13 : vector<9x16xbf16> to vector<1x9x16xbf16>
    tpu.vector_store %arg5[%c0_10, %c0_11, %c0_12], %16 {strides = array<i32>} : memref<1x9x16xbf16, #tpu.memory_space<vmem>>, vector<1x9x16xbf16>,
    return
  }
  func.func @transform_0(%arg0: i32) -> (i32, i32, i32) {
    %c0_i32 = arith.constant 0 : i32
    %c0_i32_0 = arith.constant 0 : i32
    %c0_i32_1 = arith.constant 0 : i32
    return %arg0, %c0_i32, %c0_i32_0 : i32, i32, i32
  }
  func.func @transform_1(%arg0: i32) -> (i32, i32, i32) {
    %c0_i32 = arith.constant 0 : i32
    %c0_i32_0 = arith.constant 0 : i32
    %c0_i32_1 = arith.constant 0 : i32
    %c0_i32_2 = arith.constant 0 : i32
    return %c0_i32, %c0_i32_0, %c0_i32_1 : i32, i32, i32
  }
  func.func @transform_2(%arg0: i32) -> (i32, i32) {
    %c0_i32 = arith.constant 0 : i32
    %c0_i32_0 = arith.constant 0 : i32
    %c0_i32_1 = arith.constant 0 : i32
    return %c0_i32, %c0_i32_0 : i32, i32
  }
  func.func @transform_3(%arg0: i32) -> (i32, i32) {
    %c0_i32 = arith.constant 0 : i32
    %c0_i32_0 = arith.constant 0 : i32
    %c0_i32_1 = arith.constant 0 : i32
    return %c0_i32, %c0_i32_0 : i32, i32
  }
  func.func @transform_4(%arg0: i32) -> (i32, i32, i32) {
    %c0_i32 = arith.constant 0 : i32
    %c0_i32_0 = arith.constant 0 : i32
    %c0_i32_1 = arith.constant 0 : i32
    return %arg0, %c0_i32, %c0_i32_0 : i32, i32, i32
  }
}

module attributes {stable_mosaic.version = 11 : i64} {
  func.func @kernel(%arg0: i32, %arg1: memref<1x56x16xbf16, #tpu.memory_space<vmem>>, %arg2: memref<9x16x16xbf16, #tpu.memory_space<vmem>>, %arg3: memref<1x16xf32, #tpu.memory_space<vmem>>, %arg4: memref<1x16xf32, #tpu.memory_space<vmem>>, %arg5: memref<1x21x16xbf16, #tpu.memory_space<vmem>>) attributes {dimension_semantics = [#tpu.dimension_semantics<parallel>], iteration_bounds = array<i64: 2>, scalar_prefetch = 0 : i64, scratch_operands = 0 : i64, tpu.core_type = #tpu.core_type<tc>, window_params = [{transform_indices = @transform_0, window_bounds = array<i64: 1, 56, 16>}, {pipeline_mode = #tpu.pipeline_mode<synchronous>, transform_indices = @transform_1, window_bounds = array<i64: 9, 16, 16>}, {pipeline_mode = #tpu.pipeline_mode<synchronous>, transform_indices = @transform_2, window_bounds = array<i64: 1, 16>}, {pipeline_mode = #tpu.pipeline_mode<synchronous>, transform_indices = @transform_3, window_bounds = array<i64: 1, 16>}, {transform_indices = @transform_4, window_bounds = array<i64: 1, 21, 16>}]} {
    %c0 = arith.constant 0 : index
    %c0_0 = arith.constant 0 : index
    %c0_1 = arith.constant 0 : index
    %0 = vector.load %arg1[%c0, %c0_0, %c0_1] : memref<1x56x16xbf16, #tpu.memory_space<vmem>>, vector<1x21x16xbf16>
    %1 = vector.shape_cast %0 : vector<1x21x16xbf16> to vector<21x16xbf16>
    %c0_2 = arith.constant 0 : index
    %c0_3 = arith.constant 0 : index
    %c0_4 = arith.constant 0 : index
    %2 = vector.load %arg2[%c0_2, %c0_3, %c0_4] : memref<9x16x16xbf16, #tpu.memory_space<vmem>>, vector<1x16x16xbf16>
    %3 = vector.shape_cast %2 : vector<1x16x16xbf16> to vector<16x16xbf16>
    %cst = arith.constant dense<0.000000e+00> : vector<21x16xf32>
    %4 = tpu.matmul %1, %3, %cst {dimension_numbers = #tpu.dot_dimension_numbers<[1], [0], [0], [1], [0, 0, 1, 1], [], []>} : vector<21x16xbf16>, vector<16x16xbf16>, vector<21x16xf32> -> vector<21x16xf32>
    %c0_5 = arith.constant 0 : index
    %c2 = arith.constant 2 : index
    %c0_6 = arith.constant 0 : index
    %5 = vector.load %arg1[%c0_5, %c2, %c0_6] : memref<1x56x16xbf16, #tpu.memory_space<vmem>>, vector<1x21x16xbf16>
    %6 = vector.shape_cast %5 : vector<1x21x16xbf16> to vector<21x16xbf16>
    %c1 = arith.constant 1 : index
    %c0_7 = arith.constant 0 : index
    %c0_8 = arith.constant 0 : index
    %7 = vector.load %arg2[%c1, %c0_7, %c0_8] : memref<9x16x16xbf16, #tpu.memory_space<vmem>>, vector<1x16x16xbf16>
    %8 = vector.shape_cast %7 : vector<1x16x16xbf16> to vector<16x16xbf16>
    %cst_9 = arith.constant dense<0.000000e+00> : vector<21x16xf32>
    %9 = tpu.matmul %6, %8, %cst_9 {dimension_numbers = #tpu.dot_dimension_numbers<[1], [0], [0], [1], [0, 0, 1, 1], [], []>} : vector<21x16xbf16>, vector<16x16xbf16>, vector<21x16xf32> -> vector<21x16xf32>
    %10 = arith.addf %4, %9 : vector<21x16xf32>
    %c0_10 = arith.constant 0 : index
    %c4 = arith.constant 4 : index
    %c0_11 = arith.constant 0 : index
    %11 = vector.load %arg1[%c0_10, %c4, %c0_11] : memref<1x56x16xbf16, #tpu.memory_space<vmem>>, vector<1x21x16xbf16>
    %12 = vector.shape_cast %11 : vector<1x21x16xbf16> to vector<21x16xbf16>
    %c2_12 = arith.constant 2 : index
    %c0_13 = arith.constant 0 : index
    %c0_14 = arith.constant 0 : index
    %13 = vector.load %arg2[%c2_12, %c0_13, %c0_14] : memref<9x16x16xbf16, #tpu.memory_space<vmem>>, vector<1x16x16xbf16>
    %14 = vector.shape_cast %13 : vector<1x16x16xbf16> to vector<16x16xbf16>
    %cst_15 = arith.constant dense<0.000000e+00> : vector<21x16xf32>
    %15 = tpu.matmul %12, %14, %cst_15 {dimension_numbers = #tpu.dot_dimension_numbers<[1], [0], [0], [1], [0, 0, 1, 1], [], []>} : vector<21x16xbf16>, vector<16x16xbf16>, vector<21x16xf32> -> vector<21x16xf32>
    %16 = arith.addf %10, %15 : vector<21x16xf32>
    %c0_16 = arith.constant 0 : index
    %c14 = arith.constant 14 : index
    %c0_17 = arith.constant 0 : index
    %17 = vector.load %arg1[%c0_16, %c14, %c0_17] : memref<1x56x16xbf16, #tpu.memory_space<vmem>>, vector<1x21x16xbf16>
    %18 = vector.shape_cast %17 : vector<1x21x16xbf16> to vector<21x16xbf16>
    %c3 = arith.constant 3 : index
    %c0_18 = arith.constant 0 : index
    %c0_19 = arith.constant 0 : index
    %19 = vector.load %arg2[%c3, %c0_18, %c0_19] : memref<9x16x16xbf16, #tpu.memory_space<vmem>>, vector<1x16x16xbf16>
    %20 = vector.shape_cast %19 : vector<1x16x16xbf16> to vector<16x16xbf16>
    %cst_20 = arith.constant dense<0.000000e+00> : vector<21x16xf32>
    %21 = tpu.matmul %18, %20, %cst_20 {dimension_numbers = #tpu.dot_dimension_numbers<[1], [0], [0], [1], [0, 0, 1, 1], [], []>} : vector<21x16xbf16>, vector<16x16xbf16>, vector<21x16xf32> -> vector<21x16xf32>
    %22 = arith.addf %16, %21 : vector<21x16xf32>
    %c0_21 = arith.constant 0 : index
    %c16 = arith.constant 16 : index
    %c0_22 = arith.constant 0 : index
    %23 = vector.load %arg1[%c0_21, %c16, %c0_22] : memref<1x56x16xbf16, #tpu.memory_space<vmem>>, vector<1x21x16xbf16>
    %24 = vector.shape_cast %23 : vector<1x21x16xbf16> to vector<21x16xbf16>
    %c4_23 = arith.constant 4 : index
    %c0_24 = arith.constant 0 : index
    %c0_25 = arith.constant 0 : index
    %25 = vector.load %arg2[%c4_23, %c0_24, %c0_25] : memref<9x16x16xbf16, #tpu.memory_space<vmem>>, vector<1x16x16xbf16>
    %26 = vector.shape_cast %25 : vector<1x16x16xbf16> to vector<16x16xbf16>
    %cst_26 = arith.constant dense<0.000000e+00> : vector<21x16xf32>
    %27 = tpu.matmul %24, %26, %cst_26 {dimension_numbers = #tpu.dot_dimension_numbers<[1], [0], [0], [1], [0, 0, 1, 1], [], []>} : vector<21x16xbf16>, vector<16x16xbf16>, vector<21x16xf32> -> vector<21x16xf32>
    %28 = arith.addf %22, %27 : vector<21x16xf32>
    %c0_27 = arith.constant 0 : index
    %c18 = arith.constant 18 : index
    %c0_28 = arith.constant 0 : index
    %29 = vector.load %arg1[%c0_27, %c18, %c0_28] : memref<1x56x16xbf16, #tpu.memory_space<vmem>>, vector<1x21x16xbf16>
    %30 = vector.shape_cast %29 : vector<1x21x16xbf16> to vector<21x16xbf16>
    %c5 = arith.constant 5 : index
    %c0_29 = arith.constant 0 : index
    %c0_30 = arith.constant 0 : index
    %31 = vector.load %arg2[%c5, %c0_29, %c0_30] : memref<9x16x16xbf16, #tpu.memory_space<vmem>>, vector<1x16x16xbf16>
    %32 = vector.shape_cast %31 : vector<1x16x16xbf16> to vector<16x16xbf16>
    %cst_31 = arith.constant dense<0.000000e+00> : vector<21x16xf32>
    %33 = tpu.matmul %30, %32, %cst_31 {dimension_numbers = #tpu.dot_dimension_numbers<[1], [0], [0], [1], [0, 0, 1, 1], [], []>} : vector<21x16xbf16>, vector<16x16xbf16>, vector<21x16xf32> -> vector<21x16xf32>
    %34 = arith.addf %28, %33 : vector<21x16xf32>
    %c0_32 = arith.constant 0 : index
    %c28 = arith.constant 28 : index
    %c0_33 = arith.constant 0 : index
    %35 = vector.load %arg1[%c0_32, %c28, %c0_33] : memref<1x56x16xbf16, #tpu.memory_space<vmem>>, vector<1x21x16xbf16>
    %36 = vector.shape_cast %35 : vector<1x21x16xbf16> to vector<21x16xbf16>
    %c6 = arith.constant 6 : index
    %c0_34 = arith.constant 0 : index
    %c0_35 = arith.constant 0 : index
    %37 = vector.load %arg2[%c6, %c0_34, %c0_35] : memref<9x16x16xbf16, #tpu.memory_space<vmem>>, vector<1x16x16xbf16>
    %38 = vector.shape_cast %37 : vector<1x16x16xbf16> to vector<16x16xbf16>
    %cst_36 = arith.constant dense<0.000000e+00> : vector<21x16xf32>
    %39 = tpu.matmul %36, %38, %cst_36 {dimension_numbers = #tpu.dot_dimension_numbers<[1], [0], [0], [1], [0, 0, 1, 1], [], []>} : vector<21x16xbf16>, vector<16x16xbf16>, vector<21x16xf32> -> vector<21x16xf32>
    %40 = arith.addf %34, %39 : vector<21x16xf32>
    %c0_37 = arith.constant 0 : index
    %c30 = arith.constant 30 : index
    %c0_38 = arith.constant 0 : index
    %41 = vector.load %arg1[%c0_37, %c30, %c0_38] : memref<1x56x16xbf16, #tpu.memory_space<vmem>>, vector<1x21x16xbf16>
    %42 = vector.shape_cast %41 : vector<1x21x16xbf16> to vector<21x16xbf16>
    %c7 = arith.constant 7 : index
    %c0_39 = arith.constant 0 : index
    %c0_40 = arith.constant 0 : index
    %43 = vector.load %arg2[%c7, %c0_39, %c0_40] : memref<9x16x16xbf16, #tpu.memory_space<vmem>>, vector<1x16x16xbf16>
    %44 = vector.shape_cast %43 : vector<1x16x16xbf16> to vector<16x16xbf16>
    %cst_41 = arith.constant dense<0.000000e+00> : vector<21x16xf32>
    %45 = tpu.matmul %42, %44, %cst_41 {dimension_numbers = #tpu.dot_dimension_numbers<[1], [0], [0], [1], [0, 0, 1, 1], [], []>} : vector<21x16xbf16>, vector<16x16xbf16>, vector<21x16xf32> -> vector<21x16xf32>
    %46 = arith.addf %40, %45 : vector<21x16xf32>
    %c0_42 = arith.constant 0 : index
    %c32 = arith.constant 32 : index
    %c0_43 = arith.constant 0 : index
    %47 = vector.load %arg1[%c0_42, %c32, %c0_43] : memref<1x56x16xbf16, #tpu.memory_space<vmem>>, vector<1x21x16xbf16>
    %48 = vector.shape_cast %47 : vector<1x21x16xbf16> to vector<21x16xbf16>
    %c8 = arith.constant 8 : index
    %c0_44 = arith.constant 0 : index
    %c0_45 = arith.constant 0 : index
    %49 = vector.load %arg2[%c8, %c0_44, %c0_45] : memref<9x16x16xbf16, #tpu.memory_space<vmem>>, vector<1x16x16xbf16>
    %50 = vector.shape_cast %49 : vector<1x16x16xbf16> to vector<16x16xbf16>
    %cst_46 = arith.constant dense<0.000000e+00> : vector<21x16xf32>
    %51 = tpu.matmul %48, %50, %cst_46 {dimension_numbers = #tpu.dot_dimension_numbers<[1], [0], [0], [1], [0, 0, 1, 1], [], []>} : vector<21x16xbf16>, vector<16x16xbf16>, vector<21x16xf32> -> vector<21x16xf32>
    %52 = arith.addf %46, %51 : vector<21x16xf32>
    %c0_47 = arith.constant 0 : index
    %c0_48 = arith.constant 0 : index
    %53 = vector.load %arg3[%c0_47, %c0_48] : memref<1x16xf32, #tpu.memory_space<vmem>>, vector<1x16xf32>
    %54 = vector.broadcast %53 : vector<1x16xf32> to vector<21x16xf32>
    %55 = arith.mulf %52, %54 : vector<21x16xf32>
    %c0_49 = arith.constant 0 : index
    %c0_50 = arith.constant 0 : index
    %56 = vector.load %arg4[%c0_49, %c0_50] : memref<1x16xf32, #tpu.memory_space<vmem>>, vector<1x16xf32>
    %57 = vector.broadcast %56 : vector<1x16xf32> to vector<21x16xf32>
    %58 = arith.addf %55, %57 : vector<21x16xf32>
    %cst_51 = arith.constant 0.000000e+00 : f32
    %59 = vector.broadcast %cst_51 : f32 to vector<21x16xf32>
    %60 = arith.maximumf %58, %59 : vector<21x16xf32>
    %61 = arith.truncf %60 : vector<21x16xf32> to vector<21x16xbf16>
    %c0_52 = arith.constant 0 : index
    %c0_53 = arith.constant 0 : index
    %c0_54 = arith.constant 0 : index
    %62 = vector.load %arg5[%c0_52, %c0_53, %c0_54] : memref<1x21x16xbf16, #tpu.memory_space<vmem>>, vector<1x21x16xbf16>
    %63 = vector.shape_cast %62 : vector<1x21x16xbf16> to vector<21x16xbf16>
    %64 = vector.shape_cast %61 : vector<21x16xbf16> to vector<1x21x16xbf16>
    tpu.vector_store %arg5[%c0_52, %c0_53, %c0_54], %64 {strides = array<i32>} : memref<1x21x16xbf16, #tpu.memory_space<vmem>>, vector<1x21x16xbf16>,
    return
  }
  func.func @transform_0(%arg0: i32) -> (i32, i32, i32) {
    %c0_i32 = arith.constant 0 : i32
    %c0_i32_0 = arith.constant 0 : i32
    %c0_i32_1 = arith.constant 0 : i32
    return %arg0, %c0_i32, %c0_i32_0 : i32, i32, i32
  }
  func.func @transform_1(%arg0: i32) -> (i32, i32, i32) {
    %c0_i32 = arith.constant 0 : i32
    %c0_i32_0 = arith.constant 0 : i32
    %c0_i32_1 = arith.constant 0 : i32
    %c0_i32_2 = arith.constant 0 : i32
    return %c0_i32, %c0_i32_0, %c0_i32_1 : i32, i32, i32
  }
  func.func @transform_2(%arg0: i32) -> (i32, i32) {
    %c0_i32 = arith.constant 0 : i32
    %c0_i32_0 = arith.constant 0 : i32
    %c0_i32_1 = arith.constant 0 : i32
    return %c0_i32, %c0_i32_0 : i32, i32
  }
  func.func @transform_3(%arg0: i32) -> (i32, i32) {
    %c0_i32 = arith.constant 0 : i32
    %c0_i32_0 = arith.constant 0 : i32
    %c0_i32_1 = arith.constant 0 : i32
    return %c0_i32, %c0_i32_0 : i32, i32
  }
  func.func @transform_4(%arg0: i32) -> (i32, i32, i32) {
    %c0_i32 = arith.constant 0 : i32
    %c0_i32_0 = arith.constant 0 : i32
    %c0_i32_1 = arith.constant 0 : i32
    return %arg0, %c0_i32, %c0_i32_0 : i32, i32, i32
  }
}

module attributes {stable_mosaic.version = 11 : i64} {
  func.func @kernel(%arg0: i32, %arg1: memref<1x132x16xbf16, #tpu.memory_space<vmem>>, %arg2: memref<9x16x16xbf16, #tpu.memory_space<vmem>>, %arg3: memref<1x16xf32, #tpu.memory_space<vmem>>, %arg4: memref<1x16xf32, #tpu.memory_space<vmem>>, %arg5: memref<1x33x16xbf16, #tpu.memory_space<vmem>>) attributes {dimension_semantics = [#tpu.dimension_semantics<parallel>], iteration_bounds = array<i64: 2>, scalar_prefetch = 0 : i64, scratch_operands = 0 : i64, tpu.core_type = #tpu.core_type<tc>, window_params = [{transform_indices = @transform_0, window_bounds = array<i64: 1, 132, 16>}, {pipeline_mode = #tpu.pipeline_mode<synchronous>, transform_indices = @transform_1, window_bounds = array<i64: 9, 16, 16>}, {pipeline_mode = #tpu.pipeline_mode<synchronous>, transform_indices = @transform_2, window_bounds = array<i64: 1, 16>}, {pipeline_mode = #tpu.pipeline_mode<synchronous>, transform_indices = @transform_3, window_bounds = array<i64: 1, 16>}, {transform_indices = @transform_4, window_bounds = array<i64: 1, 33, 16>}]} {
    %c0 = arith.constant 0 : index
    %c0_0 = arith.constant 0 : index
    %c0_1 = arith.constant 0 : index
    %0 = vector.load %arg1[%c0, %c0_0, %c0_1] : memref<1x132x16xbf16, #tpu.memory_space<vmem>>, vector<1x33x16xbf16>
    %1 = vector.shape_cast %0 : vector<1x33x16xbf16> to vector<33x16xbf16>
    %c0_2 = arith.constant 0 : index
    %c0_3 = arith.constant 0 : index
    %c0_4 = arith.constant 0 : index
    %2 = vector.load %arg2[%c0_2, %c0_3, %c0_4] : memref<9x16x16xbf16, #tpu.memory_space<vmem>>, vector<1x16x16xbf16>
    %3 = vector.shape_cast %2 : vector<1x16x16xbf16> to vector<16x16xbf16>
    %cst = arith.constant dense<0.000000e+00> : vector<33x16xf32>
    %4 = tpu.matmul %1, %3, %cst {dimension_numbers = #tpu.dot_dimension_numbers<[1], [0], [0], [1], [0, 0, 1, 1], [], []>} : vector<33x16xbf16>, vector<16x16xbf16>, vector<33x16xf32> -> vector<33x16xf32>
    %c0_5 = arith.constant 0 : index
    %c4 = arith.constant 4 : index
    %c0_6 = arith.constant 0 : index
    %5 = vector.load %arg1[%c0_5, %c4, %c0_6] : memref<1x132x16xbf16, #tpu.memory_space<vmem>>, vector<1x33x16xbf16>
    %6 = vector.shape_cast %5 : vector<1x33x16xbf16> to vector<33x16xbf16>
    %c1 = arith.constant 1 : index
    %c0_7 = arith.constant 0 : index
    %c0_8 = arith.constant 0 : index
    %7 = vector.load %arg2[%c1, %c0_7, %c0_8] : memref<9x16x16xbf16, #tpu.memory_space<vmem>>, vector<1x16x16xbf16>
    %8 = vector.shape_cast %7 : vector<1x16x16xbf16> to vector<16x16xbf16>
    %cst_9 = arith.constant dense<0.000000e+00> : vector<33x16xf32>
    %9 = tpu.matmul %6, %8, %cst_9 {dimension_numbers = #tpu.dot_dimension_numbers<[1], [0], [0], [1], [0, 0, 1, 1], [], []>} : vector<33x16xbf16>, vector<16x16xbf16>, vector<33x16xf32> -> vector<33x16xf32>
    %10 = arith.addf %4, %9 : vector<33x16xf32>
    %c0_10 = arith.constant 0 : index
    %c8 = arith.constant 8 : index
    %c0_11 = arith.constant 0 : index
    %11 = vector.load %arg1[%c0_10, %c8, %c0_11] : memref<1x132x16xbf16, #tpu.memory_space<vmem>>, vector<1x33x16xbf16>
    %12 = vector.shape_cast %11 : vector<1x33x16xbf16> to vector<33x16xbf16>
    %c2 = arith.constant 2 : index
    %c0_12 = arith.constant 0 : index
    %c0_13 = arith.constant 0 : index
    %13 = vector.load %arg2[%c2, %c0_12, %c0_13] : memref<9x16x16xbf16, #tpu.memory_space<vmem>>, vector<1x16x16xbf16>
    %14 = vector.shape_cast %13 : vector<1x16x16xbf16> to vector<16x16xbf16>
    %cst_14 = arith.constant dense<0.000000e+00> : vector<33x16xf32>
    %15 = tpu.matmul %12, %14, %cst_14 {dimension_numbers = #tpu.dot_dimension_numbers<[1], [0], [0], [1], [0, 0, 1, 1], [], []>} : vector<33x16xbf16>, vector<16x16xbf16>, vector<33x16xf32> -> vector<33x16xf32>
    %16 = arith.addf %10, %15 : vector<33x16xf32>
    %c0_15 = arith.constant 0 : index
    %c44 = arith.constant 44 : index
    %c0_16 = arith.constant 0 : index
    %17 = vector.load %arg1[%c0_15, %c44, %c0_16] : memref<1x132x16xbf16, #tpu.memory_space<vmem>>, vector<1x33x16xbf16>
    %18 = vector.shape_cast %17 : vector<1x33x16xbf16> to vector<33x16xbf16>
    %c3 = arith.constant 3 : index
    %c0_17 = arith.constant 0 : index
    %c0_18 = arith.constant 0 : index
    %19 = vector.load %arg2[%c3, %c0_17, %c0_18] : memref<9x16x16xbf16, #tpu.memory_space<vmem>>, vector<1x16x16xbf16>
    %20 = vector.shape_cast %19 : vector<1x16x16xbf16> to vector<16x16xbf16>
    %cst_19 = arith.constant dense<0.000000e+00> : vector<33x16xf32>
    %21 = tpu.matmul %18, %20, %cst_19 {dimension_numbers = #tpu.dot_dimension_numbers<[1], [0], [0], [1], [0, 0, 1, 1], [], []>} : vector<33x16xbf16>, vector<16x16xbf16>, vector<33x16xf32> -> vector<33x16xf32>
    %22 = arith.addf %16, %21 : vector<33x16xf32>
    %c0_20 = arith.constant 0 : index
    %c48 = arith.constant 48 : index
    %c0_21 = arith.constant 0 : index
    %23 = vector.load %arg1[%c0_20, %c48, %c0_21] : memref<1x132x16xbf16, #tpu.memory_space<vmem>>, vector<1x33x16xbf16>
    %24 = vector.shape_cast %23 : vector<1x33x16xbf16> to vector<33x16xbf16>
    %c4_22 = arith.constant 4 : index
    %c0_23 = arith.constant 0 : index
    %c0_24 = arith.constant 0 : index
    %25 = vector.load %arg2[%c4_22, %c0_23, %c0_24] : memref<9x16x16xbf16, #tpu.memory_space<vmem>>, vector<1x16x16xbf16>
    %26 = vector.shape_cast %25 : vector<1x16x16xbf16> to vector<16x16xbf16>
    %cst_25 = arith.constant dense<0.000000e+00> : vector<33x16xf32>
    %27 = tpu.matmul %24, %26, %cst_25 {dimension_numbers = #tpu.dot_dimension_numbers<[1], [0], [0], [1], [0, 0, 1, 1], [], []>} : vector<33x16xbf16>, vector<16x16xbf16>, vector<33x16xf32> -> vector<33x16xf32>
    %28 = arith.addf %22, %27 : vector<33x16xf32>
    %c0_26 = arith.constant 0 : index
    %c52 = arith.constant 52 : index
    %c0_27 = arith.constant 0 : index
    %29 = vector.load %arg1[%c0_26, %c52, %c0_27] : memref<1x132x16xbf16, #tpu.memory_space<vmem>>, vector<1x33x16xbf16>
    %30 = vector.shape_cast %29 : vector<1x33x16xbf16> to vector<33x16xbf16>
    %c5 = arith.constant 5 : index
    %c0_28 = arith.constant 0 : index
    %c0_29 = arith.constant 0 : index
    %31 = vector.load %arg2[%c5, %c0_28, %c0_29] : memref<9x16x16xbf16, #tpu.memory_space<vmem>>, vector<1x16x16xbf16>
    %32 = vector.shape_cast %31 : vector<1x16x16xbf16> to vector<16x16xbf16>
    %cst_30 = arith.constant dense<0.000000e+00> : vector<33x16xf32>
    %33 = tpu.matmul %30, %32, %cst_30 {dimension_numbers = #tpu.dot_dimension_numbers<[1], [0], [0], [1], [0, 0, 1, 1], [], []>} : vector<33x16xbf16>, vector<16x16xbf16>, vector<33x16xf32> -> vector<33x16xf32>
    %34 = arith.addf %28, %33 : vector<33x16xf32>
    %c0_31 = arith.constant 0 : index
    %c88 = arith.constant 88 : index
    %c0_32 = arith.constant 0 : index
    %35 = vector.load %arg1[%c0_31, %c88, %c0_32] : memref<1x132x16xbf16, #tpu.memory_space<vmem>>, vector<1x33x16xbf16>
    %36 = vector.shape_cast %35 : vector<1x33x16xbf16> to vector<33x16xbf16>
    %c6 = arith.constant 6 : index
    %c0_33 = arith.constant 0 : index
    %c0_34 = arith.constant 0 : index
    %37 = vector.load %arg2[%c6, %c0_33, %c0_34] : memref<9x16x16xbf16, #tpu.memory_space<vmem>>, vector<1x16x16xbf16>
    %38 = vector.shape_cast %37 : vector<1x16x16xbf16> to vector<16x16xbf16>
    %cst_35 = arith.constant dense<0.000000e+00> : vector<33x16xf32>
    %39 = tpu.matmul %36, %38, %cst_35 {dimension_numbers = #tpu.dot_dimension_numbers<[1], [0], [0], [1], [0, 0, 1, 1], [], []>} : vector<33x16xbf16>, vector<16x16xbf16>, vector<33x16xf32> -> vector<33x16xf32>
    %40 = arith.addf %34, %39 : vector<33x16xf32>
    %c0_36 = arith.constant 0 : index
    %c92 = arith.constant 92 : index
    %c0_37 = arith.constant 0 : index
    %41 = vector.load %arg1[%c0_36, %c92, %c0_37] : memref<1x132x16xbf16, #tpu.memory_space<vmem>>, vector<1x33x16xbf16>
    %42 = vector.shape_cast %41 : vector<1x33x16xbf16> to vector<33x16xbf16>
    %c7 = arith.constant 7 : index
    %c0_38 = arith.constant 0 : index
    %c0_39 = arith.constant 0 : index
    %43 = vector.load %arg2[%c7, %c0_38, %c0_39] : memref<9x16x16xbf16, #tpu.memory_space<vmem>>, vector<1x16x16xbf16>
    %44 = vector.shape_cast %43 : vector<1x16x16xbf16> to vector<16x16xbf16>
    %cst_40 = arith.constant dense<0.000000e+00> : vector<33x16xf32>
    %45 = tpu.matmul %42, %44, %cst_40 {dimension_numbers = #tpu.dot_dimension_numbers<[1], [0], [0], [1], [0, 0, 1, 1], [], []>} : vector<33x16xbf16>, vector<16x16xbf16>, vector<33x16xf32> -> vector<33x16xf32>
    %46 = arith.addf %40, %45 : vector<33x16xf32>
    %c0_41 = arith.constant 0 : index
    %c96 = arith.constant 96 : index
    %c0_42 = arith.constant 0 : index
    %47 = vector.load %arg1[%c0_41, %c96, %c0_42] : memref<1x132x16xbf16, #tpu.memory_space<vmem>>, vector<1x33x16xbf16>
    %48 = vector.shape_cast %47 : vector<1x33x16xbf16> to vector<33x16xbf16>
    %c8_43 = arith.constant 8 : index
    %c0_44 = arith.constant 0 : index
    %c0_45 = arith.constant 0 : index
    %49 = vector.load %arg2[%c8_43, %c0_44, %c0_45] : memref<9x16x16xbf16, #tpu.memory_space<vmem>>, vector<1x16x16xbf16>
    %50 = vector.shape_cast %49 : vector<1x16x16xbf16> to vector<16x16xbf16>
    %cst_46 = arith.constant dense<0.000000e+00> : vector<33x16xf32>
    %51 = tpu.matmul %48, %50, %cst_46 {dimension_numbers = #tpu.dot_dimension_numbers<[1], [0], [0], [1], [0, 0, 1, 1], [], []>} : vector<33x16xbf16>, vector<16x16xbf16>, vector<33x16xf32> -> vector<33x16xf32>
    %52 = arith.addf %46, %51 : vector<33x16xf32>
    %c0_47 = arith.constant 0 : index
    %c0_48 = arith.constant 0 : index
    %53 = vector.load %arg3[%c0_47, %c0_48] : memref<1x16xf32, #tpu.memory_space<vmem>>, vector<1x16xf32>
    %54 = vector.broadcast %53 : vector<1x16xf32> to vector<33x16xf32>
    %55 = arith.mulf %52, %54 : vector<33x16xf32>
    %c0_49 = arith.constant 0 : index
    %c0_50 = arith.constant 0 : index
    %56 = vector.load %arg4[%c0_49, %c0_50] : memref<1x16xf32, #tpu.memory_space<vmem>>, vector<1x16xf32>
    %57 = vector.broadcast %56 : vector<1x16xf32> to vector<33x16xf32>
    %58 = arith.addf %55, %57 : vector<33x16xf32>
    %cst_51 = arith.constant 0.000000e+00 : f32
    %59 = vector.broadcast %cst_51 : f32 to vector<33x16xf32>
    %60 = arith.maximumf %58, %59 : vector<33x16xf32>
    %61 = arith.truncf %60 : vector<33x16xf32> to vector<33x16xbf16>
    %c0_52 = arith.constant 0 : index
    %c0_53 = arith.constant 0 : index
    %c0_54 = arith.constant 0 : index
    %62 = vector.load %arg5[%c0_52, %c0_53, %c0_54] : memref<1x33x16xbf16, #tpu.memory_space<vmem>>, vector<1x33x16xbf16>
    %63 = vector.shape_cast %62 : vector<1x33x16xbf16> to vector<33x16xbf16>
    %64 = vector.shape_cast %61 : vector<33x16xbf16> to vector<1x33x16xbf16>
    tpu.vector_store %arg5[%c0_52, %c0_53, %c0_54], %64 {strides = array<i32>} : memref<1x33x16xbf16, #tpu.memory_space<vmem>>, vector<1x33x16xbf16>,
    return
  }
  func.func @transform_0(%arg0: i32) -> (i32, i32, i32) {
    %c0_i32 = arith.constant 0 : i32
    %c0_i32_0 = arith.constant 0 : i32
    %c0_i32_1 = arith.constant 0 : i32
    return %arg0, %c0_i32, %c0_i32_0 : i32, i32, i32
  }
  func.func @transform_1(%arg0: i32) -> (i32, i32, i32) {
    %c0_i32 = arith.constant 0 : i32
    %c0_i32_0 = arith.constant 0 : i32
    %c0_i32_1 = arith.constant 0 : i32
    %c0_i32_2 = arith.constant 0 : i32
    return %c0_i32, %c0_i32_0, %c0_i32_1 : i32, i32, i32
  }
  func.func @transform_2(%arg0: i32) -> (i32, i32) {
    %c0_i32 = arith.constant 0 : i32
    %c0_i32_0 = arith.constant 0 : i32
    %c0_i32_1 = arith.constant 0 : i32
    return %c0_i32, %c0_i32_0 : i32, i32
  }
  func.func @transform_3(%arg0: i32) -> (i32, i32) {
    %c0_i32 = arith.constant 0 : i32
    %c0_i32_0 = arith.constant 0 : i32
    %c0_i32_1 = arith.constant 0 : i32
    return %c0_i32, %c0_i32_0 : i32, i32
  }
  func.func @transform_4(%arg0: i32) -> (i32, i32, i32) {
    %c0_i32 = arith.constant 0 : i32
    %c0_i32_0 = arith.constant 0 : i32
    %c0_i32_1 = arith.constant 0 : i32
    return %arg0, %c0_i32, %c0_i32_0 : i32, i32, i32
  }
}

module attributes {stable_mosaic.version = 11 : i64} {
  func.func @kernel(%arg0: i32, %arg1: memref<1x30x32xbf16, #tpu.memory_space<vmem>>, %arg2: memref<9x32x16xbf16, #tpu.memory_space<vmem>>, %arg3: memref<1x16xf32, #tpu.memory_space<vmem>>, %arg4: memref<1x16xf32, #tpu.memory_space<vmem>>, %arg5: memref<1x15x16xbf16, #tpu.memory_space<vmem>>) attributes {dimension_semantics = [#tpu.dimension_semantics<parallel>], iteration_bounds = array<i64: 2>, scalar_prefetch = 0 : i64, scratch_operands = 0 : i64, tpu.core_type = #tpu.core_type<tc>, window_params = [{transform_indices = @transform_0, window_bounds = array<i64: 1, 30, 32>}, {pipeline_mode = #tpu.pipeline_mode<synchronous>, transform_indices = @transform_1, window_bounds = array<i64: 9, 32, 16>}, {pipeline_mode = #tpu.pipeline_mode<synchronous>, transform_indices = @transform_2, window_bounds = array<i64: 1, 16>}, {pipeline_mode = #tpu.pipeline_mode<synchronous>, transform_indices = @transform_3, window_bounds = array<i64: 1, 16>}, {transform_indices = @transform_4, window_bounds = array<i64: 1, 15, 16>}]} {
    %c0 = arith.constant 0 : index
    %c0_0 = arith.constant 0 : index
    %c0_1 = arith.constant 0 : index
    %0 = vector.load %arg1[%c0, %c0_0, %c0_1] : memref<1x30x32xbf16, #tpu.memory_space<vmem>>, vector<1x15x32xbf16>
    %1 = vector.shape_cast %0 : vector<1x15x32xbf16> to vector<15x32xbf16>
    %c0_2 = arith.constant 0 : index
    %c0_3 = arith.constant 0 : index
    %c0_4 = arith.constant 0 : index
    %2 = vector.load %arg2[%c0_2, %c0_3, %c0_4] : memref<9x32x16xbf16, #tpu.memory_space<vmem>>, vector<1x32x16xbf16>
    %3 = vector.shape_cast %2 : vector<1x32x16xbf16> to vector<32x16xbf16>
    %cst = arith.constant dense<0.000000e+00> : vector<15x16xf32>
    %4 = tpu.matmul %1, %3, %cst {dimension_numbers = #tpu.dot_dimension_numbers<[1], [0], [0], [1], [0, 0, 1, 1], [], []>} : vector<15x32xbf16>, vector<32x16xbf16>, vector<15x16xf32> -> vector<15x16xf32>
    %c0_5 = arith.constant 0 : index
    %c1 = arith.constant 1 : index
    %c0_6 = arith.constant 0 : index
    %5 = vector.load %arg1[%c0_5, %c1, %c0_6] : memref<1x30x32xbf16, #tpu.memory_space<vmem>>, vector<1x15x32xbf16>
    %6 = vector.shape_cast %5 : vector<1x15x32xbf16> to vector<15x32xbf16>
    %c1_7 = arith.constant 1 : index
    %c0_8 = arith.constant 0 : index
    %c0_9 = arith.constant 0 : index
    %7 = vector.load %arg2[%c1_7, %c0_8, %c0_9] : memref<9x32x16xbf16, #tpu.memory_space<vmem>>, vector<1x32x16xbf16>
    %8 = vector.shape_cast %7 : vector<1x32x16xbf16> to vector<32x16xbf16>
    %cst_10 = arith.constant dense<0.000000e+00> : vector<15x16xf32>
    %9 = tpu.matmul %6, %8, %cst_10 {dimension_numbers = #tpu.dot_dimension_numbers<[1], [0], [0], [1], [0, 0, 1, 1], [], []>} : vector<15x32xbf16>, vector<32x16xbf16>, vector<15x16xf32> -> vector<15x16xf32>
    %10 = arith.addf %4, %9 : vector<15x16xf32>
    %c0_11 = arith.constant 0 : index
    %c2 = arith.constant 2 : index
    %c0_12 = arith.constant 0 : index
    %11 = vector.load %arg1[%c0_11, %c2, %c0_12] : memref<1x30x32xbf16, #tpu.memory_space<vmem>>, vector<1x15x32xbf16>
    %12 = vector.shape_cast %11 : vector<1x15x32xbf16> to vector<15x32xbf16>
    %c2_13 = arith.constant 2 : index
    %c0_14 = arith.constant 0 : index
    %c0_15 = arith.constant 0 : index
    %13 = vector.load %arg2[%c2_13, %c0_14, %c0_15] : memref<9x32x16xbf16, #tpu.memory_space<vmem>>, vector<1x32x16xbf16>
    %14 = vector.shape_cast %13 : vector<1x32x16xbf16> to vector<32x16xbf16>
    %cst_16 = arith.constant dense<0.000000e+00> : vector<15x16xf32>
    %15 = tpu.matmul %12, %14, %cst_16 {dimension_numbers = #tpu.dot_dimension_numbers<[1], [0], [0], [1], [0, 0, 1, 1], [], []>} : vector<15x32xbf16>, vector<32x16xbf16>, vector<15x16xf32> -> vector<15x16xf32>
    %16 = arith.addf %10, %15 : vector<15x16xf32>
    %c0_17 = arith.constant 0 : index
    %c5 = arith.constant 5 : index
    %c0_18 = arith.constant 0 : index
    %17 = vector.load %arg1[%c0_17, %c5, %c0_18] : memref<1x30x32xbf16, #tpu.memory_space<vmem>>, vector<1x15x32xbf16>
    %18 = vector.shape_cast %17 : vector<1x15x32xbf16> to vector<15x32xbf16>
    %c3 = arith.constant 3 : index
    %c0_19 = arith.constant 0 : index
    %c0_20 = arith.constant 0 : index
    %19 = vector.load %arg2[%c3, %c0_19, %c0_20] : memref<9x32x16xbf16, #tpu.memory_space<vmem>>, vector<1x32x16xbf16>
    %20 = vector.shape_cast %19 : vector<1x32x16xbf16> to vector<32x16xbf16>
    %cst_21 = arith.constant dense<0.000000e+00> : vector<15x16xf32>
    %21 = tpu.matmul %18, %20, %cst_21 {dimension_numbers = #tpu.dot_dimension_numbers<[1], [0], [0], [1], [0, 0, 1, 1], [], []>} : vector<15x32xbf16>, vector<32x16xbf16>, vector<15x16xf32> -> vector<15x16xf32>
    %22 = arith.addf %16, %21 : vector<15x16xf32>
    %c0_22 = arith.constant 0 : index
    %c6 = arith.constant 6 : index
    %c0_23 = arith.constant 0 : index
    %23 = vector.load %arg1[%c0_22, %c6, %c0_23] : memref<1x30x32xbf16, #tpu.memory_space<vmem>>, vector<1x15x32xbf16>
    %24 = vector.shape_cast %23 : vector<1x15x32xbf16> to vector<15x32xbf16>
    %c4 = arith.constant 4 : index
    %c0_24 = arith.constant 0 : index
    %c0_25 = arith.constant 0 : index
    %25 = vector.load %arg2[%c4, %c0_24, %c0_25] : memref<9x32x16xbf16, #tpu.memory_space<vmem>>, vector<1x32x16xbf16>
    %26 = vector.shape_cast %25 : vector<1x32x16xbf16> to vector<32x16xbf16>
    %cst_26 = arith.constant dense<0.000000e+00> : vector<15x16xf32>
    %27 = tpu.matmul %24, %26, %cst_26 {dimension_numbers = #tpu.dot_dimension_numbers<[1], [0], [0], [1], [0, 0, 1, 1], [], []>} : vector<15x32xbf16>, vector<32x16xbf16>, vector<15x16xf32> -> vector<15x16xf32>
    %28 = arith.addf %22, %27 : vector<15x16xf32>
    %c0_27 = arith.constant 0 : index
    %c7 = arith.constant 7 : index
    %c0_28 = arith.constant 0 : index
    %29 = vector.load %arg1[%c0_27, %c7, %c0_28] : memref<1x30x32xbf16, #tpu.memory_space<vmem>>, vector<1x15x32xbf16>
    %30 = vector.shape_cast %29 : vector<1x15x32xbf16> to vector<15x32xbf16>
    %c5_29 = arith.constant 5 : index
    %c0_30 = arith.constant 0 : index
    %c0_31 = arith.constant 0 : index
    %31 = vector.load %arg2[%c5_29, %c0_30, %c0_31] : memref<9x32x16xbf16, #tpu.memory_space<vmem>>, vector<1x32x16xbf16>
    %32 = vector.shape_cast %31 : vector<1x32x16xbf16> to vector<32x16xbf16>
    %cst_32 = arith.constant dense<0.000000e+00> : vector<15x16xf32>
    %33 = tpu.matmul %30, %32, %cst_32 {dimension_numbers = #tpu.dot_dimension_numbers<[1], [0], [0], [1], [0, 0, 1, 1], [], []>} : vector<15x32xbf16>, vector<32x16xbf16>, vector<15x16xf32> -> vector<15x16xf32>
    %34 = arith.addf %28, %33 : vector<15x16xf32>
    %c0_33 = arith.constant 0 : index
    %c10 = arith.constant 10 : index
    %c0_34 = arith.constant 0 : index
    %35 = vector.load %arg1[%c0_33, %c10, %c0_34] : memref<1x30x32xbf16, #tpu.memory_space<vmem>>, vector<1x15x32xbf16>
    %36 = vector.shape_cast %35 : vector<1x15x32xbf16> to vector<15x32xbf16>
    %c6_35 = arith.constant 6 : index
    %c0_36 = arith.constant 0 : index
    %c0_37 = arith.constant 0 : index
    %37 = vector.load %arg2[%c6_35, %c0_36, %c0_37] : memref<9x32x16xbf16, #tpu.memory_space<vmem>>, vector<1x32x16xbf16>
    %38 = vector.shape_cast %37 : vector<1x32x16xbf16> to vector<32x16xbf16>
    %cst_38 = arith.constant dense<0.000000e+00> : vector<15x16xf32>
    %39 = tpu.matmul %36, %38, %cst_38 {dimension_numbers = #tpu.dot_dimension_numbers<[1], [0], [0], [1], [0, 0, 1, 1], [], []>} : vector<15x32xbf16>, vector<32x16xbf16>, vector<15x16xf32> -> vector<15x16xf32>
    %40 = arith.addf %34, %39 : vector<15x16xf32>
    %c0_39 = arith.constant 0 : index
    %c11 = arith.constant 11 : index
    %c0_40 = arith.constant 0 : index
    %41 = vector.load %arg1[%c0_39, %c11, %c0_40] : memref<1x30x32xbf16, #tpu.memory_space<vmem>>, vector<1x15x32xbf16>
    %42 = vector.shape_cast %41 : vector<1x15x32xbf16> to vector<15x32xbf16>
    %c7_41 = arith.constant 7 : index
    %c0_42 = arith.constant 0 : index
    %c0_43 = arith.constant 0 : index
    %43 = vector.load %arg2[%c7_41, %c0_42, %c0_43] : memref<9x32x16xbf16, #tpu.memory_space<vmem>>, vector<1x32x16xbf16>
    %44 = vector.shape_cast %43 : vector<1x32x16xbf16> to vector<32x16xbf16>
    %cst_44 = arith.constant dense<0.000000e+00> : vector<15x16xf32>
    %45 = tpu.matmul %42, %44, %cst_44 {dimension_numbers = #tpu.dot_dimension_numbers<[1], [0], [0], [1], [0, 0, 1, 1], [], []>} : vector<15x32xbf16>, vector<32x16xbf16>, vector<15x16xf32> -> vector<15x16xf32>
    %46 = arith.addf %40, %45 : vector<15x16xf32>
    %c0_45 = arith.constant 0 : index
    %c12 = arith.constant 12 : index
    %c0_46 = arith.constant 0 : index
    %47 = vector.load %arg1[%c0_45, %c12, %c0_46] : memref<1x30x32xbf16, #tpu.memory_space<vmem>>, vector<1x15x32xbf16>
    %48 = vector.shape_cast %47 : vector<1x15x32xbf16> to vector<15x32xbf16>
    %c8 = arith.constant 8 : index
    %c0_47 = arith.constant 0 : index
    %c0_48 = arith.constant 0 : index
    %49 = vector.load %arg2[%c8, %c0_47, %c0_48] : memref<9x32x16xbf16, #tpu.memory_space<vmem>>, vector<1x32x16xbf16>
    %50 = vector.shape_cast %49 : vector<1x32x16xbf16> to vector<32x16xbf16>
    %cst_49 = arith.constant dense<0.000000e+00> : vector<15x16xf32>
    %51 = tpu.matmul %48, %50, %cst_49 {dimension_numbers = #tpu.dot_dimension_numbers<[1], [0], [0], [1], [0, 0, 1, 1], [], []>} : vector<15x32xbf16>, vector<32x16xbf16>, vector<15x16xf32> -> vector<15x16xf32>
    %52 = arith.addf %46, %51 : vector<15x16xf32>
    %c0_50 = arith.constant 0 : index
    %c0_51 = arith.constant 0 : index
    %53 = vector.load %arg3[%c0_50, %c0_51] : memref<1x16xf32, #tpu.memory_space<vmem>>, vector<1x16xf32>
    %54 = vector.broadcast %53 : vector<1x16xf32> to vector<15x16xf32>
    %55 = arith.mulf %52, %54 : vector<15x16xf32>
    %c0_52 = arith.constant 0 : index
    %c0_53 = arith.constant 0 : index
    %56 = vector.load %arg4[%c0_52, %c0_53] : memref<1x16xf32, #tpu.memory_space<vmem>>, vector<1x16xf32>
    %57 = vector.broadcast %56 : vector<1x16xf32> to vector<15x16xf32>
    %58 = arith.addf %55, %57 : vector<15x16xf32>
    %cst_54 = arith.constant 0.000000e+00 : f32
    %59 = vector.broadcast %cst_54 : f32 to vector<15x16xf32>
    %60 = arith.maximumf %58, %59 : vector<15x16xf32>
    %61 = arith.truncf %60 : vector<15x16xf32> to vector<15x16xbf16>
    %c0_55 = arith.constant 0 : index
    %c0_56 = arith.constant 0 : index
    %c0_57 = arith.constant 0 : index
    %62 = vector.load %arg5[%c0_55, %c0_56, %c0_57] : memref<1x15x16xbf16, #tpu.memory_space<vmem>>, vector<1x15x16xbf16>
    %63 = vector.shape_cast %62 : vector<1x15x16xbf16> to vector<15x16xbf16>
    %64 = vector.shape_cast %61 : vector<15x16xbf16> to vector<1x15x16xbf16>
    tpu.vector_store %arg5[%c0_55, %c0_56, %c0_57], %64 {strides = array<i32>} : memref<1x15x16xbf16, #tpu.memory_space<vmem>>, vector<1x15x16xbf16>,
    return
  }
  func.func @transform_0(%arg0: i32) -> (i32, i32, i32) {
    %c0_i32 = arith.constant 0 : i32
    %c0_i32_0 = arith.constant 0 : i32
    %c0_i32_1 = arith.constant 0 : i32
    return %arg0, %c0_i32, %c0_i32_0 : i32, i32, i32
  }
  func.func @transform_1(%arg0: i32) -> (i32, i32, i32) {
    %c0_i32 = arith.constant 0 : i32
    %c0_i32_0 = arith.constant 0 : i32
    %c0_i32_1 = arith.constant 0 : i32
    %c0_i32_2 = arith.constant 0 : i32
    return %c0_i32, %c0_i32_0, %c0_i32_1 : i32, i32, i32
  }
  func.func @transform_2(%arg0: i32) -> (i32, i32) {
    %c0_i32 = arith.constant 0 : i32
    %c0_i32_0 = arith.constant 0 : i32
    %c0_i32_1 = arith.constant 0 : i32
    return %c0_i32, %c0_i32_0 : i32, i32
  }
  func.func @transform_3(%arg0: i32) -> (i32, i32) {
    %c0_i32 = arith.constant 0 : i32
    %c0_i32_0 = arith.constant 0 : i32
    %c0_i32_1 = arith.constant 0 : i32
    return %c0_i32, %c0_i32_0 : i32, i32
  }
  func.func @transform_4(%arg0: i32) -> (i32, i32, i32) {
    %c0_i32 = arith.constant 0 : i32
    %c0_i32_0 = arith.constant 0 : i32
    %c0_i32_1 = arith.constant 0 : i32
    return %arg0, %c0_i32, %c0_i32_0 : i32, i32, i32
  }
}

module attributes {stable_mosaic.version = 11 : i64} {
  func.func @kernel(%arg0: i32, %arg1: memref<1x9x16xbf16, #tpu.memory_space<vmem>>, %arg2: memref<2x8x9xbf16, #tpu.memory_space<vmem>>, %arg3: memref<2x9x8xbf16, #tpu.memory_space<vmem>>, %arg4: memref<2x16x8xbf16, #tpu.memory_space<vmem>>, %arg5: memref<2x1x8xf32, #tpu.memory_space<vmem>>, %arg6: memref<2x1x8xf32, #tpu.memory_space<vmem>>, %arg7: memref<1x9x32xbf16, #tpu.memory_space<vmem>>) attributes {dimension_semantics = [#tpu.dimension_semantics<parallel>], iteration_bounds = array<i64: 2>, scalar_prefetch = 0 : i64, scratch_operands = 0 : i64, tpu.core_type = #tpu.core_type<tc>, window_params = [{transform_indices = @transform_0, window_bounds = array<i64: 1, 9, 16>}, {pipeline_mode = #tpu.pipeline_mode<synchronous>, transform_indices = @transform_1, window_bounds = array<i64: 2, 8, 9>}, {pipeline_mode = #tpu.pipeline_mode<synchronous>, transform_indices = @transform_2, window_bounds = array<i64: 2, 9, 8>}, {pipeline_mode = #tpu.pipeline_mode<synchronous>, transform_indices = @transform_3, window_bounds = array<i64: 2, 16, 8>}, {pipeline_mode = #tpu.pipeline_mode<synchronous>, transform_indices = @transform_4, window_bounds = array<i64: 2, 1, 8>}, {pipeline_mode = #tpu.pipeline_mode<synchronous>, transform_indices = @transform_5, window_bounds = array<i64: 2, 1, 8>}, {transform_indices = @transform_6, window_bounds = array<i64: 1, 9, 32>}]} {
    %c0 = arith.constant 0 : index
    %c0_0 = arith.constant 0 : index
    %c0_1 = arith.constant 0 : index
    %0 = vector.load %arg1[%c0, %c0_0, %c0_1] : memref<1x9x16xbf16, #tpu.memory_space<vmem>>, vector<1x9x16xbf16>
    %1 = vector.shape_cast %0 : vector<1x9x16xbf16> to vector<9x16xbf16>
    %c0_2 = arith.constant 0 : index
    %c0_3 = arith.constant 0 : index
    %c0_4 = arith.constant 0 : index
    %2 = vector.load %arg2[%c0_2, %c0_3, %c0_4] : memref<2x8x9xbf16, #tpu.memory_space<vmem>>, vector<1x8x9xbf16>
    %3 = vector.shape_cast %2 : vector<1x8x9xbf16> to vector<8x9xbf16>
    %cst = arith.constant dense<0.000000e+00> : vector<8x16xf32>
    %4 = tpu.matmul %3, %1, %cst {dimension_numbers = #tpu.dot_dimension_numbers<[1], [0], [0], [1], [0, 0, 1, 1], [], []>} : vector<8x9xbf16>, vector<9x16xbf16>, vector<8x16xf32> -> vector<8x16xf32>
    %5 = arith.truncf %4 : vector<8x16xf32> to vector<8x16xbf16>
    %c0_5 = arith.constant 0 : index
    %c0_6 = arith.constant 0 : index
    %c0_7 = arith.constant 0 : index
    %6 = vector.load %arg4[%c0_5, %c0_6, %c0_7] : memref<2x16x8xbf16, #tpu.memory_space<vmem>>, vector<1x16x8xbf16>
    %7 = vector.shape_cast %6 : vector<1x16x8xbf16> to vector<16x8xbf16>
    %cst_8 = arith.constant dense<0.000000e+00> : vector<8x8xf32>
    %8 = tpu.matmul %5, %7, %cst_8 {dimension_numbers = #tpu.dot_dimension_numbers<[1], [0], [0], [1], [0, 0, 1, 1], [], []>} : vector<8x16xbf16>, vector<16x8xbf16>, vector<8x8xf32> -> vector<8x8xf32>
    %c0_9 = arith.constant 0 : index
    %c0_10 = arith.constant 0 : index
    %c0_11 = arith.constant 0 : index
    %9 = vector.load %arg5[%c0_9, %c0_10, %c0_11] : memref<2x1x8xf32, #tpu.memory_space<vmem>>, vector<1x1x8xf32>
    %10 = vector.shape_cast %9 : vector<1x1x8xf32> to vector<1x8xf32>
    %11 = vector.broadcast %10 : vector<1x8xf32> to vector<8x8xf32>
    %12 = arith.mulf %8, %11 : vector<8x8xf32>
    %c0_12 = arith.constant 0 : index
    %c0_13 = arith.constant 0 : index
    %c0_14 = arith.constant 0 : index
    %13 = vector.load %arg6[%c0_12, %c0_13, %c0_14] : memref<2x1x8xf32, #tpu.memory_space<vmem>>, vector<1x1x8xf32>
    %14 = vector.shape_cast %13 : vector<1x1x8xf32> to vector<1x8xf32>
    %15 = vector.broadcast %14 : vector<1x8xf32> to vector<8x8xf32>
    %16 = arith.addf %12, %15 : vector<8x8xf32>
    %cst_15 = arith.constant 0.000000e+00 : f32
    %17 = vector.broadcast %cst_15 : f32 to vector<8x8xf32>
    %18 = arith.maximumf %16, %17 : vector<8x8xf32>
    %c0_16 = arith.constant 0 : index
    %c0_17 = arith.constant 0 : index
    %c0_18 = arith.constant 0 : index
    %19 = vector.load %arg3[%c0_16, %c0_17, %c0_18] : memref<2x9x8xbf16, #tpu.memory_space<vmem>>, vector<1x9x8xbf16>
    %20 = vector.shape_cast %19 : vector<1x9x8xbf16> to vector<9x8xbf16>
    %21 = arith.truncf %18 : vector<8x8xf32> to vector<8x8xbf16>
    %cst_19 = arith.constant dense<0.000000e+00> : vector<9x8xf32>
    %22 = tpu.matmul %20, %21, %cst_19 {dimension_numbers = #tpu.dot_dimension_numbers<[1], [0], [0], [1], [0, 0, 1, 1], [], []>} : vector<9x8xbf16>, vector<8x8xbf16>, vector<9x8xf32> -> vector<9x8xf32>
    %23 = arith.truncf %22 : vector<9x8xf32> to vector<9x8xbf16>
    %c1 = arith.constant 1 : index
    %c0_20 = arith.constant 0 : index
    %c0_21 = arith.constant 0 : index
    %24 = vector.load %arg2[%c1, %c0_20, %c0_21] : memref<2x8x9xbf16, #tpu.memory_space<vmem>>, vector<1x8x9xbf16>
    %25 = vector.shape_cast %24 : vector<1x8x9xbf16> to vector<8x9xbf16>
    %cst_22 = arith.constant dense<0.000000e+00> : vector<8x16xf32>
    %26 = tpu.matmul %25, %1, %cst_22 {dimension_numbers = #tpu.dot_dimension_numbers<[1], [0], [0], [1], [0, 0, 1, 1], [], []>} : vector<8x9xbf16>, vector<9x16xbf16>, vector<8x16xf32> -> vector<8x16xf32>
    %27 = arith.truncf %26 : vector<8x16xf32> to vector<8x16xbf16>
    %c1_23 = arith.constant 1 : index
    %c0_24 = arith.constant 0 : index
    %c0_25 = arith.constant 0 : index
    %28 = vector.load %arg4[%c1_23, %c0_24, %c0_25] : memref<2x16x8xbf16, #tpu.memory_space<vmem>>, vector<1x16x8xbf16>
    %29 = vector.shape_cast %28 : vector<1x16x8xbf16> to vector<16x8xbf16>
    %cst_26 = arith.constant dense<0.000000e+00> : vector<8x8xf32>
    %30 = tpu.matmul %27, %29, %cst_26 {dimension_numbers = #tpu.dot_dimension_numbers<[1], [0], [0], [1], [0, 0, 1, 1], [], []>} : vector<8x16xbf16>, vector<16x8xbf16>, vector<8x8xf32> -> vector<8x8xf32>
    %c1_27 = arith.constant 1 : index
    %c0_28 = arith.constant 0 : index
    %c0_29 = arith.constant 0 : index
    %31 = vector.load %arg5[%c1_27, %c0_28, %c0_29] : memref<2x1x8xf32, #tpu.memory_space<vmem>>, vector<1x1x8xf32>
    %32 = vector.shape_cast %31 : vector<1x1x8xf32> to vector<1x8xf32>
    %33 = vector.broadcast %32 : vector<1x8xf32> to vector<8x8xf32>
    %34 = arith.mulf %30, %33 : vector<8x8xf32>
    %c1_30 = arith.constant 1 : index
    %c0_31 = arith.constant 0 : index
    %c0_32 = arith.constant 0 : index
    %35 = vector.load %arg6[%c1_30, %c0_31, %c0_32] : memref<2x1x8xf32, #tpu.memory_space<vmem>>, vector<1x1x8xf32>
    %36 = vector.shape_cast %35 : vector<1x1x8xf32> to vector<1x8xf32>
    %37 = vector.broadcast %36 : vector<1x8xf32> to vector<8x8xf32>
    %38 = arith.addf %34, %37 : vector<8x8xf32>
    %cst_33 = arith.constant 0.000000e+00 : f32
    %39 = vector.broadcast %cst_33 : f32 to vector<8x8xf32>
    %40 = arith.maximumf %38, %39 : vector<8x8xf32>
    %c1_34 = arith.constant 1 : index
    %c0_35 = arith.constant 0 : index
    %c0_36 = arith.constant 0 : index
    %41 = vector.load %arg3[%c1_34, %c0_35, %c0_36] : memref<2x9x8xbf16, #tpu.memory_space<vmem>>, vector<1x9x8xbf16>
    %42 = vector.shape_cast %41 : vector<1x9x8xbf16> to vector<9x8xbf16>
    %43 = arith.truncf %40 : vector<8x8xf32> to vector<8x8xbf16>
    %cst_37 = arith.constant dense<0.000000e+00> : vector<9x8xf32>
    %44 = tpu.matmul %42, %43, %cst_37 {dimension_numbers = #tpu.dot_dimension_numbers<[1], [0], [0], [1], [0, 0, 1, 1], [], []>} : vector<9x8xbf16>, vector<8x8xbf16>, vector<9x8xf32> -> vector<9x8xf32>
    %45 = arith.truncf %44 : vector<9x8xf32> to vector<9x8xbf16>
    %46 = tpu.concatenate %1, %23, %45 in 1 : vector<9x16xbf16>, vector<9x8xbf16>, vector<9x8xbf16> -> vector<9x32xbf16>
    %c0_38 = arith.constant 0 : index
    %c0_39 = arith.constant 0 : index
    %c0_40 = arith.constant 0 : index
    %47 = vector.load %arg7[%c0_38, %c0_39, %c0_40] : memref<1x9x32xbf16, #tpu.memory_space<vmem>>, vector<1x9x32xbf16>
    %48 = vector.shape_cast %47 : vector<1x9x32xbf16> to vector<9x32xbf16>
    %49 = vector.shape_cast %46 : vector<9x32xbf16> to vector<1x9x32xbf16>
    tpu.vector_store %arg7[%c0_38, %c0_39, %c0_40], %49 {strides = array<i32>} : memref<1x9x32xbf16, #tpu.memory_space<vmem>>, vector<1x9x32xbf16>,
    return
  }
  func.func @transform_0(%arg0: i32) -> (i32, i32, i32) {
    %c0_i32 = arith.constant 0 : i32
    %c0_i32_0 = arith.constant 0 : i32
    %c0_i32_1 = arith.constant 0 : i32
    return %arg0, %c0_i32, %c0_i32_0 : i32, i32, i32
  }
  func.func @transform_1(%arg0: i32) -> (i32, i32, i32) {
    %c0_i32 = arith.constant 0 : i32
    %c0_i32_0 = arith.constant 0 : i32
    %c0_i32_1 = arith.constant 0 : i32
    %c0_i32_2 = arith.constant 0 : i32
    return %c0_i32, %c0_i32_0, %c0_i32_1 : i32, i32, i32
  }
  func.func @transform_2(%arg0: i32) -> (i32, i32, i32) {
    %c0_i32 = arith.constant 0 : i32
    %c0_i32_0 = arith.constant 0 : i32
    %c0_i32_1 = arith.constant 0 : i32
    %c0_i32_2 = arith.constant 0 : i32
    return %c0_i32, %c0_i32_0, %c0_i32_1 : i32, i32, i32
  }
  func.func @transform_3(%arg0: i32) -> (i32, i32, i32) {
    %c0_i32 = arith.constant 0 : i32
    %c0_i32_0 = arith.constant 0 : i32
    %c0_i32_1 = arith.constant 0 : i32
    %c0_i32_2 = arith.constant 0 : i32
    return %c0_i32, %c0_i32_0, %c0_i32_1 : i32, i32, i32
  }
  func.func @transform_4(%arg0: i32) -> (i32, i32, i32) {
    %c0_i32 = arith.constant 0 : i32
    %c0_i32_0 = arith.constant 0 : i32
    %c0_i32_1 = arith.constant 0 : i32
    %c0_i32_2 = arith.constant 0 : i32
    return %c0_i32, %c0_i32_0, %c0_i32_1 : i32, i32, i32
  }
  func.func @transform_5(%arg0: i32) -> (i32, i32, i32) {
    %c0_i32 = arith.constant 0 : i32
    %c0_i32_0 = arith.constant 0 : i32
    %c0_i32_1 = arith.constant 0 : i32
    %c0_i32_2 = arith.constant 0 : i32
    return %c0_i32, %c0_i32_0, %c0_i32_1 : i32, i32, i32
  }
  func.func @transform_6(%arg0: i32) -> (i32, i32, i32) {
    %c0_i32 = arith.constant 0 : i32
    %c0_i32_0 = arith.constant 0 : i32
    %c0_i32_1 = arith.constant 0 : i32
    return %arg0, %c0_i32, %c0_i32_0 : i32, i32, i32
  }
}

module attributes {stable_mosaic.version = 11 : i64} {
  func.func @_classify_zoom_kernel(%arg0: i32, %arg1: memref<1x16x9xbf16, #tpu.memory_space<vmem>>, %arg2: memref<8x16xbf16, #tpu.memory_space<vmem>>, %arg3: memref<9x384xbf16, #tpu.memory_space<vmem>>, %arg4: memref<1x8x384xf32, #tpu.memory_space<vmem>>) attributes {dimension_semantics = [#tpu.dimension_semantics<parallel>], iteration_bounds = array<i64: 2>, scalar_prefetch = 0 : i64, scratch_operands = 0 : i64, tpu.core_type = #tpu.core_type<tc>, window_params = [{transform_indices = @transform_0, window_bounds = array<i64: 1, 16, 9>}, {pipeline_mode = #tpu.pipeline_mode<synchronous>, transform_indices = @transform_1, window_bounds = array<i64: 8, 16>}, {pipeline_mode = #tpu.pipeline_mode<synchronous>, transform_indices = @transform_2, window_bounds = array<i64: 9, 384>}, {transform_indices = @transform_3, window_bounds = array<i64: 1, 8, 384>}]} {
    %c0 = arith.constant 0 : index
    %c0_0 = arith.constant 0 : index
    %0 = vector.load %arg2[%c0, %c0_0] : memref<8x16xbf16, #tpu.memory_space<vmem>>, vector<8x16xbf16>
    %c0_1 = arith.constant 0 : index
    %c0_2 = arith.constant 0 : index
    %c0_3 = arith.constant 0 : index
    %1 = vector.load %arg1[%c0_1, %c0_2, %c0_3] : memref<1x16x9xbf16, #tpu.memory_space<vmem>>, vector<1x16x9xbf16>
    %2 = vector.shape_cast %1 : vector<1x16x9xbf16> to vector<16x9xbf16>
    %cst = arith.constant dense<0.000000e+00> : vector<8x9xf32>
    %3 = tpu.matmul %0, %2, %cst {dimension_numbers = #tpu.dot_dimension_numbers<[1], [0], [0], [1], [0, 0, 1, 1], [], []>} : vector<8x16xbf16>, vector<16x9xbf16>, vector<8x9xf32> -> vector<8x9xf32>
    %4 = arith.truncf %3 : vector<8x9xf32> to vector<8x9xbf16>
    %c0_4 = arith.constant 0 : index
    %c0_5 = arith.constant 0 : index
    %5 = vector.load %arg3[%c0_4, %c0_5] : memref<9x384xbf16, #tpu.memory_space<vmem>>, vector<9x384xbf16>
    %cst_6 = arith.constant dense<0.000000e+00> : vector<8x384xf32>
    %6 = tpu.matmul %4, %5, %cst_6 {dimension_numbers = #tpu.dot_dimension_numbers<[1], [0], [0], [1], [0, 0, 1, 1], [], []>} : vector<8x9xbf16>, vector<9x384xbf16>, vector<8x384xf32> -> vector<8x384xf32>
    %c0_7 = arith.constant 0 : index
    %c0_8 = arith.constant 0 : index
    %c0_9 = arith.constant 0 : index
    %7 = vector.load %arg4[%c0_7, %c0_8, %c0_9] : memref<1x8x384xf32, #tpu.memory_space<vmem>>, vector<1x8x384xf32>
    %8 = vector.shape_cast %7 : vector<1x8x384xf32> to vector<8x384xf32>
    %9 = vector.shape_cast %6 : vector<8x384xf32> to vector<1x8x384xf32>
    tpu.vector_store %arg4[%c0_7, %c0_8, %c0_9], %9 {strides = array<i32>} : memref<1x8x384xf32, #tpu.memory_space<vmem>>, vector<1x8x384xf32>,
    return
  }
  func.func @transform_0(%arg0: i32) -> (i32, i32, i32) {
    %c0_i32 = arith.constant 0 : i32
    %c0_i32_0 = arith.constant 0 : i32
    %c0_i32_1 = arith.constant 0 : i32
    return %arg0, %c0_i32, %c0_i32_0 : i32, i32, i32
  }
  func.func @transform_1(%arg0: i32) -> (i32, i32) {
    %c0_i32 = arith.constant 0 : i32
    %c0_i32_0 = arith.constant 0 : i32
    %c0_i32_1 = arith.constant 0 : i32
    return %c0_i32, %c0_i32_0 : i32, i32
  }
  func.func @transform_2(%arg0: i32) -> (i32, i32) {
    %c0_i32 = arith.constant 0 : i32
    %c0_i32_0 = arith.constant 0 : i32
    %c0_i32_1 = arith.constant 0 : i32
    return %c0_i32, %c0_i32_0 : i32, i32
  }
  func.func @transform_3(%arg0: i32) -> (i32, i32, i32) {
    %c0_i32 = arith.constant 0 : i32
    %c0_i32_0 = arith.constant 0 : i32
    %c0_i32_1 = arith.constant 0 : i32
    return %arg0, %c0_i32, %c0_i32_0 : i32, i32, i32
  }
}

</mosaic_0001>

<bundles_post_ra>
// kernel: pspnet_forward.8
= control target key start
LH: loop header
LB: loop body
LE: loop exit
PB: predicated region body
PF: predicated region fallthrough
CT: control target
= control target key end

     0   :  { %s650_s15 = smov 0   ;;  %s723_s0 = inlined_call_operand.vmem [shape: bf16[2,81,27], index: 0, kind: input, shape index: {}]   ;;  %s724_s1 = inlined_call_operand.vmem [shape: bf16[1,27,8], index: 1, kind: input, shape index: {}]   ;;  %s725_s2 = inlined_call_operand.vmem [shape: f32[1,8], index: 2, kind: input, shape index: {}]   ;;  %s726_s3 = inlined_call_operand.vmem [shape: f32[1,8], index: 3, kind: input, shape index: {}]   ;;  %s727_s4 = inlined_call_operand.vmem [shape: bf16[2,81,8], index: 4, kind: output, shape index: {}]  }
   0x1 LB: > { %s523_s16 = sadd.s32 4294967295, %s622_s15   ;;  %p527_p0 = scmp.ge.s32.totalorder %s622_s15, 1  ;;  %s622_s15 = sphi %s650_s15, %s14_s15  }
   0x2   : > { %p162_p1 = scmp.lt.s32.totalorder %s622_s15, 3 }
   0x4   : > { %p163_p2 = pnand %p527_p0, %p162_p1 }
   0x5   : > { %v608_v0 = vld [vmem:[%s724_s1] sm:$0xff] (!%p163_p2)   ;;  %vm272_vm0 = vcmask (!%p163_p2), 1044480   ;;  %v609_v1 = vld [vmem:[%s724_s1 + $0x8] sm:$0x3f] (!%p163_p2)   ;;  %vm273_vm1 = vcmask (!%p163_p2), 1045504   ;;  %p188_p3 = scmp.lt.s32.totalorder (!%p163_p2), %s523_s16, 1 }
   0x6   : > { %166 = sbr.rel (%p163_p2) target bundleno = 251 (0xfb), region = 36  ;;  %594 = vmatprep.subr.bf16.mxu1 (!%p163_p2), %v608_v0  ;;  %578 = vmatprep.subr.bf16.mxu0 (!%p163_p2), %v608_v0  ;;  %v624_v2 = vmov (!%p163_p2), 65535   ;;  %vm253_vm2 = vcmask (!%p163_p2), 220160   ;;  %v544_v12 = vld [vmem:[%s725_s2] ss:$0 sm:$0xff] (!%p163_p2)  ;;  %vm451_vm3 = vcmask (!%p163_p2), 60416  }
   0x7   : > { %596 = vmatpush3.bf16.msra.mxu1 (!%p163_p2), %v608_v0  ;;  %v274_v3 = vsel (!%p163_p2), %vm272_vm0, 4294967295, %v624_v2  ;;  %579 = vmatpush3.bf16.msra.mxu0 (!%p163_p2), %v608_v0  ;;  %v678_v14 = vld [vmem:[%s726_s3] ss:$0 sm:$0xff] (!%p163_p2)  ;;  %vm462_vm4 = vcmask (!%p163_p2), 57344   ;;  %vm463_vm5 = vsmask.f32 (!%p163_p2), 256 }
   0x8   : > { %v275_v4 = vsel (!%p163_p2), %vm273_vm1, %v274_v3, 0  ;;  %vm464_vm6 = vmand (!%p163_p2), %vm462_vm4, %vm463_vm5 }
   0x9   : > { %v277_v5 = vand.u32 (!%p163_p2), %v609_v1, %v275_v4 }
   0xb   : > { %595 = vmatprep.subr.bf16.mxu1 (!%p163_p2), %v277_v5  ;;  %580 = vmatprep.subr.bf16.mxu0 (!%p163_p2), %v277_v5 }
   0xc   : > { %597 = vmatpush3.bf16.msra.mxu1 (!%p163_p2), %v277_v5  ;;  %581 = vmatpush3.bf16.msra.mxu0 (!%p163_p2), %v277_v5 }
   0xd   : > { %s729_s16 = smov (!%p188_p3, %s523_s16), 1 }
   0xe   : > { %s598_s21 = smul.u32 44, %s729_s16 }
  0x10   : > { %s192_s24 = scalar_lea.vmem %s723_s0, %s598_s21  ;;  %s689_s5 = scalar_lea.vmem %s727_s4, %s598_s21 }
  0x11   : > { %v610_v6 = vld [vmem:[%s192_s24 + $0x10] sm:$0xff]   ;;  %v611_v7 = vld [vmem:[%s192_s24 + $0x18] sm:$0xff]   ;;  %v612_v8 = vld [vmem:[%s192_s24] sm:$0xff]  }
  0x12   : > { %586 = vmatprep.mubr.msk.bf16.mxu1 %vm253_vm2, %v610_v6  ;;  %v613_v9 = vld [vmem:[%s192_s24 + $0x8] sm:$0xff]   ;;  %582 = vmatprep.mubr.msk.bf16.mxu0 %vm253_vm2, %v612_v8  ;;  %v614_v10 = vld [vmem:[%s192_s24 + $0x20] sm:$0xff]  }
  0x13   : > { %587 = vmatmul.mubr.msk.bf16.vlgmr.msra.gmra.mrb[0].mxu1 %vm253_vm2, %v611_v7  ;;  %583 = vmatmul.mubr.msk.bf16.vlgmr.msra.gmra.mrb[0].mxu0 %vm253_vm2, %v613_v9  ;;  %v615_v11 = vld [vmem:[%s192_s24 + $0x28] ss:$0 sps:$4 sm:$0x11]  }
  0x14   : > { %590 = vmatprep.mubr.msk.bf16.mxu1 %vm253_vm2, %v614_v10  ;;  %v465_v0 = vld [vmem:[%s689_s5 + $0x28] sm:$0x1] }
  0x1b   : > { %591 = vmatmul.mubr.msk.bf16.gmra.mrb[4].mxu1 %vm253_vm2, %v615_v11 }
  0xe6   : > { %v588_v13 = vpop.f32.mrb[0].mxu1  ;;  %v584_v19 = vpop.f32.mrb[0].mxu0 }
  0xe7   : > { %v372_v15 = vmul.f32 %v588_v13, %v544_v12  ;;  %v329_v16 = vpop.f32.mrb[1].mxu1  ;;  %v368_v23 = vmul.f32 %v584_v19, %v544_v12  ;;  %v313_v24 = vpop.f32.mrb[1].mxu0 }
  0xe8   : > { %v370_v17 = vmul.f32 %v544_v12, %v329_v16  ;;  %v589_v18 = vpop.f32.mrb[2].mxu1  ;;  %v366_v27 = vmul.f32 %v544_v12, %v313_v24  ;;  %v585_v28 = vpop.f32.mrb[2].mxu0 }
  0xe9   : > { %v390_v20 = vadd.f32 %v678_v14, %v372_v15  ;;  %v373_v21 = vmul.f32 %v589_v18, %v544_v12  ;;  %v332_v22 = vpop.f32.mrb[3].mxu1  ;;  %v386_v31 = vadd.f32 %v678_v14, %v368_v23  ;;  %v369_v32 = vmul.f32 %v585_v28, %v544_v12  ;;  %v316_v33 = vpop.f32.mrb[3].mxu0 }
  0xea   : > { %v388_v25 = vadd.f32 %v678_v14, %v370_v17  ;;  %v371_v26 = vmul.f32 %v544_v12, %v332_v22  ;;  %v384_v36 = vadd.f32 %v678_v14, %v366_v27  ;;  %v367_v37 = vmul.f32 %v544_v12, %v316_v33 }
  0xeb   : > { %v401_v29 = vmax.f32 %v390_v20, 0.0  ;;  %v391_v30 = vadd.f32 %v678_v14, %v373_v21  ;;  %v397_v40 = vmax.f32 %v386_v31, 0.0  ;;  %v387_v41 = vadd.f32 %v678_v14, %v369_v32 }
  0xec   : > { %v399_v34 = vmax.f32 %v388_v25, 0.0  ;;  %v389_v35 = vadd.f32 %v678_v14, %v371_v26  ;;  %v395_v44 = vmax.f32 %v384_v36, 0.0  ;;  %v385_v45 = vadd.f32 %v678_v14, %v367_v37 }
  0xed   : > { %v565_v38 = vpack.c.bf16 %v401_v29, %v401_v29  ;;  %v402_v39 = vmax.f32 %v391_v30, 0.0  ;;  %v561_v48 = vpack.c.bf16 %v397_v40, %v397_v40  ;;  %v398_v49 = vmax.f32 %v387_v41, 0.0 }
  0xee   : > { %v563_v42 = vpack.c.bf16 %v399_v34, %v399_v34  ;;  %v400_v43 = vmax.f32 %v389_v35, 0.0  ;;  %v592_v46 = vpop.f32.mrb[4].mxu1  ;;  %v559_v53 = vpack.c.bf16 %v395_v44, %v395_v44  ;;  %v396_v54 = vmax.f32 %v385_v45, 0.0 }
  0xef   : > { %458 = vst.msk [vmem:[%s689_s5 + $0x18] sm:$0xf] %vm451_vm3, %v565_v38  ;;  %v566_v47 = vpack.c.bf16 %v402_v39, %v402_v39  ;;  %v376_v50 = vmul.f32 %v592_v46, %v544_v12  ;;  %v345_v51 = vpop.f32.mrb[5].mxu1  ;;  %454 = vst.msk [vmem:[%s689_s5 + $0x8] sm:$0xf] %vm451_vm3, %v561_v48  ;;  %v562_v57 = vpack.c.bf16 %v398_v49, %v398_v49 }
  0xf0   : > { %456 = vst.msk [vmem:[%s689_s5 + $0x10] sm:$0xf] %vm451_vm3, %v563_v42  ;;  %v564_v52 = vpack.c.bf16 %v400_v43, %v400_v43  ;;  %v374_v55 = vmul.f32 %v544_v12, %v345_v51  ;;  %v593_v56 = vpop.f32.mrb[6].mxu1  ;;  %452 = vst.msk [vmem:[%s689_s5] sm:$0xf] %vm451_vm3, %v559_v53  ;;  %v560_v60 = vpack.c.bf16 %v396_v54, %v396_v54 }
  0xf1   : > { %459 = vst.msk [vmem:[%s689_s5 + $0x1c] sm:$0xf] %vm451_vm3, %v566_v47  ;;  %v394_v58 = vadd.f32 %v678_v14, %v376_v50  ;;  %v348_v59 = vpop.f32.mrb[7].mxu1  ;;  %455 = vst.msk [vmem:[%s689_s5 + $0xc] sm:$0xf] %vm451_vm3, %v562_v57 }
  0xf2   : > { %457 = vst.msk [vmem:[%s689_s5 + $0x14] sm:$0xf] %vm451_vm3, %v564_v52  ;;  %v392_v61 = vadd.f32 %v678_v14, %v374_v55  ;;  %v375_v62 = vmul.f32 %v544_v12, %v348_v59  ;;  %453 = vst.msk [vmem:[%s689_s5 + $0x4] sm:$0xf] %vm451_vm3, %v560_v60 }
  0xf3   : > { %v405_v63 = vmax.f32 %v394_v58, 0.0 }
  0xf4   : > { %v403_v1 = vmax.f32 %v392_v61, 0.0  ;;  %v393_v2 = vadd.f32 %v678_v14, %v375_v62 }
  0xf5   : > { %v569_v3 = vpack.c.bf16 %v405_v63, %v405_v63 }
  0xf6   : > { %v567_v4 = vpack.c.bf16 %v403_v1, %v403_v1  ;;  %v404_v5 = vmax.f32 %v393_v2, 0.0 }
  0xf7   : > { %v466_v6 = vsel %vm464_vm6, %v569_v3, %v465_v0 }
  0xf8   : > { %467 = vst [vmem:[%s689_s5 + $0x28] sm:$0x1] %v466_v6  ;;  %460 = vst.msk [vmem:[%s689_s5 + $0x20] sm:$0xf] %vm451_vm3, %v567_v4  ;;  %v568_v7 = vpack.c.bf16 %v404_v5, %v404_v5 }
  0xfa   : > { %461 = vst.msk [vmem:[%s689_s5 + $0x24] sm:$0xf] %vm451_vm3, %v568_v7 }
  0xfb PF: > { %s14_s15 = sadd.s32 1, %s622_s15  }
  0xfc   : > { %p11_p4 = scmp.ge.s32.totalorder %s14_s15, 4  }
  0xfe   :  { %13 = sbr.rel (!%p11_p4) target bundleno = 1 (0x1), region = 66 }

// kernel: pspnet_forward.9
= control target key start
LH: loop header
LB: loop body
LE: loop exit
PB: predicated region body
PF: predicated region fallthrough
CT: control target
= control target key end

     0   :  { %s1557_s15 = smov 0   ;;  %s1821_s0 = inlined_call_operand.vmem [shape: bf16[2,56,8], index: 0, kind: input, shape index: {}]   ;;  %s1822_s1 = inlined_call_operand.vmem [shape: bf16[9,8,8], index: 1, kind: input, shape index: {}]   ;;  %s1823_s2 = inlined_call_operand.vmem [shape: f32[1,8], index: 2, kind: input, shape index: {}]   ;;  %s1824_s3 = inlined_call_operand.vmem [shape: f32[1,8], index: 3, kind: input, shape index: {}]   ;;  %s1825_s4 = inlined_call_operand.vmem [shape: bf16[2,35,8], index: 4, kind: output, shape index: {}]  }
   0x1 LB: > { %s1167_s16 = sadd.s32 4294967295, %s1528_s15   ;;  %p1171_p0 = scmp.ge.s32.totalorder %s1528_s15, 1  ;;  %s1528_s15 = sphi %s1557_s15, %s14_s15  }
   0x2   : > { %p162_p1 = scmp.lt.s32.totalorder %s1528_s15, 3 }
   0x4   : > { %p163_p2 = pnand %p1171_p0, %p162_p1 }
   0x5   : > { %vm254_vm0 = vcmask (!%p163_p2), 1043456   ;;  %v1197_v0 = vld [vmem:[%s1822_s1 + $0x10] sm:$0xf] (!%p163_p2)  ;;  %p188_p3 = scmp.lt.s32.totalorder (!%p163_p2), %s1167_s16, 1  ;;  %v1530_v1 = vmov (!%p163_p2), 0.0   ;;  %vm1531_vm1 = vmmov (!%p163_p2), 0  }
   0x6   : > { %166 = sbr.rel (%p163_p2) target bundleno = 357 (0x165), region = 36  ;;  %1332 = vmatprep.subr.bf16.mxu0 (!%p163_p2), %v1530_v1  ;;  %v1570_v2 = vsel (!%p163_p2), %vm254_vm0, %v1197_v0, 0  ;;  %1334 = vmatprep.mubr.msk.bf16.mxu0 (!%p163_p2), %vm1531_vm1, %v1530_v1  ;;  %v1174_v3 = vld [vmem:[%s1822_s1 + $0x4] sm:$0xf] (!%p163_p2)  ;;  %v1204_v5 = vld [vmem:[%s1822_s1 + $0x14] sm:$0xf] (!%p163_p2) }
   0x7   : > { %1333 = vmatpush3.bf16.msra.mxu0 (!%p163_p2), %v1570_v2  ;;  %1276 = vmatprep.subr.bf16.mxu1 (!%p163_p2), %v1530_v1  ;;  %v256_v4 = vsel (!%p163_p2), %vm254_vm0, %v1174_v3, 0  ;;  %vm244_vm2 = vcmask (!%p163_p2), 64512   ;;  %v704_v6 = vsel (!%p163_p2), %vm254_vm0, %v1204_v5, 0  ;;  %v204_v27 = vld [vmem:[%s1822_s1] sm:$0xf] (!%p163_p2)  ;;  %vm790_vm5 = vcmask (!%p163_p2), 1044480  }
   0x8   : > { %1277 = vmatpush3.bf16.msra.mxu1 (!%p163_p2), %v256_v4  ;;  %1278 = vmatprep.mubr.msk.bf16.mxu1 (!%p163_p2), %vm1531_vm1, %v1530_v1  ;;  %vm220_vm3 = vsmask.f32 (!%p163_p2), 7424  ;;  %v1208_v41 = vld [vmem:[%s1822_s1 + $0x18] sm:$0xf] (!%p163_p2)  ;;  %v321_v44 = vsel (!%p163_p2), %vm254_vm0, %v204_v27, 0  ;;  %vm389_vm6 = vcmask (!%p163_p2), 1046528  }
   0x9   : > { %1290 = vmatprep.subr.bf16.mxu1 (!%p163_p2), %v1530_v1  ;;  %1346 = vmatprep.subr.bf16.mxu0 (!%p163_p2), %v1530_v1  ;;  %v806_v49 = vsel (!%p163_p2), %vm254_vm0, %v1208_v41, 0  ;;  %vm491_vm4 = vsmask.f32 (!%p163_p2), 4352  ;;  %vm1101_vm7 = vcmask (!%p163_p2), 60416   ;;  %vm1106_vm8 = vcmask (!%p163_p2), 58368  }
   0xa   : > { %vm1107_vm9 = vsmask.f32 (!%p163_p2), 1280 }
   0xb   : > { %vm1108_vm10 = vmand (!%p163_p2), %vm1106_vm8, %vm1107_vm9 }
   0xd   : > { %s1827_s16 = smov (!%p188_p3, %s1167_s16), 1 }
   0xe   : > { %s1493_s23 = smul.u32 28, %s1827_s16 }
   0xf   : > { %s1494_s19 = smul.u32 20, %s1827_s16 }
  0x10   : > { %s1593_s26 = scalar_lea.vmem %s1821_s0, %s1493_s23 }
  0x11   : > { %v468_v7 = vld [vmem:[%s1593_s26] sm:$0x8]  ;;  %v469_v8 = vld [vmem:[%s1593_s26 + $0x4] sm:$0xf]  ;;  %v470_v9 = vld [vmem:[%s1593_s26 + $0x8] sm:$0xf]  ;;  %s1806_s22 = scalar_lea.vmem %s1825_s4, %s1494_s19 }
  0x12   : > { %v471_v10 = vld [vmem:[%s1593_s26 + $0xc] sm:$0xf]  ;;  %v1601_v11 = vld [vmem:[%s1593_s26 + $0x10] sm:$0xf]  ;;  %v1191_v12 = vcombine.low %v468_v7, %v469_v8  ;;  %v1198_v13 = vcombine.low %v469_v8, %v470_v9  ;;  %v199_v14 = vld [vmem:[%s1593_s26] sm:$0xf] }
  0x13   : > { %v1192_v15 = vcombine.low %v470_v9, %v471_v10  ;;  %v1605_v16 = vcombine.low %v471_v10, %v1601_v11  ;;  %v1608_v17 = vld [vmem:[%s1593_s26 + $0x4] sm:$0xf]  ;;  %v1612_v19 = vld [vmem:[%s1593_s26 + $0x8] sm:$0xff]   ;;  %v1628_v30 = vld [vmem:[%s1593_s26 + $0x10] ss:$0 sps:$4 sm:$0x33]  }
  0x14   : > { %1335 = vmatmul.mubr.msk.bf16.vlgmr.msra.gmra.mrb[0].mxu0 %vm244_vm2, %v1198_v13  ;;  %v676_v18 = vshll.u32 %v1198_v13, 16  ;;  %v674_v20 = vshrl.u32 %v1198_v13, 16  ;;  %v1615_v21 = vcombine.low %v199_v14, %v1608_v17  ;;  %v229_v23 = vshll.u32 %v1612_v19, 16  ;;  %v1631_v35 = vld [vmem:[%s1593_s26 + $0x14] ss:$0 sps:$4 sm:$0x33]  }
  0x15   : > { %1347 = vmatpush3.bf16.msra.mxu0 %v704_v6  ;;  %1348 = vmatprep.mubr.msk.bf16.mxu0 %vm1531_vm1, %v1530_v1  ;;  %v680_v22 = vshll.u32 %v1605_v16, 16  ;;  %v493_v28 = vshrl.u32 %v1191_v12, 16  ;;  %v496_v29 = vshll.u32 %v1191_v12, 16  ;;  %v501_v36 = vshrl.u32 %v1192_v15, 16  ;;  %v473_v57 = vld [vmem:[%s1593_s26 + $0x14] sm:$0x1] }
  0x16   : > { %v678_v24 = vrot.slane %v676_v18, 1  ;;  %1360 = vmatprep.subr.bf16.mxu0 %v1530_v1  ;;  %v222_v25 = vshrl.u32 %v1615_v21, 16  ;;  %v224_v26 = vshll.u32 %v1615_v21, 16  ;;  %v231_v32 = vrot.slane %v229_v23, 1  ;;  %v767_v7 = vld [vmem:[%s1593_s26 + $0x4] sm:$0x8] }
  0x17   : > { %v682_v34 = vrot.slane %v680_v22, 1  ;;  %v504_v37 = vshll.u32 %v1192_v15, 16  ;;  %v233_v39 = vshrl.u32 %v1612_v19, 16  ;;  %v237_v40 = vshll.u32 %v1628_v30, 16  ;;  %v1669_v9 = vld [vmem:[%s1593_s26 + $0x8] sm:$0xf] }
  0x18   : > { %v226_v31 = vrot.slane %v224_v26, 1  ;;  %v679_v33 = vor.u32 %v678_v24, %v674_v20  ;;  %v495_v42 = vrot.slane %v493_v28, 3  ;;  %v498_v43 = vrot.slane %v496_v29, 4  ;;  %v1672_v10 = vld [vmem:[%s1593_s26 + $0xc] sm:$0xf] }
  0x19   : > { %v684_v47 = vshrl.u32 %v1605_v16, 16  ;;  %v687_v48 = vshll.u32 %v1631_v35, 16  ;;  %v503_v50 = vrot.slane %v501_v36, 3  ;;  %v506_v51 = vrot.slane %v504_v37, 4  ;;  %v1184_v20 = vld [vmem:[%s1822_s1 + $0x8] sm:$0xf] }
  0x1a   : > { %v227_v38 = vor.u32 %v226_v31, %v222_v25  ;;  %v683_v46 = vsel %vm220_vm3, %v679_v33, %v682_v34  ;;  %v235_v52 = vor.u32 %v233_v39, %v231_v32  ;;  %v239_v53 = vrot.slane %v237_v40, 1  ;;  %v1696_v24 = vld [vmem:[%s1593_s26 + $0x14] sm:$0xf]  ;;  %v772_v25 = vld [vmem:[%s1593_s26 + $0x18] sm:$0x1] }
  0x1b   : > { %v686_v54 = vor.u32 %v684_v47, %v682_v34  ;;  %v689_v55 = vrot.slane %v687_v48, 1  ;;  %v499_v56 = vor.u32 %v498_v43, %v495_v42  ;;  %v507_v59 = vor.u32 %v506_v51, %v503_v50  ;;  %v1215_v26 = vld [vmem:[%s1822_s1 + $0x1c] sm:$0xf]  ;;  %v1517_v50 = vld [vmem:[%s1593_s26 + $0x10] ss:$0 sps:$4 sm:$0x77]  }
  0x1c   : > { %v232_v45 = vsel %vm220_vm3, %v227_v38, %v231_v32  ;;  %v240_v58 = vsel %vm220_vm3, %v235_v52, %v239_v53  ;;  %v1193_v60 = vcombine.low %v1601_v11, %v473_v57  ;;  %v241_v63 = vshrl.u32 %v1628_v30, 16  ;;  %v1675_v11 = vld [vmem:[%s1593_s26 + $0x10] sm:$0xf] }
  0x1d   : > { %1279 = vmatmul.mubr.msk.bf16.vlgmr.msra.gmra.mrb[0].mxu1 %vm244_vm2, %v232_v45  ;;  %v690_v61 = vsel %vm220_vm3, %v686_v54, %v689_v55  ;;  %v1657_v62 = vsel %vm491_vm4, %v499_v56, %v507_v59  ;;  %v691_v4 = vshrl.u32 %v1631_v35, 16  ;;  %v1209_v15 = vcombine.low %v767_v7, %v1669_v9 }
  0x1e   : > { %1291 = vmatpush3.bf16.msra.mxu1 %v321_v44  ;;  %1282 = vmatprep.mubr.msk.bf16.mxu1 %vm1531_vm1, %v1530_v1  ;;  %v510_v0 = vshrl.u32 %v1193_v60, 16  ;;  %v513_v3 = vshll.u32 %v1193_v60, 16  ;;  %v243_v8 = vor.u32 %v241_v63, %v239_v53  ;;  %v1210_v18 = vcombine.low %v1672_v10, %v1675_v11 }
  0x1f   : > { %1304 = vmatprep.subr.bf16.mxu1 %v1530_v1  ;;  %v693_v13 = vor.u32 %v691_v4, %v689_v55  ;;  %v791_v22 = vrot.slane %v1209_v15, 3  ;;  %v405_v27 = vsel %vm254_vm0, %v1184_v20, 0  ;;  %v1211_v29 = vcombine.low %v1696_v24, %v772_v25  ;;  %v1226_v4 = vld [vmem:[%s1823_s2] ss:$0 sm:$0xff] }
  0x20   : > { %1349 = vmatmul.mubr.msk.bf16.vlgmr.msra.gmra.mrb[0].mxu0 %vm244_vm2, %v683_v46  ;;  %v512_v5 = vrot.slane %v510_v0, 3  ;;  %v515_v6 = vrot.slane %v513_v3, 4  ;;  %v792_v23 = vrot.slane %v1210_v18, 3  ;;  %v907_v31 = vsel %vm254_vm0, %v1215_v26, 0 }
  0x21   : > { %1352 = vmatprep.mubr.msk.bf16.mxu0 %vm1531_vm1, %v1530_v1  ;;  %1361 = vmatpush3.bf16.msra.mxu0 %v806_v49  ;;  %v794_v32 = vrot.slane %v1211_v29, 3  ;;  %v872_v34 = vshrl.u32 %v1209_v15, 16  ;;  %v875_v36 = vshll.u32 %v1209_v15, 16  ;;  %v880_v37 = vshrl.u32 %v1210_v18, 16 }
  0x22   : > { %1374 = vmatprep.subr.bf16.mxu0 %v1530_v1  ;;  %v1677_v12 = vor.u32 %v515_v6, %v512_v5  ;;  %v793_v28 = vsel %vm790_vm5, %v791_v22, %v792_v23  ;;  %v883_v38 = vshll.u32 %v1210_v18, 16  ;;  %v391_v45 = vrot.slane %v1612_v19, 1 }
  0x23   : > { %v795_v33 = vsel %vm790_vm5, %v792_v23, %v794_v32  ;;  %v874_v40 = vrot.slane %v872_v34, 3  ;;  %v877_v41 = vrot.slane %v875_v36, 4  ;;  %v882_v42 = vrot.slane %v880_v37, 3 }
  0x24   : > { %v1681_v14 = vsel %vm491_vm4, %v507_v59, %v1677_v12  ;;  %v885_v43 = vrot.slane %v883_v38, 4  ;;  %v889_v48 = vshrl.u32 %v1211_v29, 16  ;;  %v393_v56 = vrot.slane %v1517_v50, 1  ;;  %v1109_v50 = vld [vmem:[%s1806_s22 + $0x10] sm:$0x3] }
  0x25   : > { %1283 = vmatmul.mubr.msk.bf16.gmra.mrb[4].mxu1 %vm244_vm2, %v240_v58  ;;  %v878_v46 = vor.u32 %v877_v41, %v874_v40  ;;  %v1220_v60 = vcombine.low %v1669_v9, %v1672_v10 }
  0x26   : > { %1286 = vmatprep.mubr.msk.bf16.mxu1 %vm1531_vm1, %v1530_v1  ;;  %v886_v47 = vor.u32 %v885_v43, %v882_v42  ;;  %v891_v53 = vrot.slane %v889_v48, 3  ;;  %v394_v58 = vsel %vm389_vm6, %v391_v45, %v393_v56 }
  0x28   : > { %1353 = vmatmul.mubr.msk.bf16.gmra.mrb[4].mxu0 %vm244_vm2, %v690_v61  ;;  %v887_v52 = vsel %vm491_vm4, %v878_v46, %v886_v47  ;;  %v1221_v61 = vcombine.low %v1675_v11, %v1696_v24 }
  0x29   : > { %1356 = vmatprep.mubr.msk.bf16.mxu0 %vm1531_vm1, %v1530_v1 }
  0x2d   : > { %1287 = vmatmul.mubr.msk.bf16.gmra.mrb[8].mxu1 %vm244_vm2, %v243_v8 }
  0x2e   : > { %1292 = vmatprep.mubr.msk.bf16.mxu1 %vm1531_vm1, %v1530_v1 }
  0x30   : > { %1357 = vmatmul.mubr.msk.bf16.gmra.mrb[8].mxu0 %vm244_vm2, %v693_v13 }
  0x31   : > { %1362 = vmatprep.mubr.msk.bf16.mxu0 %vm1531_vm1, %v1530_v1 }
  0x35   : > { %1293 = vmatmul.mubr.msk.bf16.vlgmr.msra.gmra.mrb[0].mxu1 %vm244_vm2, %v1615_v21  ;;  %v379_v21 = vld [vmem:[%s1593_s26] sm:$0xe] }
  0x36   : > { %1305 = vmatpush3.bf16.msra.mxu1 %v405_v27  ;;  %1296 = vmatprep.mubr.msk.bf16.mxu1 %vm1531_vm1, %v1530_v1  ;;  %v1185_v39 = vcombine.low %v379_v21, %v1608_v17  ;;  %v1190_v17 = vld [vmem:[%s1822_s1 + $0xc] sm:$0xf] }
  0x37   : > { %1318 = vmatprep.subr.bf16.mxu1 %v1530_v1  ;;  %v528_v51 = vsel %vm254_vm0, %v1190_v17, 0 }
  0x38   : > { %1363 = vmatmul.mubr.msk.bf16.vlgmr.msra.gmra.mrb[0].mxu0 %vm244_vm2, %v793_v28  ;;  %v390_v44 = vrot.slane %v1185_v39, 1 }
  0x39   : > { %1366 = vmatprep.mubr.msk.bf16.mxu0 %vm1531_vm1, %v1530_v1  ;;  %1375 = vmatpush3.bf16.msra.mxu0 %v907_v31 }
  0x3a   : > { %1388 = vmatprep.subr.bf16.mxu0 %v1530_v1  ;;  %v392_v49 = vsel %vm389_vm6, %v390_v44, %v391_v45 }
  0x3d   : > { %1297 = vmatmul.mubr.msk.bf16.gmra.mrb[4].mxu1 %vm244_vm2, %v1612_v19  ;;  %v1219_v19 = vld [vmem:[%s1822_s1 + $0x20] sm:$0xf] }
  0x3e   : > { %1300 = vmatprep.mubr.msk.bf16.mxu1 %vm1531_vm1, %v1530_v1  ;;  %v988_v55 = vsel %vm254_vm0, %v1219_v19, 0 }
  0x40   : > { %1367 = vmatmul.mubr.msk.bf16.gmra.mrb[4].mxu0 %vm244_vm2, %v795_v33 }
  0x41   : > { %1370 = vmatprep.mubr.msk.bf16.mxu0 %vm1531_vm1, %v1530_v1 }
  0x45   : > { %1301 = vmatmul.mubr.msk.bf16.gmra.mrb[8].mxu1 %vm244_vm2, %v1628_v30  ;;  %v892_v30 = vshll.u32 %v1211_v29, 16 }
  0x46   : > { %1306 = vmatprep.mubr.msk.bf16.mxu1 %vm1531_vm1, %v1530_v1 }
  0x47   : > { %v894_v54 = vrot.slane %v892_v30, 4 }
  0x48   : > { %1371 = vmatmul.mubr.msk.bf16.gmra.mrb[8].mxu0 %vm244_vm2, %v794_v32 }
  0x49   : > { %1376 = vmatprep.mubr.msk.bf16.mxu0 %vm1531_vm1, %v1530_v1  ;;  %v895_v57 = vor.u32 %v894_v54, %v891_v53 }
  0x4b   : > { %v896_v59 = vsel %vm491_vm4, %v886_v47, %v895_v57 }
  0x4d   : > { %1307 = vmatmul.mubr.msk.bf16.vlgmr.msra.gmra.mrb[0].mxu1 %vm244_vm2, %v392_v49 }
  0x4e   : > { %1319 = vmatpush3.bf16.msra.mxu1 %v528_v51  ;;  %1310 = vmatprep.mubr.msk.bf16.mxu1 %vm1531_vm1, %v1530_v1 }
  0x4f   : > { %1402 = vmatprep.subr.bf16.mxu1 %v1530_v1 }
  0x50   : > { %1377 = vmatmul.mubr.msk.bf16.vlgmr.msra.gmra.mrb[0].mxu0 %vm244_vm2, %v887_v52 }
  0x51   : > { %1380 = vmatprep.mubr.msk.bf16.mxu0 %vm1531_vm1, %v1530_v1  ;;  %1389 = vmatpush3.bf16.msra.mxu0 %v988_v55 }
  0x55   : > { %1311 = vmatmul.mubr.msk.bf16.gmra.mrb[4].mxu1 %vm244_vm2, %v394_v58 }
  0x56   : > { %1314 = vmatprep.mubr.msk.bf16.mxu1 %vm1531_vm1, %v1530_v1 }
  0x58   : > { %1381 = vmatmul.mubr.msk.bf16.gmra.mrb[4].mxu0 %vm244_vm2, %v896_v59 }
  0x59   : > { %1384 = vmatprep.mubr.msk.bf16.mxu0 %vm1531_vm1, %v1530_v1 }
  0x5d   : > { %1315 = vmatmul.mubr.msk.bf16.gmra.mrb[8].mxu1 %vm244_vm2, %v393_v56 }
  0x5e   : > { %1320 = vmatprep.mubr.msk.bf16.mxu1 %vm1531_vm1, %v1530_v1 }
  0x60   : > { %1385 = vmatmul.mubr.msk.bf16.gmra.mrb[8].mxu0 %vm244_vm2, %v895_v57 }
  0x61   : > { %1390 = vmatprep.mubr.msk.bf16.mxu0 %vm1531_vm1, %v1530_v1 }
  0x65   : > { %1321 = vmatmul.mubr.msk.bf16.vlgmr.msra.gmra.mrb[0].mxu1 %vm244_vm2, %v1657_v62 }
  0x66   : > { %1403 = vmatpush3.bf16.msra.mxu1 %v1570_v2  ;;  %1324 = vmatprep.mubr.msk.bf16.mxu1 %vm1531_vm1, %v1530_v1  ;;  %v1521_v2 = vld [vmem:[%s1593_s26 + $0x18] ss:$0 sps:$4 sm:$0x33]  }
  0x68   : > { %1391 = vmatmul.mubr.msk.bf16.vlgmr.msra.gmra.mrb[0].mxu0 %vm244_vm2, %v1220_v60 }
  0x69   : > { %1394 = vmatprep.mubr.msk.bf16.mxu0 %vm1531_vm1, %v1530_v1 }
  0x6d   : > { %1325 = vmatmul.mubr.msk.bf16.gmra.mrb[4].mxu1 %vm244_vm2, %v1681_v14 }
  0x6e   : > { %1328 = vmatprep.mubr.msk.bf16.mxu1 %vm1531_vm1, %v1530_v1 }
  0x70   : > { %1395 = vmatmul.mubr.msk.bf16.gmra.mrb[4].mxu0 %vm244_vm2, %v1221_v61 }
  0x71   : > { %1398 = vmatprep.mubr.msk.bf16.mxu0 %vm1531_vm1, %v1530_v1 }
  0x75   : > { %1329 = vmatmul.mubr.msk.bf16.gmra.mrb[8].mxu1 %vm244_vm2, %v1677_v12 }
  0x76   : > { %1338 = vmatprep.mubr.msk.bf16.mxu1 %vm1531_vm1, %v1530_v1 }
  0x78   : > { %1399 = vmatmul.mubr.msk.bf16.gmra.mrb[8].mxu0 %vm244_vm2, %v1521_v2 }
  0x7d   : > { %1339 = vmatmul.mubr.msk.bf16.vlgmr.msra.gmra.mrb[4].mxu1 %vm244_vm2, %v1605_v16  ;;  %v1227_v16 = vld [vmem:[%s1824_s3] ss:$0 sm:$0xff] }
  0x7e   : > { %1342 = vmatprep.mubr.msk.bf16.mxu1 %vm1531_vm1, %v1530_v1 }
  0x85   : > { %1343 = vmatmul.mubr.msk.bf16.gmra.mrb[8].mxu1 %vm244_vm2, %v1631_v35 }
 0x138   : > { %v564_v62 = vpop.f32.mrb[0].mxu1 }
 0x139   : > { %v1322_v63 = vpop.f32.mrb[1].mxu1 }
 0x13a   : > { %v567_v0 = vpop.f32.mrb[2].mxu1 }
 0x13b   : > { %v1024_v3 = vpop.f32.mrb[0].mxu0  ;;  %v1323_v5 = vpop.f32.mrb[3].mxu1 }
 0x13c   : > { %v1404_v6 = vadd.f32 %v1024_v3, %v564_v62  ;;  %v1392_v7 = vpop.f32.mrb[1].mxu0 }
 0x13d   : > { %v1027_v8 = vpop.f32.mrb[2].mxu0 }
 0x13e   : > { %v1058_v1 = vmul.f32 %v1404_v6, %v1226_v4  ;;  %v1405_v9 = vadd.f32 %v1027_v8, %v567_v0  ;;  %v1393_v10 = vpop.f32.mrb[3].mxu0 }
 0x140   : > { %v1070_v35 = vadd.f32 %v1227_v16, %v1058_v1  ;;  %v1059_v11 = vmul.f32 %v1405_v9, %v1226_v4 }
 0x142   : > { %v1075_v12 = vmax.f32 %v1070_v35, 0.0  ;;  %v1071_v13 = vadd.f32 %v1227_v16, %v1059_v11 }
 0x143   : > { %v1032_v14 = vpop.f32.mrb[4].mxu0 }
 0x144   : > { %v1235_v15 = vpack.c.bf16 %v1075_v12, %v1075_v12  ;;  %v1076_v18 = vmax.f32 %v1071_v13, 0.0  ;;  %v1396_v20 = vpop.f32.mrb[5].mxu0 }
 0x145   : > { %v1035_v22 = vpop.f32.mrb[6].mxu0 }
 0x146   : > { %1102 = vst.msk [vmem:[%s1806_s22] sm:$0xf] %vm1101_vm7, %v1235_v15  ;;  %v1236_v23 = vpack.c.bf16 %v1076_v18, %v1076_v18  ;;  %v1397_v24 = vpop.f32.mrb[7].mxu0 }
 0x148   : > { %1103 = vst.msk [vmem:[%s1806_s22 + $0x4] sm:$0xf] %vm1101_vm7, %v1236_v23 }
 0x14b   : > { %v1040_v25 = vpop.f32.mrb[8].mxu0 }
 0x14c   : > { %v1400_v26 = vpop.f32.mrb[9].mxu0 }
 0x14d   : > { %v1043_v27 = vpop.f32.mrb[10].mxu0 }
 0x14e   : > { %v1401_v28 = vpop.f32.mrb[11].mxu0 }
 0x150   : > { %v653_v29 = vpop.f32.mrb[4].mxu1 }
 0x151   : > { %v1406_v31 = vadd.f32 %v1032_v14, %v653_v29  ;;  %v1340_v32 = vpop.f32.mrb[5].mxu1 }
 0x152   : > { %v656_v33 = vpop.f32.mrb[6].mxu1 }
 0x153   : > { %v1060_v21 = vmul.f32 %v1406_v31, %v1226_v4  ;;  %v1407_v34 = vadd.f32 %v1035_v22, %v656_v33  ;;  %v1341_v36 = vpop.f32.mrb[7].mxu1 }
 0x155   : > { %v1072_v37 = vadd.f32 %v1227_v16, %v1060_v21  ;;  %v1061_v38 = vmul.f32 %v1407_v34, %v1226_v4 }
 0x157   : > { %v1077_v39 = vmax.f32 %v1072_v37, 0.0  ;;  %v1073_v40 = vadd.f32 %v1227_v16, %v1061_v38 }
 0x158   : > { %v661_v41 = vpop.f32.mrb[8].mxu1 }
 0x159   : > { %v1237_v42 = vpack.c.bf16 %v1077_v39, %v1077_v39  ;;  %v1078_v43 = vmax.f32 %v1073_v40, 0.0  ;;  %v1408_v44 = vadd.f32 %v1040_v25, %v661_v41  ;;  %v1344_v45 = vpop.f32.mrb[9].mxu1 }
 0x15a   : > { %v664_v17 = vpop.f32.mrb[10].mxu1 }
 0x15b   : > { %1104 = vst.msk [vmem:[%s1806_s22 + $0x8] sm:$0xf] %vm1101_vm7, %v1237_v42  ;;  %v1238_v46 = vpack.c.bf16 %v1078_v43, %v1078_v43  ;;  %v1062_v47 = vmul.f32 %v1408_v44, %v1226_v4  ;;  %v1345_v48 = vpop.f32.mrb[11].mxu1 }
 0x15d   : > { %1105 = vst.msk [vmem:[%s1806_s22 + $0xc] sm:$0xf] %vm1101_vm7, %v1238_v46  ;;  %v1074_v30 = vadd.f32 %v1227_v16, %v1062_v47 }
 0x15f   : > { %v1079_v49 = vmax.f32 %v1074_v30, 0.0 }
 0x161   : > { %v1239_v19 = vpack.c.bf16 %v1079_v49, %v1079_v49 }
 0x163   : > { %v1110_v51 = vsel %vm1108_vm10, %v1239_v19, %v1109_v50 }
 0x164   : > { %1111 = vst [vmem:[%s1806_s22 + $0x10] sm:$0x3] %v1110_v51 }
 0x165 PF: > { %s14_s15 = sadd.s32 1, %s1528_s15  }
 0x166   : > { %p11_p4 = scmp.ge.s32.totalorder %s14_s15, 4  }
 0x168   :  { %13 = sbr.rel (!%p11_p4) target bundleno = 1 (0x1), region = 74 }

// kernel: pspnet_forward.10
= control target key start
LH: loop header
LB: loop body
LE: loop exit
PB: predicated region body
PF: predicated region fallthrough
CT: control target
= control target key end

     0   :  { %s479_s15 = smov 0   ;;  %s517_s0 = inlined_call_operand.vmem [shape: bf16[2,9,72], index: 0, kind: input, shape index: {}]   ;;  %s518_s1 = inlined_call_operand.vmem [shape: bf16[1,72,16], index: 1, kind: input, shape index: {}]   ;;  %s519_s2 = inlined_call_operand.vmem [shape: f32[1,16], index: 2, kind: input, shape index: {}]   ;;  %s520_s3 = inlined_call_operand.vmem [shape: f32[1,16], index: 3, kind: input, shape index: {}]   ;;  %s521_s4 = inlined_call_operand.vmem [shape: bf16[2,9,16], index: 4, kind: output, shape index: {}]  }
   0x1 LB: > { %s382_s16 = sadd.s32 4294967295, %s450_s15   ;;  %p386_p0 = scmp.ge.s32.totalorder %s450_s15, 1  ;;  %s450_s15 = sphi %s479_s15, %s14_s15  }
   0x2   : > { %p162_p1 = scmp.lt.s32.totalorder %s450_s15, 3 }
   0x4   : > { %p163_p2 = pnand %p386_p0, %p162_p1 }
   0x5   : > { %v438_v0 = vld [vmem:[%s518_s1] sm:$0xff] (!%p163_p2)   ;;  %v452_v1 = vmov (!%p163_p2), 0.0   ;;  %v439_v2 = vld [vmem:[%s518_s1 + $0x8] sm:$0xff] (!%p163_p2)   ;;  %vm453_vm0 = vmmov (!%p163_p2), 0   ;;  %p188_p3 = scmp.lt.s32.totalorder (!%p163_p2), %s382_s16, 1  ;;  %v440_v3 = vld [vmem:[%s518_s1 + $0x10] sm:$0xff] (!%p163_p2)  }
   0x6   : > { %166 = sbr.rel (%p163_p2) target bundleno = 250 (0xfa), region = 36  ;;  %414 = vmatprep.subr.bf16.mxu0 (!%p163_p2), %v452_v1  ;;  %424 = vmatprep.mubr.msk.bf16.mxu0 (!%p163_p2), %vm453_vm0, %v452_v1  ;;  %v441_v4 = vld [vmem:[%s518_s1 + $0x18] sm:$0xff] (!%p163_p2)   ;;  %v442_v5 = vld [vmem:[%s518_s1 + $0x20] ss:$0 sps:$4 sm:$0xff] (!%p163_p2)   ;;  %vm246_vm1 = vcmask (!%p163_p2), 1043456   ;;  %vm242_vm2 = vcmask (!%p163_p2), 588800  }
   0x7   : > { %415 = vmatpush3.bf16.msra.mxu0 (!%p163_p2), %v438_v0  ;;  %v248_v6 = vsel (!%p163_p2), %vm246_vm1, %v442_v5, 0  ;;  %v398_v8 = vld [vmem:[%s519_s2] ss:$0 sm:$0xff] (!%p163_p2)  ;;  %vm321_vm3 = vcmask (!%p163_p2), 122880   ;;  %vm322_vm4 = vsmask.f32 (!%p163_p2), 256 }
   0x8   : > { %416 = vmatprep.subr.bf16.mxu0 (!%p163_p2), %v452_v1  ;;  %v399_v10 = vld [vmem:[%s520_s3] ss:$0 sm:$0xff] (!%p163_p2)  ;;  %vm319_vm5 = vcmask (!%p163_p2), 125952   ;;  %vm323_vm6 = vmand (!%p163_p2), %vm321_vm3, %vm322_vm4 }
   0xb   : > { %417 = vmatpush3.bf16.msra.mxu0 (!%p163_p2), %v439_v2 }
   0xc   : > { %418 = vmatprep.subr.bf16.mxu0 (!%p163_p2), %v452_v1 }
   0xd   : > { %s523_s16 = smov (!%p188_p3, %s382_s16), 1 }
   0xe   : > { %s404_s23 = sshll.u32 %s523_s16, 3 }
   0xf   : > { %s192_s26 = scalar_lea.vmem %s517_s0, %s404_s23  ;;  %419 = vmatpush3.bf16.msra.mxu0 %v440_v3  ;;  %s197_s11 = scalar_lea.vmem %s521_s4, %s404_s23 }
  0x10   : > { %420 = vmatprep.subr.bf16.mxu0 %v452_v1  ;;  %v443_v7 = vld [vmem:[%s192_s26] sm:$0x1f]  }
  0x11   : > { %v324_v21 = vld [vmem:[%s197_s11 + $0x4] sm:$0x1] }
  0x13   : > { %421 = vmatpush3.bf16.msra.mxu0 %v441_v4 }
  0x14   : > { %422 = vmatprep.subr.bf16.mxu0 %v452_v1 }
  0x17   : > { %423 = vmatpush3.bf16.msra.mxu0 %v248_v6 }
  0x1a   : > { %425 = vmatmul.mubr.msk.bf16.vlgmr.msra.gmra.mrb[0].mxu0 %vm242_vm2, %v443_v7 }
  0xed   : > { %v284_v9 = vpop.f32.mrb[0].mxu0 }
  0xee   : > { %v298_v11 = vmul.f32 %v398_v8, %v284_v9  ;;  %v426_v12 = vpop.f32.mrb[1].mxu0 }
  0xef   : > { %v287_v13 = vpop.f32.mrb[2].mxu0 }
  0xf0   : > { %v307_v14 = vadd.f32 %v399_v10, %v298_v11  ;;  %v299_v15 = vmul.f32 %v398_v8, %v287_v13  ;;  %v427_v16 = vpop.f32.mrb[3].mxu0 }
  0xf2   : > { %v309_v17 = vmax.f32 %v307_v14, 0.0  ;;  %v308_v18 = vadd.f32 %v399_v10, %v299_v15 }
  0xf4   : > { %v406_v19 = vpack.c.bf16 %v309_v17, %v309_v17  ;;  %v310_v20 = vmax.f32 %v308_v18, 0.0 }
  0xf6   : > { %320 = vst.msk [vmem:[%s197_s11] sm:$0xf] %vm319_vm5, %v406_v19  ;;  %v407_v22 = vpack.c.bf16 %v310_v20, %v310_v20 }
  0xf8   : > { %v325_v23 = vsel %vm323_vm6, %v407_v22, %v324_v21 }
  0xf9   : > { %326 = vst [vmem:[%s197_s11 + $0x4] sm:$0x1] %v325_v23 }
  0xfa PF: > { %s14_s15 = sadd.s32 1, %s450_s15  }
  0xfb   : > { %p11_p4 = scmp.ge.s32.totalorder %s14_s15, 4  }
  0xfd   :  { %13 = sbr.rel (!%p11_p4) target bundleno = 1 (0x1), region = 66 }

// kernel: pspnet_forward.11
= control target key start
LH: loop header
LB: loop body
LE: loop exit
PB: predicated region body
PF: predicated region fallthrough
CT: control target
= control target key end

     0   :  { %s1255_s15 = smov 0   ;;  %s1363_s0 = inlined_call_operand.vmem [shape: bf16[2,56,16], index: 0, kind: input, shape index: {}]   ;;  %s1364_s1 = inlined_call_operand.vmem [shape: bf16[9,16,16], index: 1, kind: input, shape index: {}]   ;;  %s1365_s2 = inlined_call_operand.vmem [shape: f32[1,16], index: 2, kind: input, shape index: {}]   ;;  %s1366_s3 = inlined_call_operand.vmem [shape: f32[1,16], index: 3, kind: input, shape index: {}]   ;;  %s1367_s4 = inlined_call_operand.vmem [shape: bf16[2,21,16], index: 4, kind: output, shape index: {}]  }
   0x1 LB: > { %s995_s16 = sadd.s32 4294967295, %s1228_s15   ;;  %p999_p0 = scmp.ge.s32.totalorder %s1228_s15, 1  ;;  %s1228_s15 = sphi %s1255_s15, %s14_s15  }
   0x2   : > { %p162_p1 = scmp.lt.s32.totalorder %s1228_s15, 3 }
   0x4   : > { %p163_p2 = pnand %p999_p0, %p162_p1 }
   0x5   : > { %v1195_v0 = vld [vmem:[%s1364_s1 + $0x20] sm:$0xff] (!%p163_p2)   ;;  %p188_p3 = scmp.lt.s32.totalorder (!%p163_p2), %s995_s16, 1  ;;  %v1196_v1 = vld [vmem:[%s1364_s1 + $0x8] sm:$0xff] (!%p163_p2)   ;;  %vm227_vm0 = vcmask (!%p163_p2), 130048   ;;  %v1207_v11 = vld [vmem:[%s1364_s1 + $0x30] sm:$0xff] (!%p163_p2)   ;;  %vm217_vm1 = vcmask (!%p163_p2), 1046528  }
   0x6   : > { %166 = sbr.rel (%p163_p2) target bundleno = 295 (0x127), region = 36  ;;  %1124 = vmatprep.subr.bf16.mxu0 (!%p163_p2), %v1195_v0  ;;  %v1201_v2 = vld [vmem:[%s1364_s1 + $0x28] sm:$0xff] (!%p163_p2)   ;;  %1100 = vmatprep.subr.bf16.mxu1 (!%p163_p2), %v1196_v1  ;;  %v1205_v3 = vld [vmem:[%s1364_s1] sm:$0xff] (!%p163_p2)   ;;  %v1210_v22 = vld [vmem:[%s1364_s1 + $0x10] sm:$0xff] (!%p163_p2)   ;;  %vm365_vm2 = vcmask (!%p163_p2), 1045504   ;;  %vm449_vm3 = vcmask (!%p163_p2), 1044480  }
   0x7   : > { %1125 = vmatpush3.bf16.msra.mxu0 (!%p163_p2), %v1195_v0  ;;  %1101 = vmatpush3.bf16.msra.mxu1 (!%p163_p2), %v1196_v1  ;;  %v1213_v36 = vld [vmem:[%s1364_s1 + $0x38] sm:$0xff] (!%p163_p2)   ;;  %v1219_v53 = vld [vmem:[%s1364_s1 + $0x40] sm:$0xff] (!%p163_p2)   ;;  %vm934_vm4 = vcmask (!%p163_p2), 124928   ;;  %vm935_vm5 = vsmask.f32 (!%p163_p2), 2304  ;;  %vm931_vm7 = vcmask (!%p163_p2), 125952  }
   0x8   : > { %1130 = vmatprep.subr.bf16.mxu0 (!%p163_p2), %v1201_v2  ;;  %1106 = vmatprep.subr.bf16.mxu1 (!%p163_p2), %v1205_v3  ;;  %v1216_v45 = vld [vmem:[%s1364_s1 + $0x18] sm:$0xff] (!%p163_p2)   ;;  %v1063_v0 = vld [vmem:[%s1365_s2] ss:$0 sm:$0xff] (!%p163_p2)  ;;  %vm936_vm6 = vmand (!%p163_p2), %vm934_vm4, %vm935_vm5 }
   0xd   : > { %s1369_s16 = smov (!%p188_p3, %s995_s16), 1 }
   0xe   : > { %s1185_s25 = smul.u32 28, %s1369_s16 }
   0xf   : > { %s1186_s17 = smul.u32 12, %s1369_s16 }
  0x10   : > { %s1281_s28 = scalar_lea.vmem %s1363_s0, %s1185_s25 }
  0x11   : > { %v1284_v4 = vld [vmem:[%s1281_s28 + $0x8] sm:$0xf]  ;;  %v1287_v5 = vld [vmem:[%s1281_s28 + $0xc] sm:$0xf]  ;;  %v200_v10 = vld [vmem:[%s1281_s28 + $0x4] sm:$0xf]  ;;  %s197_s22 = scalar_lea.vmem %s1367_s4, %s1186_s17 }
  0x12   : > { %v1030_v6 = vcombine.low %v1284_v4, %v1287_v5  ;;  %v587_v7 = vld [vmem:[%s1281_s28 + $0x8] sm:$0xe]  ;;  %v1202_v9 = vld [vmem:[%s1281_s28 + $0x10] ss:$0 sps:$4 sm:$0x77]  }
  0x13   : > { %v1037_v8 = vcombine.low %v587_v7, %v1287_v5  ;;  %v204_v12 = vld [vmem:[%s1281_s28] sm:$0xe]  ;;  %v1204_v15 = vld [vmem:[%s1281_s28 + $0x8] ss:$0 sps:$4 sm:$0xff]   ;;  %v1206_v16 = vld [vmem:[%s1281_s28 + $0x10] ss:$0 sps:$4 sm:$0xff]  }
  0x14   : > { %1126 = vmatprep.mubr.msk.bf16.mxu0 %vm227_vm0, %v1030_v6  ;;  %v1004_v14 = vcombine.low %v204_v12, %v200_v10  ;;  %v199_v17 = vld [vmem:[%s1281_s28] sm:$0xf]  ;;  %v219_v19 = vrot.slane %v1204_v15, 1  ;;  %v599_v20 = vrot.slane %v1206_v16, 1  ;;  %v664_v23 = vld [vmem:[%s1281_s28 + $0xc] sm:$0xc] }
  0x15   : > { %v598_v13 = vrot.slane %v1037_v8, 1  ;;  %1127 = vmatmul.mubr.msk.bf16.vlgmr.msra.gmra.mrb[0].mxu0 %vm227_vm0, %v1202_v9  ;;  %v1009_v21 = vcombine.low %v199_v17, %v200_v10  ;;  %v665_v24 = vld [vmem:[%s1281_s28 + $0x10] sm:$0xf]  ;;  %v666_v26 = vld [vmem:[%s1281_s28 + $0x14] sm:$0xf] }
  0x16   : > { %1131 = vmatpush3.bf16.msra.mxu0 %v1201_v2  ;;  %v218_v18 = vrot.slane %v1004_v14, 1  ;;  %v667_v27 = vld [vmem:[%s1281_s28 + $0x18] sm:$0x1]  ;;  %v1044_v28 = vcombine.low %v664_v23, %v665_v24  ;;  %v1214_v33 = vld [vmem:[%s1281_s28] sm:$0xfc]   ;;  %v1058_v57 = vcombine.low %v665_v24, %v666_v26 }
  0x17   : > { %1136 = vmatprep.subr.bf16.mxu0 %v1207_v11  ;;  %v600_v29 = vsel %vm217_vm1, %v598_v13, %v599_v20  ;;  %v1045_v30 = vcombine.low %v666_v26, %v667_v27  ;;  %v1215_v34 = vld [vmem:[%s1281_s28 + $0x8] sm:$0x1f]   ;;  %v747_v37 = vld [vmem:[%s1281_s28 + $0xc] sm:$0x8]  ;;  %v748_v38 = vld [vmem:[%s1281_s28 + $0x18] sm:$0x3] }
  0x18   : > { %v220_v25 = vsel %vm217_vm1, %v218_v18, %v219_v19  ;;  %1132 = vmatprep.mubr.msk.bf16.mxu0 %vm227_vm0, %v600_v29  ;;  %v681_v31 = vrot.slane %v1044_v28, 2  ;;  %v366_v39 = vrot.slane %v1214_v33, 2  ;;  %v367_v40 = vrot.slane %v1215_v34, 2  ;;  %v1209_v41 = vld [vmem:[%s1281_s28 + $0x8] ss:$0 sps:$4 sm:$0x77]  }
  0x19   : > { %1102 = vmatprep.mubr.msk.bf16.mxu1 %vm227_vm0, %v220_v25  ;;  %v682_v32 = vrot.slane %v1045_v30, 2  ;;  %v1051_v42 = vcombine.low %v747_v37, %v665_v24  ;;  %v1052_v43 = vcombine.low %v666_v26, %v748_v38  ;;  %v432_v46 = vld [vmem:[%s1281_s28 + $0x4] sm:$0x8]  ;;  %v435_v47 = vld [vmem:[%s1281_s28 + $0x10] sm:$0x3] }
  0x1a   : > { %1103 = vmatmul.mubr.msk.bf16.vlgmr.msra.gmra.mrb[0].mxu1 %vm227_vm0, %v219_v19  ;;  %v368_v44 = vsel %vm365_vm2, %v366_v39, %v367_v40  ;;  %v1023_v50 = vcombine.low %v432_v46, %v1284_v4  ;;  %v1024_v51 = vcombine.low %v1287_v5, %v435_v47  ;;  %v1221_v58 = vld [vmem:[%s1281_s28 + $0x18] ss:$0 sps:$4 sm:$0x77]   ;;  %v937_v14 = vld [vmem:[%s197_s22 + $0x8] sm:$0x7] }
  0x1b   : > { %1107 = vmatpush3.bf16.msra.mxu1 %v1205_v3  ;;  %1108 = vmatprep.mubr.msk.bf16.mxu1 %vm227_vm0, %v1009_v21  ;;  %v683_v35 = vsel %vm365_vm2, %v681_v31, %v682_v32  ;;  %v758_v48 = vrot.slane %v1051_v42, 3  ;;  %v759_v49 = vrot.slane %v1052_v43, 3  ;;  %v1064_v3 = vld [vmem:[%s1366_s3] ss:$0 sm:$0xff] }
  0x1c   : > { %1112 = vmatprep.subr.bf16.mxu1 %v1210_v22  ;;  %v450_v54 = vrot.slane %v1023_v50, 3  ;;  %v451_v55 = vrot.slane %v1024_v51, 3 }
  0x1d   : > { %v760_v52 = vsel %vm449_vm3, %v758_v48, %v759_v49 }
  0x1e   : > { %v452_v56 = vsel %vm449_vm3, %v450_v54, %v451_v55 }
  0x21   : > { %1133 = vmatmul.mubr.msk.bf16.vlgmr.msra.gmra.mrb[0].mxu0 %vm227_vm0, %v599_v20 }
  0x22   : > { %1137 = vmatpush3.bf16.msra.mxu0 %v1207_v11  ;;  %1138 = vmatprep.mubr.msk.bf16.mxu0 %vm227_vm0, %v683_v35 }
  0x23   : > { %1142 = vmatprep.subr.bf16.mxu0 %v1213_v36 }
  0x26   : > { %1109 = vmatmul.mubr.msk.bf16.vlgmr.msra.gmra.mrb[0].mxu1 %vm227_vm0, %v1209_v41 }
  0x27   : > { %1113 = vmatpush3.bf16.msra.mxu1 %v1210_v22  ;;  %1114 = vmatprep.mubr.msk.bf16.mxu1 %vm227_vm0, %v368_v44 }
  0x28   : > { %1118 = vmatprep.subr.bf16.mxu1 %v1216_v45 }
  0x2d   : > { %1139 = vmatmul.mubr.msk.bf16.vlgmr.msra.gmra.mrb[0].mxu0 %vm227_vm0, %v682_v32 }
  0x2e   : > { %1143 = vmatpush3.bf16.msra.mxu0 %v1213_v36  ;;  %1144 = vmatprep.mubr.msk.bf16.mxu0 %vm227_vm0, %v760_v52 }
  0x2f   : > { %1148 = vmatprep.subr.bf16.mxu0 %v1219_v53 }
  0x32   : > { %1115 = vmatmul.mubr.msk.bf16.vlgmr.msra.gmra.mrb[0].mxu1 %vm227_vm0, %v367_v40 }
  0x33   : > { %1119 = vmatpush3.bf16.msra.mxu1 %v1216_v45  ;;  %1120 = vmatprep.mubr.msk.bf16.mxu1 %vm227_vm0, %v452_v56 }
  0x39   : > { %1145 = vmatmul.mubr.msk.bf16.vlgmr.msra.gmra.mrb[0].mxu0 %vm227_vm0, %v759_v49 }
  0x3a   : > { %1149 = vmatpush3.bf16.msra.mxu0 %v1219_v53  ;;  %1150 = vmatprep.mubr.msk.bf16.mxu0 %vm227_vm0, %v1058_v57 }
  0x3e   : > { %1121 = vmatmul.mubr.msk.bf16.vlgmr.msra.gmra.mrb[0].mxu1 %vm227_vm0, %v451_v55 }
  0x45   : > { %1151 = vmatmul.mubr.msk.bf16.vlgmr.msra.gmra.mrb[0].mxu0 %vm227_vm0, %v1221_v58 }
 0x111   : > { %v1122_v59 = vpop.f32.mrb[0].mxu1 }
 0x112   : > { %v499_v60 = vpop.f32.mrb[1].mxu1 }
 0x113   : > { %v1123_v61 = vpop.f32.mrb[2].mxu1 }
 0x114   : > { %v502_v62 = vpop.f32.mrb[3].mxu1 }
 0x118   : > { %v1152_v63 = vpop.f32.mrb[0].mxu0 }
 0x119   : > { %v1154_v1 = vadd.f32 %v1152_v63, %v1122_v59  ;;  %v878_v2 = vpop.f32.mrb[1].mxu0 }
 0x11a   : > { %v1155_v4 = vadd.f32 %v878_v2, %v499_v60  ;;  %v1153_v5 = vpop.f32.mrb[2].mxu0 }
 0x11b   : > { %v904_v6 = vmul.f32 %v1154_v1, %v1063_v0  ;;  %v881_v7 = vpop.f32.mrb[3].mxu0 }
 0x11c   : > { %v902_v8 = vmul.f32 %v1155_v4, %v1063_v0  ;;  %v1156_v9 = vadd.f32 %v881_v7, %v502_v62 }
 0x11d   : > { %v914_v10 = vadd.f32 %v1064_v3, %v904_v6 }
 0x11e   : > { %v912_v11 = vadd.f32 %v1064_v3, %v902_v8  ;;  %v903_v12 = vmul.f32 %v1156_v9, %v1063_v0 }
 0x11f   : > { %v917_v13 = vmax.f32 %v914_v10, 0.0 }
 0x120   : > { %v915_v15 = vmax.f32 %v912_v11, 0.0  ;;  %v913_v16 = vadd.f32 %v1064_v3, %v903_v12 }
 0x121   : > { %v1072_v17 = vpack.c.bf16 %v917_v13, %v917_v13 }
 0x122   : > { %v1070_v18 = vpack.c.bf16 %v915_v15, %v915_v15  ;;  %v916_v19 = vmax.f32 %v913_v16, 0.0 }
 0x123   : > { %v938_v20 = vsel %vm936_vm6, %v1072_v17, %v937_v14 }
 0x124   : > { %939 = vst [vmem:[%s197_s22 + $0x8] sm:$0x7] %v938_v20  ;;  %932 = vst.msk [vmem:[%s197_s22] sm:$0xf] %vm931_vm7, %v1070_v18  ;;  %v1071_v21 = vpack.c.bf16 %v916_v19, %v916_v19 }
 0x126   : > { %933 = vst.msk [vmem:[%s197_s22 + $0x4] sm:$0xf] %vm931_vm7, %v1071_v21 }
 0x127 PF: > { %s14_s15 = sadd.s32 1, %s1228_s15  }
 0x128   : > { %p11_p4 = scmp.ge.s32.totalorder %s14_s15, 4  }
 0x12a   :  { %13 = sbr.rel (!%p11_p4) target bundleno = 1 (0x1), region = 74 }

// kernel: pspnet_forward.12
= control target key start
LH: loop header
LB: loop body
LE: loop exit
PB: predicated region body
PF: predicated region fallthrough
CT: control target
= control target key end

     0   :  { %s1599_s15 = smov 0   ;;  %s1811_s0 = inlined_call_operand.vmem [shape: bf16[2,132,16], index: 0, kind: input, shape index: {}]   ;;  %s1812_s1 = inlined_call_operand.vmem [shape: bf16[9,16,16], index: 1, kind: input, shape index: {}]   ;;  %s1813_s2 = inlined_call_operand.vmem [shape: f32[1,16], index: 2, kind: input, shape index: {}]   ;;  %s1814_s3 = inlined_call_operand.vmem [shape: f32[1,16], index: 3, kind: input, shape index: {}]   ;;  %s1815_s4 = inlined_call_operand.vmem [shape: bf16[2,33,16], index: 4, kind: output, shape index: {}]  }
   0x1 LB: > { %s1169_s16 = sadd.s32 4294967295, %s1570_s15   ;;  %p1173_p0 = scmp.ge.s32.totalorder %s1570_s15, 1  ;;  %s1570_s15 = sphi %s1599_s15, %s14_s15  }
   0x2   : > { %p162_p1 = scmp.lt.s32.totalorder %s1570_s15, 3 }
   0x4   : > { %p163_p2 = pnand %p1173_p0, %p162_p1 }
   0x5   : > { %v1610_v0 = vld [vmem:[%s1812_s1 + $0x20] sm:$0xff] (!%p163_p2)   ;;  %v1572_v1 = vmov (!%p163_p2), 0.0   ;;  %v1532_v2 = vld [vmem:[%s1812_s1 + $0x8] sm:$0xff] (!%p163_p2)   ;;  %vm1573_vm0 = vmmov (!%p163_p2), 0   ;;  %p188_p3 = scmp.lt.s32.totalorder (!%p163_p2), %s1169_s16, 1  ;;  %vm236_vm1 = vcmask (!%p163_p2), 130048  }
   0x6   : > { %166 = sbr.rel (%p163_p2) target bundleno = 352 (0x160), region = 36  ;;  %1358 = vmatprep.subr.bf16.mxu0 (!%p163_p2), %v1572_v1  ;;  %1302 = vmatprep.subr.bf16.mxu1 (!%p163_p2), %v1572_v1  ;;  %v1539_v5 = vld [vmem:[%s1812_s1 + $0x28] sm:$0xff] (!%p163_p2)   ;;  %vm224_vm2 = vcmask (!%p163_p2), 1045504   ;;  %v1538_v12 = vld [vmem:[%s1812_s1] sm:$0xff] (!%p163_p2)   ;;  %v1542_v26 = vld [vmem:[%s1812_s1 + $0x30] sm:$0xff] (!%p163_p2)   ;;  %vm1103_vm3 = vcmask (!%p163_p2), 125952  }
   0x7   : > { %1359 = vmatpush3.bf16.msra.mxu0 (!%p163_p2), %v1610_v0  ;;  %1360 = vmatprep.mubr.msk.bf16.mxu0 (!%p163_p2), %vm1573_vm0, %v1572_v1  ;;  %v1544_v38 = vld [vmem:[%s1812_s1 + $0x10] sm:$0xff] (!%p163_p2)   ;;  %v1547_v42 = vld [vmem:[%s1812_s1 + $0x38] sm:$0xff] (!%p163_p2)   ;;  %v1555_v55 = vld [vmem:[%s1812_s1 + $0x40] sm:$0xff] (!%p163_p2)   ;;  %vm1108_vm4 = vcmask (!%p163_p2), 122880   ;;  %vm1109_vm5 = vsmask.f32 (!%p163_p2), 256 }
   0x8   : > { %1303 = vmatpush3.bf16.msra.mxu1 (!%p163_p2), %v1532_v2  ;;  %1304 = vmatprep.mubr.msk.bf16.mxu1 (!%p163_p2), %vm1573_vm0, %v1572_v1  ;;  %v1550_v49 = vld [vmem:[%s1812_s1 + $0x18] sm:$0xff] (!%p163_p2)   ;;  %vm1110_vm6 = vmand (!%p163_p2), %vm1108_vm4, %vm1109_vm5 }
   0x9   : > { %1316 = vmatprep.subr.bf16.mxu1 (!%p163_p2), %v1572_v1  ;;  %1372 = vmatprep.subr.bf16.mxu0 (!%p163_p2), %v1572_v1 }
   0xd   : > { %s1817_s16 = smov (!%p188_p3, %s1169_s16), 1 }
   0xe   : > { %s1519_s21 = smul.u32 68, %s1817_s16 }
   0xf   : > { %s1520_s19 = smul.u32 20, %s1817_s16 }
  0x10   : > { %s1630_s24 = scalar_lea.vmem %s1811_s0, %s1519_s21 }
  0x11   : > { %v578_v3 = vld [vmem:[%s1630_s24 + $0x18] sm:$0xf]  ;;  %v579_v4 = vld [vmem:[%s1630_s24 + $0x1c] sm:$0xf]  ;;  %v200_v8 = vld [vmem:[%s1630_s24 + $0x4] sm:$0xf]  ;;  %s1796_s22 = scalar_lea.vmem %s1815_s4, %s1520_s19 }
  0x12   : > { %v1211_v6 = vcombine.low %v578_v3, %v579_v4  ;;  %v675_v7 = vld [vmem:[%s1630_s24 + $0x18] sm:$0xc]  ;;  %v206_v9 = vld [vmem:[%s1630_s24] sm:$0xc]  ;;  %v1536_v10 = vld [vmem:[%s1630_s24 + $0x8] sm:$0xff]  }
  0x13   : > { %v1178_v11 = vcombine.low %v206_v9, %v200_v8  ;;  %v1220_v13 = vcombine.low %v675_v7, %v579_v4  ;;  %v226_v14 = vrot.slane %v1536_v10, 2  ;;  %v1648_v15 = vld [vmem:[%s1630_s24 + $0x20] sm:$0xff]   ;;  %v1540_v17 = vld [vmem:[%s1630_s24 + $0x10] ss:$0 sps:$4 sm:$0x77]   ;;  %v1548_v43 = vld [vmem:[%s1630_s24 + $0x34] sm:$0xff]  }
  0x14   : > { %1361 = vmatmul.mubr.msk.bf16.vlgmr.msra.gmra.mrb[0].mxu0 %vm236_vm1, %v1211_v6  ;;  %v687_v20 = vrot.slane %v1648_v15, 2  ;;  %v228_v21 = vrot.slane %v1540_v17, 2  ;;  %v1543_v22 = vld [vmem:[%s1630_s24 + $0x28] ss:$0 sps:$4 sm:$0x77]   ;;  %v1558_v24 = vld [vmem:[%s1630_s24 + $0x1c] sm:$0xff]  }
  0x15   : > { %1373 = vmatpush3.bf16.msra.mxu0 %v1539_v5  ;;  %1374 = vmatprep.mubr.msk.bf16.mxu0 %vm1573_vm0, %v1572_v1  ;;  %v225_v16 = vrot.slane %v1178_v11, 2  ;;  %v686_v19 = vrot.slane %v1220_v13, 2  ;;  %v689_v27 = vrot.slane %v1543_v22, 2  ;;  %v498_v28 = vrot.slane %v1558_v24, 2  ;;  %v1557_v29 = vld [vmem:[%s1630_s24 + $0x14] sm:$0xfc]  }
  0x16   : > { %1386 = vmatprep.subr.bf16.mxu0 %v1572_v1  ;;  %v229_v25 = vsel %vm224_vm2, %v226_v14, %v228_v21  ;;  %v1673_v30 = vld [vmem:[%s1630_s24 + $0x24] ss:$0 sps:$4 sm:$0x77]   ;;  %v497_v31 = vrot.slane %v1557_v29, 2  ;;  %v199_v36 = vld [vmem:[%s1630_s24] sm:$0xf] }
  0x17   : > { %v227_v18 = vsel %vm224_vm2, %v225_v16, %v226_v14  ;;  %v688_v23 = vsel %vm224_vm2, %v686_v19, %v687_v20  ;;  %v500_v32 = vrot.slane %v1673_v30, 2  ;;  %v690_v33 = vsel %vm224_vm2, %v687_v20, %v689_v27  ;;  %v767_v39 = vld [vmem:[%s1630_s24 + $0x2c] sm:$0xf]  ;;  %v768_v40 = vld [vmem:[%s1630_s24 + $0x30] sm:$0xf]  ;;  %v1549_v47 = vld [vmem:[%s1630_s24 + $0x4] sm:$0xff]  }
  0x18   : > { %1305 = vmatmul.mubr.msk.bf16.vlgmr.msra.gmra.mrb[0].mxu1 %vm236_vm1, %v227_v18  ;;  %v499_v34 = vsel %vm224_vm2, %v497_v31, %v498_v28  ;;  %v1185_v37 = vcombine.low %v199_v36, %v200_v8  ;;  %v1228_v41 = vcombine.low %v767_v39, %v768_v40  ;;  %v1546_v44 = vld [vmem:[%s1630_s24 + $0x10] ss:$0 sps:$4 sm:$0x11]   ;;  %v864_v45 = vld [vmem:[%s1630_s24 + $0x2c] sm:$0xc]  ;;  %v876_v50 = vrot.slane %v1548_v43, 2 }
  0x19   : > { %1317 = vmatpush3.bf16.msra.mxu1 %v1538_v12  ;;  %1308 = vmatprep.mubr.msk.bf16.mxu1 %vm1573_vm0, %v1572_v1  ;;  %v1682_v35 = vsel %vm224_vm2, %v498_v28, %v500_v32  ;;  %v1551_v46 = vld [vmem:[%s1630_s24 + $0x3c] ss:$0 sps:$4 sm:$0x11]   ;;  %v1237_v48 = vcombine.low %v864_v45, %v768_v40  ;;  %v1552_v52 = vld [vmem:[%s1630_s24 + $0xc] sm:$0xff]   ;;  %v1252_v5 = vld [vmem:[%s1813_s2] ss:$0 sm:$0xff] }
  0x1a   : > { %1330 = vmatprep.subr.bf16.mxu1 %v1572_v1  ;;  %v1556_v54 = vld [vmem:[%s1630_s24 + $0x3c] ss:$0 sps:$4 sm:$0x77]   ;;  %v1554_v57 = vld [vmem:[%s1630_s24 + $0x14] ss:$0 sps:$4 sm:$0x11]  }
  0x1b   : > { %v875_v51 = vrot.slane %v1237_v48, 2  ;;  %v878_v56 = vrot.slane %v1556_v54, 2  ;;  %v1560_v59 = vld [vmem:[%s1630_s24 + $0x30] sm:$0xff]   ;;  %v1561_v60 = vld [vmem:[%s1630_s24 + $0x38] sm:$0xff]   ;;  %v1253_v8 = vld [vmem:[%s1814_s3] ss:$0 sm:$0xff] }
  0x1c   : > { %v1562_v61 = vld [vmem:[%s1630_s24 + $0x40] ss:$0 sps:$4 sm:$0x11]   ;;  %v1563_v62 = vld [vmem:[%s1630_s24 + $0x28] ss:$0 sps:$4 sm:$0x11]  }
  0x1d   : > { %v877_v53 = vsel %vm224_vm2, %v875_v51, %v876_v50  ;;  %v879_v58 = vsel %vm224_vm2, %v876_v50, %v878_v56 }
  0x20   : > { %1375 = vmatmul.mubr.msk.bf16.vlgmr.msra.gmra.mrb[0].mxu0 %vm236_vm1, %v688_v23  ;;  %1309 = vmatmul.mubr.msk.bf16.gmra.mrb[4].mxu1 %vm236_vm1, %v229_v25 }
  0x21   : > { %1378 = vmatprep.mubr.msk.bf16.mxu0 %vm1573_vm0, %v1572_v1  ;;  %1312 = vmatprep.mubr.msk.bf16.mxu1 %vm1573_vm0, %v1572_v1 }
  0x22   : > { %1387 = vmatpush3.bf16.msra.mxu0 %v1542_v26 }
  0x23   : > { %1400 = vmatprep.subr.bf16.mxu0 %v1572_v1 }
  0x28   : > { %1379 = vmatmul.mubr.msk.bf16.gmra.mrb[4].mxu0 %vm236_vm1, %v690_v33  ;;  %1313 = vmatmul.mubr.msk.bf16.gmra.mrb[8].mxu1 %vm236_vm1, %v228_v21 }
  0x29   : > { %1382 = vmatprep.mubr.msk.bf16.mxu0 %vm1573_vm0, %v1572_v1  ;;  %1318 = vmatprep.mubr.msk.bf16.mxu1 %vm1573_vm0, %v1572_v1 }
  0x30   : > { %1383 = vmatmul.mubr.msk.bf16.gmra.mrb[8].mxu0 %vm236_vm1, %v689_v27  ;;  %1319 = vmatmul.mubr.msk.bf16.vlgmr.msra.gmra.mrb[0].mxu1 %vm236_vm1, %v1185_v37 }
  0x31   : > { %1388 = vmatprep.mubr.msk.bf16.mxu0 %vm1573_vm0, %v1572_v1  ;;  %1331 = vmatpush3.bf16.msra.mxu1 %v1544_v38 }
  0x32   : > { %1322 = vmatprep.mubr.msk.bf16.mxu1 %vm1573_vm0, %v1572_v1  ;;  %1344 = vmatprep.subr.bf16.mxu1 %v1572_v1 }
  0x38   : > { %1389 = vmatmul.mubr.msk.bf16.vlgmr.msra.gmra.mrb[0].mxu0 %vm236_vm1, %v1228_v41  ;;  %1323 = vmatmul.mubr.msk.bf16.gmra.mrb[4].mxu1 %vm236_vm1, %v1536_v10 }
  0x39   : > { %1392 = vmatprep.mubr.msk.bf16.mxu0 %vm1573_vm0, %v1572_v1  ;;  %1326 = vmatprep.mubr.msk.bf16.mxu1 %vm1573_vm0, %v1572_v1 }
  0x3a   : > { %1401 = vmatpush3.bf16.msra.mxu0 %v1547_v42 }
  0x3b   : > { %1414 = vmatprep.subr.bf16.mxu0 %v1572_v1 }
  0x40   : > { %1393 = vmatmul.mubr.msk.bf16.gmra.mrb[4].mxu0 %vm236_vm1, %v1548_v43  ;;  %1327 = vmatmul.mubr.msk.bf16.gmra.mrb[8].mxu1 %vm236_vm1, %v1546_v44 }
  0x41   : > { %1396 = vmatprep.mubr.msk.bf16.mxu0 %vm1573_vm0, %v1572_v1  ;;  %1332 = vmatprep.mubr.msk.bf16.mxu1 %vm1573_vm0, %v1572_v1 }
  0x48   : > { %1397 = vmatmul.mubr.msk.bf16.gmra.mrb[8].mxu0 %vm236_vm1, %v1551_v46  ;;  %1333 = vmatmul.mubr.msk.bf16.vlgmr.msra.gmra.mrb[0].mxu1 %vm236_vm1, %v1549_v47 }
  0x49   : > { %1402 = vmatprep.mubr.msk.bf16.mxu0 %vm1573_vm0, %v1572_v1  ;;  %1345 = vmatpush3.bf16.msra.mxu1 %v1550_v49  ;;  %v1111_v49 = vld [vmem:[%s1796_s22 + $0x10] sm:$0x1] }
  0x4a   : > { %1336 = vmatprep.mubr.msk.bf16.mxu1 %vm1573_vm0, %v1572_v1  ;;  %1428 = vmatprep.subr.bf16.mxu1 %v1572_v1 }
  0x50   : > { %1403 = vmatmul.mubr.msk.bf16.vlgmr.msra.gmra.mrb[0].mxu0 %vm236_vm1, %v877_v53  ;;  %1337 = vmatmul.mubr.msk.bf16.gmra.mrb[4].mxu1 %vm236_vm1, %v1552_v52 }
  0x51   : > { %1406 = vmatprep.mubr.msk.bf16.mxu0 %vm1573_vm0, %v1572_v1  ;;  %1340 = vmatprep.mubr.msk.bf16.mxu1 %vm1573_vm0, %v1572_v1 }
  0x52   : > { %1415 = vmatpush3.bf16.msra.mxu0 %v1555_v55 }
  0x58   : > { %1407 = vmatmul.mubr.msk.bf16.gmra.mrb[4].mxu0 %vm236_vm1, %v879_v58  ;;  %1341 = vmatmul.mubr.msk.bf16.gmra.mrb[8].mxu1 %vm236_vm1, %v1554_v57 }
  0x59   : > { %1410 = vmatprep.mubr.msk.bf16.mxu0 %vm1573_vm0, %v1572_v1  ;;  %1346 = vmatprep.mubr.msk.bf16.mxu1 %vm1573_vm0, %v1572_v1 }
  0x60   : > { %1411 = vmatmul.mubr.msk.bf16.gmra.mrb[8].mxu0 %vm236_vm1, %v878_v56  ;;  %1347 = vmatmul.mubr.msk.bf16.vlgmr.msra.gmra.mrb[0].mxu1 %vm236_vm1, %v499_v34 }
  0x61   : > { %1416 = vmatprep.mubr.msk.bf16.mxu0 %vm1573_vm0, %v1572_v1  ;;  %1429 = vmatpush3.bf16.msra.mxu1 %v1610_v0 }
  0x62   : > { %1350 = vmatprep.mubr.msk.bf16.mxu1 %vm1573_vm0, %v1572_v1 }
  0x68   : > { %1417 = vmatmul.mubr.msk.bf16.vlgmr.msra.gmra.mrb[0].mxu0 %vm236_vm1, %v1560_v59  ;;  %1351 = vmatmul.mubr.msk.bf16.gmra.mrb[4].mxu1 %vm236_vm1, %v1682_v35 }
  0x69   : > { %1420 = vmatprep.mubr.msk.bf16.mxu0 %vm1573_vm0, %v1572_v1  ;;  %1354 = vmatprep.mubr.msk.bf16.mxu1 %vm1573_vm0, %v1572_v1 }
  0x70   : > { %1421 = vmatmul.mubr.msk.bf16.gmra.mrb[4].mxu0 %vm236_vm1, %v1561_v60  ;;  %1355 = vmatmul.mubr.msk.bf16.gmra.mrb[8].mxu1 %vm236_vm1, %v500_v32 }
  0x71   : > { %1424 = vmatprep.mubr.msk.bf16.mxu0 %vm1573_vm0, %v1572_v1  ;;  %1364 = vmatprep.mubr.msk.bf16.mxu1 %vm1573_vm0, %v1572_v1 }
  0x78   : > { %1425 = vmatmul.mubr.msk.bf16.gmra.mrb[8].mxu0 %vm236_vm1, %v1562_v61  ;;  %1365 = vmatmul.mubr.msk.bf16.vlgmr.msra.gmra.mrb[4].mxu1 %vm236_vm1, %v1648_v15 }
  0x79   : > { %1368 = vmatprep.mubr.msk.bf16.mxu1 %vm1573_vm0, %v1572_v1 }
  0x80   : > { %1369 = vmatmul.mubr.msk.bf16.gmra.mrb[8].mxu1 %vm236_vm1, %v1563_v62 }
 0x133   : > { %v551_v63 = vpop.f32.mrb[0].mxu1 }
 0x134   : > { %v1348_v0 = vpop.f32.mrb[1].mxu1 }
 0x135   : > { %v554_v2 = vpop.f32.mrb[2].mxu1 }
 0x136   : > { %v1349_v3 = vpop.f32.mrb[3].mxu1 }
 0x13b   : > { %v1026_v4 = vpop.f32.mrb[0].mxu0 }
 0x13c   : > { %v1430_v6 = vadd.f32 %v1026_v4, %v551_v63  ;;  %v1418_v7 = vpop.f32.mrb[1].mxu0 }
 0x13d   : > { %v1029_v1 = vpop.f32.mrb[2].mxu0 }
 0x13e   : > { %v1060_v9 = vmul.f32 %v1430_v6, %v1252_v5  ;;  %v1431_v10 = vadd.f32 %v1029_v1, %v554_v2  ;;  %v1419_v11 = vpop.f32.mrb[3].mxu0 }
 0x140   : > { %v1072_v12 = vadd.f32 %v1253_v8, %v1060_v9  ;;  %v1061_v13 = vmul.f32 %v1431_v10, %v1252_v5 }
 0x142   : > { %v1077_v14 = vmax.f32 %v1072_v12, 0.0  ;;  %v1073_v15 = vadd.f32 %v1253_v8, %v1061_v13 }
 0x143   : > { %v1034_v16 = vpop.f32.mrb[4].mxu0 }
 0x144   : > { %v1261_v17 = vpack.c.bf16 %v1077_v14, %v1077_v14  ;;  %v1078_v18 = vmax.f32 %v1073_v15, 0.0  ;;  %v1422_v19 = vpop.f32.mrb[5].mxu0 }
 0x145   : > { %v1037_v20 = vpop.f32.mrb[6].mxu0 }
 0x146   : > { %1104 = vst.msk [vmem:[%s1796_s22] sm:$0xf] %vm1103_vm3, %v1261_v17  ;;  %v1262_v21 = vpack.c.bf16 %v1078_v18, %v1078_v18  ;;  %v1423_v22 = vpop.f32.mrb[7].mxu0 }
 0x148   : > { %1105 = vst.msk [vmem:[%s1796_s22 + $0x4] sm:$0xf] %vm1103_vm3, %v1262_v21 }
 0x14b   : > { %v1042_v23 = vpop.f32.mrb[8].mxu0  ;;  %v656_v24 = vpop.f32.mrb[4].mxu1 }
 0x14c   : > { %v1426_v25 = vpop.f32.mrb[9].mxu0  ;;  %v1432_v26 = vadd.f32 %v1034_v16, %v656_v24  ;;  %v1366_v27 = vpop.f32.mrb[5].mxu1 }
 0x14d   : > { %v1045_v28 = vpop.f32.mrb[10].mxu0  ;;  %v659_v29 = vpop.f32.mrb[6].mxu1 }
 0x14e   : > { %v1427_v30 = vpop.f32.mrb[11].mxu0  ;;  %v1062_v31 = vmul.f32 %v1432_v26, %v1252_v5  ;;  %v1433_v32 = vadd.f32 %v1037_v20, %v659_v29  ;;  %v1367_v33 = vpop.f32.mrb[7].mxu1 }
 0x150   : > { %v1074_v34 = vadd.f32 %v1253_v8, %v1062_v31  ;;  %v1063_v35 = vmul.f32 %v1433_v32, %v1252_v5 }
 0x152   : > { %v1079_v36 = vmax.f32 %v1074_v34, 0.0  ;;  %v1075_v37 = vadd.f32 %v1253_v8, %v1063_v35 }
 0x153   : > { %v664_v38 = vpop.f32.mrb[8].mxu1 }
 0x154   : > { %v1263_v39 = vpack.c.bf16 %v1079_v36, %v1079_v36  ;;  %v1080_v40 = vmax.f32 %v1075_v37, 0.0  ;;  %v1434_v41 = vadd.f32 %v1042_v23, %v664_v38  ;;  %v1370_v42 = vpop.f32.mrb[9].mxu1 }
 0x155   : > { %v667_v43 = vpop.f32.mrb[10].mxu1 }
 0x156   : > { %1106 = vst.msk [vmem:[%s1796_s22 + $0x8] sm:$0xf] %vm1103_vm3, %v1263_v39  ;;  %v1264_v44 = vpack.c.bf16 %v1080_v40, %v1080_v40  ;;  %v1064_v45 = vmul.f32 %v1434_v41, %v1252_v5  ;;  %v1371_v46 = vpop.f32.mrb[11].mxu1 }
 0x158   : > { %1107 = vst.msk [vmem:[%s1796_s22 + $0xc] sm:$0xf] %vm1103_vm3, %v1264_v44  ;;  %v1076_v47 = vadd.f32 %v1253_v8, %v1064_v45 }
 0x15a   : > { %v1081_v48 = vmax.f32 %v1076_v47, 0.0 }
 0x15c   : > { %v1265_v50 = vpack.c.bf16 %v1081_v48, %v1081_v48 }
 0x15e   : > { %v1112_v51 = vsel %vm1110_vm6, %v1265_v50, %v1111_v49 }
 0x15f   : > { %1113 = vst [vmem:[%s1796_s22 + $0x10] sm:$0x1] %v1112_v51 }
 0x160 PF: > { %s14_s15 = sadd.s32 1, %s1570_s15  }
 0x161   : > { %p11_p4 = scmp.ge.s32.totalorder %s14_s15, 4  }
 0x163   :  { %13 = sbr.rel (!%p11_p4) target bundleno = 1 (0x1), region = 74 }

// kernel: pspnet_forward.14
= control target key start
LH: loop header
LB: loop body
LE: loop exit
PB: predicated region body
PF: predicated region fallthrough
CT: control target
= control target key end

     0   :  { %s1273_s15 = smov 0   ;;  %s1423_s0 = inlined_call_operand.vmem [shape: bf16[2,30,32], index: 0, kind: input, shape index: {}]   ;;  %s1424_s1 = inlined_call_operand.vmem [shape: bf16[9,32,16], index: 1, kind: input, shape index: {}]   ;;  %s1425_s2 = inlined_call_operand.vmem [shape: f32[1,16], index: 2, kind: input, shape index: {}]   ;;  %s1426_s3 = inlined_call_operand.vmem [shape: f32[1,16], index: 3, kind: input, shape index: {}]   ;;  %s1427_s4 = inlined_call_operand.vmem [shape: bf16[2,15,16], index: 4, kind: output, shape index: {}]  }
   0x1 LB: > { %s981_s16 = sadd.s32 4294967295, %s1244_s15   ;;  %p985_p0 = scmp.ge.s32.totalorder %s1244_s15, 1  ;;  %s1244_s15 = sphi %s1273_s15, %s14_s15  }
   0x2   : > { %p162_p1 = scmp.lt.s32.totalorder %s1244_s15, 3 }
   0x4   : > { %p163_p2 = pnand %p985_p0, %p162_p1 }
   0x5   : > { %v1209_v0 = vld [vmem:[%s1424_s1 + $0x40] sm:$0xff] (!%p163_p2)   ;;  %v1246_v1 = vmov (!%p163_p2), 0.0   ;;  %v1210_v2 = vld [vmem:[%s1424_s1 + $0x10] sm:$0xff] (!%p163_p2)   ;;  %v1211_v3 = vld [vmem:[%s1424_s1 + $0x48] sm:$0xff] (!%p163_p2)   ;;  %vm1247_vm0 = vmmov (!%p163_p2), 0   ;;  %p188_p3 = scmp.lt.s32.totalorder (!%p163_p2), %s981_s16, 1 }
   0x6   : > { %166 = sbr.rel (%p163_p2) target bundleno = 296 (0x128), region = 36  ;;  %1129 = vmatprep.subr.bf16.mxu0 (!%p163_p2), %v1246_v1  ;;  %1097 = vmatprep.subr.bf16.mxu1 (!%p163_p2), %v1246_v1  ;;  %v1212_v4 = vld [vmem:[%s1424_s1 + $0x18] sm:$0xff] (!%p163_p2)   ;;  %vm234_vm1 = vcmask (!%p163_p2), 261120   ;;  %vm514_vm2 = vcmask (!%p163_p2), 1044480   ;;  %v1215_v10 = vld [vmem:[%s1424_s1 + $0x50] sm:$0xff] (!%p163_p2)   ;;  %v1218_v22 = vld [vmem:[%s1424_s1] sm:$0xff] (!%p163_p2)  }
   0x7   : > { %1130 = vmatpush3.bf16.msra.mxu0 (!%p163_p2), %v1209_v0  ;;  %1133 = vmatprep.mubr.msk.bf16.mxu0 (!%p163_p2), %vm1247_vm0, %v1246_v1  ;;  %v1217_v21 = vld [vmem:[%s1424_s1 + $0x58] sm:$0xff] (!%p163_p2)   ;;  %v1219_v28 = vld [vmem:[%s1424_s1 + $0x8] sm:$0xff] (!%p163_p2)   ;;  %vm581_vm3 = vsmask.f32 (!%p163_p2), 4352  ;;  %v1220_v31 = vld [vmem:[%s1424_s1 + $0x60] sm:$0xff] (!%p163_p2)   ;;  %vm350_vm4 = vcmask (!%p163_p2), 1046528  }
   0x8   : > { %1131 = vmatprep.subr.bf16.mxu0 (!%p163_p2), %v1246_v1  ;;  %1098 = vmatpush3.bf16.msra.mxu1 (!%p163_p2), %v1210_v2  ;;  %v1222_v36 = vld [vmem:[%s1424_s1 + $0x20] sm:$0xff] (!%p163_p2)   ;;  %v1221_v39 = vld [vmem:[%s1424_s1 + $0x68] sm:$0xff] (!%p163_p2)   ;;  %v1226_v51 = vld [vmem:[%s1424_s1 + $0x70] sm:$0xff] (!%p163_p2)   ;;  %vm739_vm5 = vsmask.f32 (!%p163_p2), 6400  ;;  %vm828_vm7 = vcmask (!%p163_p2), 1045504  }
   0x9   : > { %1099 = vmatprep.subr.bf16.mxu1 (!%p163_p2), %v1246_v1  ;;  %1101 = vmatprep.mubr.msk.bf16.mxu1 (!%p163_p2), %vm1247_vm0, %v1246_v1  ;;  %v1223_v42 = vld [vmem:[%s1424_s1 + $0x28] sm:$0xff] (!%p163_p2)   ;;  %v1230_v57 = vld [vmem:[%s1424_s1 + $0x30] sm:$0xff] (!%p163_p2)   ;;  %v1229_v62 = vld [vmem:[%s1424_s1 + $0x78] sm:$0xff] (!%p163_p2)   ;;  %vm425_vm6 = vsmask.f32 (!%p163_p2), 5376  ;;  %vm918_vm8 = vcmask (!%p163_p2), 125952  }
   0xa   : > { %vm921_vm9 = vsmask.f32 (!%p163_p2), 3328 }
   0xb   : > { %1132 = vmatpush3.bf16.msra.mxu0 (!%p163_p2), %v1211_v3  ;;  %vm922_vm10 = vmand (!%p163_p2), %vm918_vm8, %vm921_vm9 }
   0xc   : > { %1137 = vmatprep.subr.bf16.mxu0 (!%p163_p2), %v1246_v1  ;;  %1100 = vmatpush3.bf16.msra.mxu1 (!%p163_p2), %v1212_v4  ;;  %v1231_v4 = vld [vmem:[%s1424_s1 + $0x38] sm:$0xff] (!%p163_p2)  }
   0xd   : > { %s1429_s16 = smov (!%p188_p3, %s981_s16), 1  ;;  %1105 = vmatprep.subr.bf16.mxu1 %v1246_v1 }
   0xe   : > { %s1066_s25 = sshll.u32 %s1429_s16, 4  ;;  %s1067_s11 = sshll.u32 %s1429_s16, 3 }
   0xf   : > { %s1308_s28 = scalar_lea.vmem %s1423_s0, %s1066_s25  ;;  %s197_s14 = scalar_lea.vmem %s1427_s4, %s1067_s11 }
  0x10   : > { %v1311_v5 = vld [vmem:[%s1308_s28 + $0x4] sm:$0xf]  ;;  %v501_v6 = vld [vmem:[%s1308_s28] sm:$0x8]  ;;  %v1345_v34 = vld [vmem:[%s1308_s28 + $0x8] sm:$0xf] }
  0x11   : > { %v1023_v7 = vcombine.low %v501_v6, %v1311_v5  ;;  %v1214_v8 = vld [vmem:[%s1308_s28 + $0x8] ss:$0 sps:$4 sm:$0x77]   ;;  %v1216_v9 = vld [vmem:[%s1308_s28] sm:$0xff]  }
  0x12   : > { %v516_v12 = vrot.slane %v1214_v8, 3  ;;  %v216_v13 = vshrl.u32 %v1216_v9, 16  ;;  %v218_v14 = vshll.u32 %v1216_v9, 16  ;;  %v591_v17 = vshrl.u32 %v1214_v8, 16  ;;  %v657_v33 = vld [vmem:[%s1308_s28 + $0x4] sm:$0xe] }
  0x13   : > { %v515_v11 = vrot.slane %v1023_v7, 3  ;;  %v583_v15 = vshrl.u32 %v1023_v7, 16  ;;  %v586_v16 = vshll.u32 %v1023_v7, 16  ;;  %v594_v18 = vshll.u32 %v1214_v8, 16  ;;  %v334_v38 = vld [vmem:[%s1308_s28] sm:$0xe] }
  0x14   : > { %v220_v20 = vrot.slane %v218_v14, 1  ;;  %v593_v26 = vrot.slane %v591_v17, 3  ;;  %v1225_v35 = vld [vmem:[%s1308_s28 + $0xc] ss:$0 sps:$4 sm:$0x11]   ;;  %v1039_v37 = vcombine.low %v657_v33, %v1345_v34  ;;  %v1005_v40 = vcombine.low %v334_v38, %v1311_v5  ;;  %v1232_v14 = vld [vmem:[%s1424_s1 + $0x80] sm:$0xff]  }
  0x15   : > { %v517_v19 = vsel %vm514_vm2, %v515_v11, %v516_v12  ;;  %v585_v23 = vrot.slane %v583_v15, 3  ;;  %v588_v24 = vrot.slane %v586_v16, 4  ;;  %v596_v27 = vrot.slane %v594_v18, 4  ;;  %v1228_v41 = vld [vmem:[%s1308_s28 + $0x8] ss:$0 sps:$4 sm:$0x11]  }
  0x16   : > { %1134 = vmatmul.mubr.msk.bf16.vlgmr.msra.gmra.mrb[0].mxu0 %vm234_vm1, %v517_v19  ;;  %v221_v25 = vor.u32 %v220_v20, %v216_v13  ;;  %v673_v43 = vrot.slane %v1039_v37, 1  ;;  %v674_v44 = vrot.slane %v1225_v35, 1  ;;  %v412_v45 = vld [vmem:[%s1308_s28] sm:$0xc]  ;;  %v351_v46 = vrot.slane %v1005_v40, 1  ;;  %v1235_v17 = vld [vmem:[%s1424_s1 + $0x88] sm:$0xff]  }
  0x17   : > { %1138 = vmatpush3.bf16.msra.mxu0 %v1215_v10  ;;  %1141 = vmatprep.mubr.msk.bf16.mxu0 %vm1247_vm0, %v1246_v1  ;;  %v589_v29 = vor.u32 %v588_v24, %v585_v23  ;;  %v597_v30 = vor.u32 %v596_v27, %v593_v26  ;;  %v352_v47 = vrot.slane %v1228_v41, 1  ;;  %v1014_v49 = vcombine.low %v412_v45, %v1311_v5  ;;  %v1234_v50 = vld [vmem:[%s1308_s28 + $0x8] ss:$0 sps:$4 sm:$0x33]   ;;  %v815_v15 = vld [vmem:[%s1308_s28 + $0x4] sm:$0xc] }
  0x18   : > { %1139 = vmatprep.subr.bf16.mxu0 %v1246_v1  ;;  %1102 = vmatmul.mubr.msk.bf16.vlgmr.msra.gmra.mrb[0].mxu1 %vm234_vm1, %v221_v25  ;;  %v675_v48 = vsel %vm350_vm4, %v673_v43, %v674_v44  ;;  %v741_v52 = vshrl.u32 %v1039_v37, 16  ;;  %v744_v53 = vshll.u32 %v1039_v37, 16  ;;  %v749_v54 = vshrl.u32 %v1225_v35, 16  ;;  %v1237_v19 = vld [vmem:[%s1308_s28 + $0xc] ss:$0 sps:$4 sm:$0x33]  }
  0x19   : > { %1106 = vmatpush3.bf16.msra.mxu1 %v1218_v22  ;;  %1109 = vmatprep.mubr.msk.bf16.mxu1 %vm1247_vm0, %v1246_v1  ;;  %v598_v32 = vsel %vm581_vm3, %v589_v29, %v597_v30  ;;  %v752_v55 = vshll.u32 %v1225_v35, 16  ;;  %v353_v56 = vsel %vm350_vm4, %v351_v46, %v352_v47  ;;  %v427_v58 = vshrl.u32 %v1014_v49, 16  ;;  %v1061_v30 = vld [vmem:[%s1426_s3] ss:$0 sm:$0xff]  ;;  %v923_v41 = vld [vmem:[%s197_s14 + $0x4] sm:$0xf] }
  0x1a   : > { %1107 = vmatprep.subr.bf16.mxu1 %v1246_v1  ;;  %v430_v59 = vshll.u32 %v1014_v49, 16  ;;  %v435_v60 = vshrl.u32 %v1234_v50, 16  ;;  %v438_v61 = vshll.u32 %v1234_v50, 16  ;;  %v743_v63 = vrot.slane %v741_v52, 1 }
  0x1b   : > { %1140 = vmatpush3.bf16.msra.mxu0 %v1217_v21  ;;  %v746_v0 = vrot.slane %v744_v53, 2  ;;  %v751_v2 = vrot.slane %v749_v54, 1  ;;  %v754_v3 = vrot.slane %v752_v55, 2  ;;  %v429_v5 = vrot.slane %v427_v58, 2 }
  0x1c   : > { %1145 = vmatprep.subr.bf16.mxu0 %v1246_v1  ;;  %v432_v6 = vrot.slane %v430_v59, 3  ;;  %v437_v7 = vrot.slane %v435_v60, 2  ;;  %v440_v8 = vrot.slane %v438_v61, 3  ;;  %v1055_v18 = vcombine.low %v815_v15, %v1345_v34 }
  0x1d   : > { %1108 = vmatpush3.bf16.msra.mxu1 %v1219_v28  ;;  %v755_v10 = vor.u32 %v754_v3, %v751_v2  ;;  %v830_v21 = vrot.slane %v1237_v19, 2  ;;  %v1060_v28 = vld [vmem:[%s1425_s2] ss:$0 sm:$0xff] }
  0x1e   : > { %1113 = vmatprep.subr.bf16.mxu1 %v1246_v1  ;;  %v433_v11 = vor.u32 %v432_v6, %v429_v5  ;;  %v441_v12 = vor.u32 %v440_v8, %v437_v7  ;;  %v829_v20 = vrot.slane %v1055_v18, 2 }
  0x20   : > { %v442_v16 = vsel %vm425_vm6, %v433_v11, %v441_v12  ;;  %v831_v22 = vsel %vm828_vm7, %v829_v20, %v830_v21 }
  0x22   : > { %1142 = vmatmul.mubr.msk.bf16.vlgmr.msra.gmra.mrb[0].mxu0 %vm234_vm1, %v598_v32 }
  0x23   : > { %1146 = vmatpush3.bf16.msra.mxu0 %v1220_v31  ;;  %1149 = vmatprep.mubr.msk.bf16.mxu0 %vm1247_vm0, %v1246_v1 }
  0x24   : > { %1147 = vmatprep.subr.bf16.mxu0 %v1246_v1  ;;  %1110 = vmatmul.mubr.msk.bf16.vlgmr.msra.gmra.mrb[0].mxu1 %vm234_vm1, %v1216_v9  ;;  %v747_v9 = vor.u32 %v746_v0, %v743_v63 }
  0x25   : > { %1114 = vmatpush3.bf16.msra.mxu1 %v1222_v36  ;;  %1117 = vmatprep.mubr.msk.bf16.mxu1 %vm1247_vm0, %v1246_v1 }
  0x26   : > { %1115 = vmatprep.subr.bf16.mxu1 %v1246_v1  ;;  %v756_v13 = vsel %vm739_vm5, %v747_v9, %v755_v10 }
  0x27   : > { %1148 = vmatpush3.bf16.msra.mxu0 %v1221_v39 }
  0x28   : > { %1153 = vmatprep.subr.bf16.mxu0 %v1246_v1 }
  0x29   : > { %1116 = vmatpush3.bf16.msra.mxu1 %v1223_v42 }
  0x2a   : > { %1121 = vmatprep.subr.bf16.mxu1 %v1246_v1 }
  0x2e   : > { %1150 = vmatmul.mubr.msk.bf16.vlgmr.msra.gmra.mrb[0].mxu0 %vm234_vm1, %v675_v48 }
  0x2f   : > { %1154 = vmatpush3.bf16.msra.mxu0 %v1226_v51  ;;  %1157 = vmatprep.mubr.msk.bf16.mxu0 %vm1247_vm0, %v1246_v1 }
  0x30   : > { %1155 = vmatprep.subr.bf16.mxu0 %v1246_v1  ;;  %1118 = vmatmul.mubr.msk.bf16.vlgmr.msra.gmra.mrb[0].mxu1 %vm234_vm1, %v353_v56 }
  0x31   : > { %1122 = vmatpush3.bf16.msra.mxu1 %v1230_v57  ;;  %1125 = vmatprep.mubr.msk.bf16.mxu1 %vm1247_vm0, %v1246_v1 }
  0x32   : > { %1123 = vmatprep.subr.bf16.mxu1 %v1246_v1 }
  0x33   : > { %1156 = vmatpush3.bf16.msra.mxu0 %v1229_v62 }
  0x34   : > { %1161 = vmatprep.subr.bf16.mxu0 %v1246_v1 }
  0x35   : > { %1124 = vmatpush3.bf16.msra.mxu1 %v1231_v4 }
  0x3a   : > { %1158 = vmatmul.mubr.msk.bf16.vlgmr.msra.gmra.mrb[0].mxu0 %vm234_vm1, %v756_v13 }
  0x3b   : > { %1162 = vmatpush3.bf16.msra.mxu0 %v1232_v14  ;;  %1165 = vmatprep.mubr.msk.bf16.mxu0 %vm1247_vm0, %v1246_v1 }
  0x3c   : > { %1163 = vmatprep.subr.bf16.mxu0 %v1246_v1  ;;  %1126 = vmatmul.mubr.msk.bf16.vlgmr.msra.gmra.mrb[0].mxu1 %vm234_vm1, %v442_v16 }
  0x3f   : > { %1164 = vmatpush3.bf16.msra.mxu0 %v1235_v17 }
  0x46   : > { %1166 = vmatmul.mubr.msk.bf16.vlgmr.msra.gmra.mrb[0].mxu0 %vm234_vm1, %v831_v22 }
 0x10f   : > { %v492_v23 = vpop.f32.mrb[0].mxu1 }
 0x110   : > { %v1127_v24 = vpop.f32.mrb[1].mxu1 }
 0x111   : > { %v495_v25 = vpop.f32.mrb[2].mxu1 }
 0x112   : > { %v1128_v26 = vpop.f32.mrb[3].mxu1 }
 0x119   : > { %v881_v27 = vpop.f32.mrb[0].mxu0 }
 0x11a   : > { %v1169_v1 = vadd.f32 %v881_v27, %v492_v23  ;;  %v1167_v29 = vpop.f32.mrb[1].mxu0 }
 0x11b   : > { %v884_v31 = vpop.f32.mrb[2].mxu0 }
 0x11c   : > { %v897_v32 = vmul.f32 %v1169_v1, %v1060_v28  ;;  %v1170_v33 = vadd.f32 %v884_v31, %v495_v25  ;;  %v1168_v34 = vpop.f32.mrb[3].mxu0 }
 0x11e   : > { %v906_v35 = vadd.f32 %v1061_v30, %v897_v32  ;;  %v898_v36 = vmul.f32 %v1170_v33, %v1060_v28 }
 0x120   : > { %v908_v37 = vmax.f32 %v906_v35, 0.0  ;;  %v907_v38 = vadd.f32 %v1061_v30, %v898_v36 }
 0x122   : > { %v1068_v39 = vpack.c.bf16 %v908_v37, %v908_v37  ;;  %v909_v40 = vmax.f32 %v907_v38, 0.0 }
 0x124   : > { %919 = vst.msk [vmem:[%s197_s14] sm:$0xf] %vm918_vm8, %v1068_v39  ;;  %v1069_v42 = vpack.c.bf16 %v909_v40, %v909_v40 }
 0x126   : > { %v924_v43 = vsel %vm922_vm10, %v1069_v42, %v923_v41 }
 0x127   : > { %925 = vst [vmem:[%s197_s14 + $0x4] sm:$0xf] %v924_v43 }
 0x128 PF: > { %s14_s15 = sadd.s32 1, %s1244_s15  }
 0x129   : > { %p11_p4 = scmp.ge.s32.totalorder %s14_s15, 4  }
 0x12b   :  { %13 = sbr.rel (!%p11_p4) target bundleno = 1 (0x1), region = 74 }

// kernel: pspnet_forward.13
= control target key start
LH: loop header
LB: loop body
LE: loop exit
PB: predicated region body
PF: predicated region fallthrough
CT: control target
= control target key end

     0   :  { %s845_s21 = smov 0   ;;  %s919_s0 = inlined_call_operand.vmem [shape: bf16[2,9,16], index: 0, kind: input, shape index: {}]   ;;  %s920_s1 = inlined_call_operand.vmem [shape: bf16[2,8,9], index: 1, kind: input, shape index: {}]   ;;  %s921_s2 = inlined_call_operand.vmem [shape: bf16[2,9,8], index: 2, kind: input, shape index: {}]   ;;  %s922_s3 = inlined_call_operand.vmem [shape: bf16[2,16,8], index: 3, kind: input, shape index: {}]   ;;  %s923_s4 = inlined_call_operand.vmem [shape: f32[2,1,8], index: 4, kind: input, shape index: {}]   ;;  %s924_s5 = inlined_call_operand.vmem [shape: f32[2,1,8], index: 5, kind: input, shape index: {}]   ;;  %s925_s6 = inlined_call_operand.vmem [shape: bf16[2,9,32], index: 6, kind: output, shape index: {}]  }
   0x1 LB: > { %s694_s22 = sadd.s32 4294967295, %s803_s21   ;;  %p698_p0 = scmp.ge.s32.totalorder %s803_s21, 1  ;;  %s803_s21 = sphi %s845_s21, %s16_s21  }
   0x2   : > { %p212_p1 = scmp.lt.s32.totalorder %s803_s21, 3 }
   0x4   : > { %p213_p2 = pnand %p698_p0, %p212_p1 }
   0x5   : > { %p242_p3 = scmp.lt.s32.totalorder (!%p213_p2), %s694_s22, 1  ;;  %vm265_vm0 = vcmask (!%p213_p2), 1043456   ;;  %v805_v0 = vmov (!%p213_p2), 0.0   ;;  %vm266_vm1 = vcmask (!%p213_p2), 1044480   ;;  %v806_v1 = vmov (!%p213_p2), 65535   ;;  %v793_v7 = vld [vmem:[%s922_s3] sm:$0xff] (!%p213_p2)  }
   0x6   : > { %216 = sbr.rel (%p213_p2) target bundleno = 1028 (0x404), region = 44  ;;  %743 = vmatprep.subr.bf16.mxu0 (!%p213_p2), %v805_v0  ;;  %749 = vmatprep.subr.bf16.mxu1 (!%p213_p2), %v805_v0  ;;  %v267_v2 = vsel (!%p213_p2), %vm265_vm0, 4294967295, %v806_v1  ;;  %vm807_vm2 = vmmov (!%p213_p2), 0   ;;  %v255_v6 = vld [vmem:[%s920_s1] sm:$0xf] (!%p213_p2)  ;;  %vm261_vm3 = vcmask (!%p213_p2), 72704  }
   0x7   : > { %745 = vmatprep.mubr.msk.bf16.mxu0 (!%p213_p2), %vm807_vm2, %v805_v0  ;;  %751 = vmatprep.mubr.msk.bf16.mxu1 (!%p213_p2), %vm807_vm2, %v805_v0  ;;  %v268_v3 = vsel (!%p213_p2), %vm266_vm1, %v267_v2, 0  ;;  %vm321_vm4 = vcmask (!%p213_p2), 130048   ;;  %v711_v13 = vld [vmem:[%s920_s1 + $0x4] sm:$0xf] (!%p213_p2)  ;;  %v707_v14 = vld [vmem:[%s923_s4] ss:$0 sm:$0xff] (!%p213_p2) }
   0x8   : > { %750 = vmatpush3.bf16.msra.mxu1 (!%p213_p2), %v793_v7  ;;  %v708_v16 = vld [vmem:[%s924_s5] ss:$0 sm:$0xff] (!%p213_p2)  ;;  %vm390_vm5 = vcmask (!%p213_p2), 64512   ;;  %v795_v29 = vld [vmem:[%s922_s3 + $0x8] sm:$0xff] (!%p213_p2)   ;;  %s808_s17 = smov (!%p213_p2), 16   ;;  %s809_s27 = smov (!%p213_p2), 24  }
   0x9   : > { %761 = vmatprep.subr.bf16.mxu1 (!%p213_p2), %v805_v0  ;;  %v794_v26 = vld [vmem:[%s921_s2] sm:$0x1f] (!%p213_p2)   ;;  %v796_v48 = vld [vmem:[%s921_s2 + $0x8] sm:$0x1f] (!%p213_p2)   ;;  %vm621_vm6 = vcmask (!%p213_p2), 195584   ;;  %vm633_vm7 = vcmask (!%p213_p2), 253952  }
   0xa   : > { %v718_v37 = vld [vmem:[%s923_s4 + $0x1] ss:$0 sm:$0xff] (!%p213_p2)  ;;  %vm634_vm8 = vsmask.f32 (!%p213_p2), 256  ;;  %vm631_vm9 = vcmask (!%p213_p2), 257024  }
   0xb   : > { %v720_v39 = vld [vmem:[%s924_s5 + $0x1] ss:$0 sm:$0xff] (!%p213_p2)  ;;  %vm635_vm10 = vmand (!%p213_p2), %vm633_vm7, %vm634_vm8 }
   0xd   : > { %s927_s22 = smov (!%p242_p3, %s694_s22), 1 }
   0xe   : > { %s729_s23 = sshll.u32 %s927_s22, 3 }
   0xf   : > { %s246_s26 = scalar_lea.vmem %s919_s0, %s729_s23  ;;  %s251_s30 = scalar_lea.vmem %s925_s6, %s729_s23 }
  0x10   : > { %v864_v4 = vld [vmem:[%s246_s26] sm:$0x1f]  }
  0x11   : > { %v270_v5 = vand.u32 %v864_v4, %v268_v3  ;;  %v636_v57 = vld [vmem:[%s251_s30 + $0x4] sm:$0x1] }
  0x13   : > { %744 = vmatpush3.bf16.msra.mxu0 %v270_v5 }
  0x14   : > { %755 = vmatprep.subr.bf16.mxu0 %v805_v0 }
  0x16   : > { %746 = vmatmul.mubr.msk.bf16.vlgmr.msra.gmra.mrb[0].mxu0 %vm261_vm3, %v255_v6 }
  0x17   : > { %757 = vmatprep.mubr.msk.bf16.mxu0 %vm807_vm2, %v805_v0 }
  0xe9   : > { %v306_v8 = vpop.f32.mrb[0].mxu0 }
  0xea   : > { %v312_v9 = vpack.c.bf16 %v306_v8, %v306_v8  ;;  %v747_v10 = vpop.f32.mrb[1].mxu0 }
  0xeb   : > { %v309_v11 = vpop.f32.mrb[2].mxu0 }
  0xec   : > { %v748_v12 = vpop.f32.mrb[3].mxu0  ;;  %752 = vmatmul.mubr.msk.bf16.vlgmr.msra.gmra.mrb[0].mxu1 %vm321_vm4, %v312_v9 }
  0xed   : > { %762 = vmatpush3.bf16.msra.mxu1 %v270_v5  ;;  %763 = vmatprep.mubr.msk.bf16.mxu1 %vm807_vm2, %v805_v0 }
  0xee   : > { %773 = vmatprep.subr.bf16.mxu1 %v805_v0 }
  0xf4   : > { %764 = vmatmul.mubr.msk.bf16.vlgmr.msra.gmra.mrb[4].mxu1 %vm261_vm3, %v711_v13 }
  0xf5   : > { %775 = vmatprep.mubr.msk.bf16.mxu1 %vm807_vm2, %v805_v0 }
 0x1bf   : > { %v359_v15 = vpop.f32.mrb[0].mxu1 }
 0x1c0   : > { %v372_v17 = vmul.f32 %v707_v14, %v359_v15  ;;  %v753_v18 = vpop.f32.mrb[1].mxu1 }
 0x1c1   : > { %v362_v19 = vpop.f32.mrb[2].mxu1 }
 0x1c2   : > { %v380_v20 = vadd.f32 %v708_v16, %v372_v17  ;;  %v754_v21 = vpop.f32.mrb[3].mxu1 }
 0x1c4   : > { %v381_v22 = vmax.f32 %v380_v20, 0.0 }
 0x1c6   : > { %v384_v23 = vpack.c.bf16 %v381_v22, %v381_v22 }
 0x1c7   : > { %v478_v24 = vpop.f32.mrb[4].mxu1 }
 0x1c8   : > { %v395_v25 = vsel %vm265_vm0, %v384_v23, 0  ;;  %v765_v27 = vpop.f32.mrb[5].mxu1  ;;  %v484_v31 = vpack.c.bf16 %v478_v24, %v478_v24 }
 0x1c9   : > { %756 = vmatpush3.bf16.msra.mxu0 %v395_v25  ;;  %v481_v28 = vpop.f32.mrb[6].mxu1 }
 0x1ca   : > { %767 = vmatprep.subr.bf16.mxu0 %v805_v0  ;;  %v766_v30 = vpop.f32.mrb[7].mxu1 }
 0x1cc   : > { %758 = vmatmul.mubr.msk.bf16.vlgmr.msra.gmra.mrb[4].mxu0 %vm390_vm5, %v794_v26 }
 0x1cd   : > { %768 = vmatpush3.bf16.msra.mxu0 %v795_v29  ;;  %769 = vmatprep.mubr.msk.bf16.mxu0 %vm807_vm2, %v805_v0 }
 0x1d4   : > { %770 = vmatmul.mubr.msk.bf16.vlgmr.msra.gmra.mrb[8].mxu0 %vm321_vm4, %v484_v31 }
 0x29f   : > { %v431_v32 = vpop.f32.mrb[4].mxu0 }
 0x2a0   : > { %v759_v33 = vpop.f32.mrb[5].mxu0 }
 0x2a1   : > { %v434_v34 = vpop.f32.mrb[6].mxu0 }
 0x2a2   : > { %v438_v35 = vpack.c.bf16 %v434_v34, %v431_v32  ;;  %v760_v36 = vpop.f32.mrb[7].mxu0 }
 0x2a4   : > { %614 = vrot.lane.b32.xlu0 %v438_v35, %s808_s17 }
 0x2a7   : > { %v531_v38 = vpop.f32.mrb[8].mxu0 }
 0x2a8   : > { %v545_v40 = vmul.f32 %v718_v37, %v531_v38  ;;  %v771_v41 = vpop.f32.mrb[9].mxu0 }
 0x2a9   : > { %v534_v42 = vpop.f32.mrb[10].mxu0 }
 0x2aa   : > { %v554_v43 = vadd.f32 %v720_v39, %v545_v40  ;;  %v772_v44 = vpop.f32.mrb[11].mxu0 }
 0x2ac   : > { %v555_v45 = vmax.f32 %v554_v43, 0.0 }
 0x2ae   : > { %v559_v46 = vpack.c.bf16 %v555_v45, %v555_v45 }
 0x2b0   : > { %v569_v47 = vsel %vm265_vm0, %v559_v46, 0 }
 0x2b1   : > { %774 = vmatpush3.bf16.msra.mxu1 %v569_v47 }
 0x2b4   : > { %776 = vmatmul.mubr.msk.bf16.vlgmr.msra.gmra.mrb[8].mxu1 %vm390_vm5, %v796_v48 }
 0x316   : > { %v615_v54 = vpop.permute.xlu0 %614 }
 0x317   : > { %v620_v55 = vsel %vm321_vm4, %v864_v4, %v615_v54 }
 0x387   : > { %v605_v49 = vpop.f32.mrb[8].mxu1 }
 0x388   : > { %v777_v50 = vpop.f32.mrb[9].mxu1 }
 0x389   : > { %v608_v51 = vpop.f32.mrb[10].mxu1 }
 0x38a   : > { %v612_v52 = vpack.c.bf16 %v608_v51, %v605_v49  ;;  %v778_v53 = vpop.f32.mrb[11].mxu1 }
 0x38c   : > { %617 = vrot.lane.b32.xlu0 %v612_v52, %s809_s27 }
 0x3fe   : > { %v618_v56 = vpop.permute.xlu0 %617 }
 0x3ff   : > { %v623_v58 = vsel %vm621_vm6, %v620_v55, %v618_v56 }
 0x400   : > { %v725_v59 = vcombine.low %v623_v58, %v623_v58  ;;  %v726_v60 = vcombine.high %v623_v58, %v623_v58 }
 0x402   : > { %632 = vst.msk [vmem:[%s251_s30] sm:$0xf] %vm631_vm9, %v725_v59  ;;  %v637_v61 = vsel %vm635_vm10, %v726_v60, %v636_v57 }
 0x403   : > { %638 = vst [vmem:[%s251_s30 + $0x4] sm:$0x1] %v637_v61 }
 0x404 PF: > { %s16_s21 = sadd.s32 1, %s803_s21  }
 0x405   : > { %p13_p4 = scmp.ge.s32.totalorder %s16_s21, 4  }
 0x407   :  { %15 = sbr.rel (!%p13_p4) target bundleno = 1 (0x1), region = 79 }

// kernel: pspnet_forward.15
= control target key start
LH: loop header
LB: loop body
LE: loop exit
PB: predicated region body
PF: predicated region fallthrough
CT: control target
= control target key end

     0   :  { %s483_s12 = smov 0   ;;  %s518_s0 = inlined_call_operand.vmem [shape: bf16[2,16,9], index: 0, kind: input, shape index: {}]   ;;  %s519_s1 = inlined_call_operand.vmem [shape: bf16[8,16], index: 1, kind: input, shape index: {}]   ;;  %s520_s2 = inlined_call_operand.vmem [shape: bf16[9,384], index: 2, kind: input, shape index: {}]   ;;  %s521_s3 = inlined_call_operand.vmem [shape: f32[2,8,384], index: 3, kind: output, shape index: {}]  }
   0x1 LB: > { %s399_s13 = sadd.s32 4294967295, %s457_s12   ;;  %p403_p0 = scmp.ge.s32.totalorder %s457_s12, 1  ;;  %s457_s12 = sphi %s483_s12, %s13_s12  }
   0x2   : > { %p137_p1 = scmp.lt.s32.totalorder %s457_s12, 3 }
   0x4   : > { %p138_p2 = pnand %p403_p0, %p137_p1 }
   0x5   : > { %p161_p3 = scmp.lt.s32.totalorder (!%p138_p2), %s399_s13, 1  ;;  %v459_v0 = vmov (!%p138_p2), 0.0   ;;  %vm460_vm0 = vmmov (!%p138_p2), 0   ;;  %vm247_vm1 = vcmask (!%p138_p2), 1043456   ;;  %vm248_vm2 = vcmask (!%p138_p2), 1044480  }
   0x6   : > { %141 = sbr.rel (%p138_p2) target bundleno = 449 (0x1c1), region = 32  ;;  %421 = vmatprep.subr.bf16.mxu0 (!%p138_p2), %v459_v0  ;;  %423 = vmatprep.mubr.msk.bf16.mxu0 (!%p138_p2), %vm460_vm0, %v459_v0  ;;  %v461_v1 = vmov (!%p138_p2), 65535   ;;  %v448_v3 = vld [vmem:[%s520_s2 + $0x4] ss:$12 sps:$4 sm:$0x1f] (!%p138_p2)   ;;  %vm181_vm3 = vcmask (!%p138_p2), 130048  }
   0x7   : > { %v249_v2 = vsel (!%p138_p2), %vm247_vm1, 4294967295, %v461_v1  ;;  %v447_v4 = vld [vmem:[%s520_s2 + $0x8] ss:$12 sps:$4 sm:$0x1f] (!%p138_p2)   ;;  %v172_v8 = vld [vmem:[%s519_s1] sm:$0xf] (!%p138_p2) }
   0x8   : > { %v250_v5 = vsel (!%p138_p2), %vm248_vm2, %v249_v2, 0  ;;  %v450_v10 = vld [vmem:[%s520_s2] ss:$12 sps:$4 sm:$0x1f] (!%p138_p2)   ;;  %v462_v12 = vmov (!%p138_p2), 0   ;;  %vm243_vm4 = vcmask (!%p138_p2), 72704  }
   0x9   : > { %v255_v6 = vand.u32 (!%p138_p2), %v448_v3, %v250_v5  ;;  %v258_v9 = vand.u32 (!%p138_p2), %v447_v4, %v250_v5  ;;  %v252_v11 = vand.u32 (!%p138_p2), %v450_v10, %v250_v5  ;;  %292 = vmatprep.mubr.bf16.mxu1 (!%p138_p2), %v462_v12 }
   0xb   : > { %260 = vmatprep.subr.bf16.mxu1 (!%p138_p2), %v255_v6 }
   0xc   : > { %261 = vmatpush1.bf16.msra.mxu1 (!%p138_p2), %v252_v11 }
   0xd   : > { %s523_s13 = smov (!%p161_p3, %s399_s13), 1 }
   0xe   : > { %s416_s16 = sshll.u32 %s523_s13, 3  ;;  %s433_s26 = smul.u32 24, %s523_s13 }
   0xf   : > { %s165_s21 = scalar_lea.vmem %s518_s0, %s416_s16 }
  0x10   : > { %v446_v7 = vld [vmem:[%s165_s21] sm:$0xff]   ;;  %s170_s29 = scalar_lea.vmem %s521_s3, %s433_s26 }
  0x11   : > { %422 = vmatpush3.bf16.msra.mxu0 %v446_v7 }
  0x12   : > { %427 = vmatprep.subr.bf16.mxu0 %v459_v0 }
  0x14   : > { %424 = vmatmul.mubr.msk.bf16.vlgmr.msra.gmra.mrb[0].mxu0 %vm181_vm3, %v172_v8 }
  0x15   : > { %428 = vmatpush3.bf16.msra.mxu0 %v258_v9  ;;  %429 = vmatprep.mubr.msk.bf16.mxu0 %vm460_vm0, %v459_v0 }
  0xe7   : > { %v219_v13 = vpop.f32.mrb[0].mxu0 }
  0xe8   : > { %v225_v14 = vpack.c.bf16 %v219_v13, %v219_v13  ;;  %v425_v15 = vpop.f32.mrb[1].mxu0 }
  0xe9   : > { %v222_v16 = vpop.f32.mrb[2].mxu0 }
  0xea   : > { %v426_v17 = vpop.f32.mrb[3].mxu0  ;;  %412 = vmatmul.mubr.msk.bf16.vlgmr.msra.gmra.mrb[0].mxu1 %vm243_vm4, %v225_v14  ;;  %430 = vmatmul.mubr.msk.bf16.vlgmr.msra.gmra.mrb[4].mxu0 %vm243_vm4, %v225_v14 }
 0x1bd   : > { %v294_v18 = vpop.f32.mrb[0].mxu1  ;;  %v335_v19 = vpop.f32.mrb[4].mxu0 }
 0x1be   : > { %341 = vst [vmem:[%s170_s29] sm:$0xff] %v294_v18  ;;  %343 = vst [vmem:[%s170_s29 + $0x10] sm:$0xff] %v335_v19  ;;  %v296_v20 = vpop.f32.mrb[1].mxu1  ;;  %v431_v21 = vpop.f32.mrb[5].mxu0 }
 0x1bf   : > { %342 = vst [vmem:[%s170_s29 + $0x8] sm:$0xff] %v296_v20  ;;  %v298_v22 = vpop.f32.mrb[2].mxu1  ;;  %v338_v23 = vpop.f32.mrb[6].mxu0 }
 0x1c0   : > { %v299_v24 = vpop.f32.mrb[3].mxu1  ;;  %v432_v25 = vpop.f32.mrb[7].mxu0 }
 0x1c1 PF: > { %s13_s12 = sadd.s32 1, %s457_s12  }
 0x1c2   : > { %p10_p4 = scmp.ge.s32.totalorder %s13_s12, 4  }
 0x1c4   :  { %12 = sbr.rel (!%p10_p4) target bundleno = 1 (0x1), region = 62 }

</bundles_post_ra>
